<compile_context>
chip_gen: v7x
topology: tpu7x:2x2x1
jax: 0.10.0
libtpu: 0.0.40
codegen_flags: <defaults>
</compile_context>

<pallas_src>
import functools
import math

import jax
import jax.numpy as jnp
from jax.experimental import pallas as pl
from jax.experimental.pallas import tpu as pltpu

LAMBDA = 0.6
BN_EPS = 1e-5


def get_important_channel_num(C):
    t = LAMBDA * C
    floor = math.floor(t)
    return floor + floor % 2


def _spatial_attention_kernel(kmat_ref, x_ref, mim_ref, out_ref, *,
                              inv_c_im, inv_c_sub):
    # kmat_ref : VMEM (2*HW, HW)  dense 7x7-conv matrix, BN eval-scale folded in
    # x_ref    : VMEM (1, C, HW)  lane-dense input slab for this batch element
    # mim_ref  : VMEM (1, C, 1)   important-channel mask (0/1)
    # out_ref  : VMEM (1, C, HW)
    x = x_ref[0].astype(jnp.float32)            # (C, HW)
    m_col = mim_ref[0].astype(jnp.float32)      # (C, 1)

    # ---- channel pooling: one masked pass; sub features = x - im (exact) ----
    imm = x * m_col                              # important features
    subm = x - imm                               # sub-important features
    im_avg = jnp.sum(imm, axis=0, keepdims=True) * inv_c_im     # (1, HW)
    im_max = jnp.max(imm, axis=0, keepdims=True)
    sub_avg = jnp.sum(subm, axis=0, keepdims=True) * inv_c_sub
    sub_max = jnp.max(subm, axis=0, keepdims=True)

    # ---- both conv branches as a single MXU matmul on flat pooled maps ----
    # row 0 = [im_avg | im_max], row 1 = [sub_avg | sub_max]   -> (2, 2*HW)
    p = jnp.concatenate(
        [jnp.concatenate([im_avg, im_max], axis=1),
         jnp.concatenate([sub_avg, sub_max], axis=1)], axis=0)
    a = jnp.dot(p, kmat_ref[...],
                preferred_element_type=jnp.float32,
                precision=jax.lax.Precision.HIGHEST)             # (2, HW)
    a = jax.nn.sigmoid(jnp.maximum(a, 0.0))     # BN(folded) -> ReLU -> Sigmoid

    a1 = a[0:1, :]                               # A_S1  (1, HW)
    a2 = a[1:2, :]                               # A_S2  (1, HW)
    # fused gate: refined = x * (m*A1 + (1-m)*A2) = x * (A2 + m*(A1 - A2))
    gate = a2 + m_col * (a1 - a2)                # (C, HW)
    out_ref[0] = (x * gate).astype(out_ref.dtype)


def _make_important_mask(M, C_im):
    # torch.topk(M, dim=1, k=C_im) + scatter, done in plain JAX glue.
    B, C = M.shape[0], M.shape[1]
    Mv = M.reshape(B, C)
    _, idx = jax.lax.top_k(Mv, C_im)
    im = jnp.zeros((B, C), jnp.float32).at[jnp.arange(B)[:, None], idx].set(1.0)
    return im                                    # (B, C), 0/1


def _build_conv_matrix(conv_w, H, W):
    # Dense matrix K (2*HW, HW) such that for a flattened 2-channel map
    # p = [ch0_flat | ch1_flat] (row vector), p @ K equals the flattened output
    # of Conv2d(2, 1, kernel_size=7, padding=3, bias=False), with the eval-mode
    # BatchNorm2d(1) scale 1/sqrt(1+eps) folded in.
    wk = conv_w[0].astype(jnp.float32)                                 # (2, 7, 7)
    di = jnp.arange(H)[:, None] - jnp.arange(H)[None, :] + 3           # (H_in, H_out)
    dj = jnp.arange(W)[:, None] - jnp.arange(W)[None, :] + 3           # (W_in, W_out)
    valid = (((di >= 0) & (di <= 6))[:, None, :, None]
             & ((dj >= 0) & (dj <= 6))[None, :, None, :])              # (H,W,H,W)
    kfull = wk[:, jnp.clip(di, 0, 6)[:, None, :, None],
               jnp.clip(dj, 0, 6)[None, :, None, :]]                   # (2,H,W,H,W)
    kfull = kfull * valid.astype(jnp.float32)[None]
    kfull = kfull / math.sqrt(1.0 + BN_EPS)
    return kfull.reshape(2 * H * W, H * W)


def spatial_attention_forward(x, M, conv_w):
    B, C, H, W = x.shape
    C_im = get_important_channel_num(C)
    C_sub = C - C_im
    if C_im == 0 or C_sub == 0:
        # PyTorch module would divide by zero here as well.
        raise ValueError(f"SpatialAttention needs both channel groups non-empty "
                         f"(C={C} -> C_im={C_im}, C_sub={C_sub})")

    HW = H * W
    x_flat = x.reshape(B, C, HW)                         # lane-dense layout
    im_mask = _make_important_mask(M, C_im).reshape(B, C, 1)
    kmat = _build_conv_matrix(conv_w, H, W)              # (2*HW, HW)

    kernel = functools.partial(
        _spatial_attention_kernel,
        inv_c_im=1.0 / float(C_im),
        inv_c_sub=1.0 / float(C_sub))

    out_flat = pl.pallas_call(
        kernel,
        out_shape=jax.ShapeDtypeStruct((B, C, HW), x.dtype),
        grid_spec=pltpu.PrefetchScalarGridSpec(
            num_scalar_prefetch=0,
            grid=(B,),
            in_specs=[
                pl.BlockSpec((2 * HW, HW), lambda b: (0, 0)),   # conv matrix (resident)
                pl.BlockSpec((1, C, HW), lambda b: (b, 0, 0)),  # x (flat)
                pl.BlockSpec((1, C, 1), lambda b: (b, 0, 0)),   # important mask
            ],
            out_specs=pl.BlockSpec((1, C, HW), lambda b: (b, 0, 0)),
        ),
        compiler_params=pltpu.CompilerParams(
            dimension_semantics=("parallel",),
            vmem_limit_bytes=64 * 1024 * 1024),
    )(kmat, x_flat, im_mask)

    return out_flat.reshape(B, C, H, W)


def _reference(x, M, conv_w):
    # Pure-JAX reference mirroring the PyTorch forward (eval-mode BN).
    B, C, H, W = x.shape
    C_im = get_important_channel_num(C)
    C_sub = C - C_im
    im = _make_important_mask(M, C_im).reshape(B, C, 1, 1)
    sub = 1.0 - im
    im_feat = im * x
    sub_feat = sub * x

    def pool(f, scale):
        return jnp.concatenate(
            [jnp.mean(f, axis=1, keepdims=True) * scale,
             jnp.max(f, axis=1, keepdims=True)], axis=1)

    def cba(t):
        y = jax.lax.conv_general_dilated(
            t, conv_w, window_strides=(1, 1), padding=((3, 3), (3, 3)),
            dimension_numbers=("NCHW", "OIHW", "NCHW"),
            precision=jax.lax.Precision.HIGHEST)
        y = y / jnp.sqrt(1.0 + BN_EPS)
        return jax.nn.sigmoid(jnp.maximum(y, 0.0))

    A1 = cba(pool(im_feat, C / C_im))
    A2 = cba(pool(sub_feat, C / C_sub))
    return im_feat * A1 + sub_feat * A2


if __name__ == "__main__":
    key = jax.random.PRNGKey(0)
    kx, km, kw = jax.random.split(key, 3)

    B, C, H, W = 2, 4, 16, 16
    x = jax.random.normal(kx, (B, C, H, W), jnp.float32)
    M = jax.random.normal(km, (B, C, 1, 1), jnp.float32)   # channel-attention map
    # Conv2d(2, 1, kernel_size=7, bias=False) weight, deterministic init
    fan_in = 2 * 7 * 7
    conv_w = jax.random.normal(kw, (1, 2, 7, 7), jnp.float32) * (1.0 / math.sqrt(fan_in))

    out = jax.block_until_ready(spatial_attention_forward(x, M, conv_w))
    ref = jax.block_until_ready(_reference(x, M, conv_w))

    assert out.shape == (B, C, H, W)
    max_err = float(jnp.max(jnp.abs(out - ref)))
    assert jnp.allclose(out, ref, atol=2e-4, rtol=2e-4), max_err

    print("KERNEL_OK")
</pallas_src>

<mosaic_0001>
module attributes {stable_mosaic.version = 11 : i64} {
  func.func @_spatial_attention_kernel(%arg0: i32, %arg1: memref<512x256xf32, #tpu.memory_space<vmem>>, %arg2: memref<1x4x256xf32, #tpu.memory_space<vmem>>, %arg3: memref<1x4x1xf32, #tpu.memory_space<vmem>>, %arg4: memref<1x4x256xf32, #tpu.memory_space<vmem>>) attributes {dimension_semantics = [#tpu.dimension_semantics<parallel>], iteration_bounds = array<i64: 2>, scalar_prefetch = 0 : i64, scratch_operands = 0 : i64, tpu.core_type = #tpu.core_type<tc>, window_params = [{pipeline_mode = #tpu.pipeline_mode<synchronous>, transform_indices = @transform_0, window_bounds = array<i64: 512, 256>}, {transform_indices = @transform_1, window_bounds = array<i64: 1, 4, 256>}, {transform_indices = @transform_2, window_bounds = array<i64: 1, 4, 1>}, {transform_indices = @transform_3, window_bounds = array<i64: 1, 4, 256>}]} {
    %c0 = arith.constant 0 : index
    %c0_0 = arith.constant 0 : index
    %c0_1 = arith.constant 0 : index
    %0 = vector.load %arg2[%c0, %c0_0, %c0_1] : memref<1x4x256xf32, #tpu.memory_space<vmem>>, vector<1x4x256xf32>
    %1 = vector.shape_cast %0 : vector<1x4x256xf32> to vector<4x256xf32>
    %c0_2 = arith.constant 0 : index
    %c0_3 = arith.constant 0 : index
    %c0_4 = arith.constant 0 : index
    %2 = vector.load %arg3[%c0_2, %c0_3, %c0_4] : memref<1x4x1xf32, #tpu.memory_space<vmem>>, vector<1x4x1xf32>
    %3 = vector.shape_cast %2 : vector<1x4x1xf32> to vector<4x1xf32>
    %4 = vector.broadcast %3 : vector<4x1xf32> to vector<4x256xf32>
    %5 = arith.mulf %1, %4 : vector<4x256xf32>
    %6 = arith.subf %1, %5 : vector<4x256xf32>
    %cst = arith.constant dense<0.000000e+00> : vector<256xf32>
    %7 = vector.multi_reduction <add>, %5, %cst [0] : vector<4x256xf32> to vector<256xf32>
    %8 = vector.shape_cast %7 : vector<256xf32> to vector<1x256xf32>
    %cst_5 = arith.constant 5.000000e-01 : f32
    %9 = vector.broadcast %cst_5 : f32 to vector<1x256xf32>
    %10 = arith.mulf %8, %9 : vector<1x256xf32>
    %cst_6 = arith.constant dense<0xFF800000> : vector<256xf32>
    %11 = vector.multi_reduction <maximumf>, %5, %cst_6 [0] : vector<4x256xf32> to vector<256xf32>
    %12 = vector.shape_cast %11 : vector<256xf32> to vector<1x256xf32>
    %cst_7 = arith.constant dense<0.000000e+00> : vector<256xf32>
    %13 = vector.multi_reduction <add>, %6, %cst_7 [0] : vector<4x256xf32> to vector<256xf32>
    %14 = vector.shape_cast %13 : vector<256xf32> to vector<1x256xf32>
    %cst_8 = arith.constant 5.000000e-01 : f32
    %15 = vector.broadcast %cst_8 : f32 to vector<1x256xf32>
    %16 = arith.mulf %14, %15 : vector<1x256xf32>
    %cst_9 = arith.constant dense<0xFF800000> : vector<256xf32>
    %17 = vector.multi_reduction <maximumf>, %6, %cst_9 [0] : vector<4x256xf32> to vector<256xf32>
    %18 = vector.shape_cast %17 : vector<256xf32> to vector<1x256xf32>
    %19 = tpu.concatenate %10, %12 in 1 : vector<1x256xf32>, vector<1x256xf32> -> vector<1x512xf32>
    %20 = tpu.concatenate %16, %18 in 1 : vector<1x256xf32>, vector<1x256xf32> -> vector<1x512xf32>
    %21 = tpu.concatenate %19, %20 in 0 : vector<1x512xf32>, vector<1x512xf32> -> vector<2x512xf32>
    %c0_10 = arith.constant 0 : index
    %c0_11 = arith.constant 0 : index
    %22 = vector.load %arg1[%c0_10, %c0_11] : memref<512x256xf32, #tpu.memory_space<vmem>>, vector<512x256xf32>
    %cst_12 = arith.constant dense<0.000000e+00> : vector<2x256xf32>
    %23 = tpu.matmul %21, %22, %cst_12 {dimension_numbers = #tpu.dot_dimension_numbers<[1], [0], [0], [1], [0, 0, 1, 1], [], []>, precision = #tpu.contract_precision<fp32>} : vector<2x512xf32>, vector<512x256xf32>, vector<2x256xf32> -> vector<2x256xf32>
    %cst_13 = arith.constant 0.000000e+00 : f32
    %24 = vector.broadcast %cst_13 : f32 to vector<2x256xf32>
    %25 = arith.maximumf %23, %24 : vector<2x256xf32>
    %26 = arith.negf %25 : vector<2x256xf32>
    %27 = math.exp %26 : vector<2x256xf32>
    %cst_14 = arith.constant 1.000000e+00 : f32
    %28 = vector.broadcast %cst_14 : f32 to vector<2x256xf32>
    %29 = arith.addf %28, %27 : vector<2x256xf32>
    %30 = arith.divf %28, %29 : vector<2x256xf32>
    %31 = vector.extract_strided_slice %30 {offsets = [0, 0], sizes = [1, 256], strides = [1, 1]} : vector<2x256xf32> to vector<1x256xf32>
    %32 = vector.extract_strided_slice %30 {offsets = [1, 0], sizes = [1, 256], strides = [1, 1]} : vector<2x256xf32> to vector<1x256xf32>
    %33 = arith.subf %31, %32 : vector<1x256xf32>
    %34 = vector.broadcast %3 : vector<4x1xf32> to vector<4x256xf32>
    %35 = vector.broadcast %33 : vector<1x256xf32> to vector<4x256xf32>
    %36 = arith.mulf %34, %35 : vector<4x256xf32>
    %37 = vector.broadcast %32 : vector<1x256xf32> to vector<4x256xf32>
    %38 = arith.addf %37, %36 : vector<4x256xf32>
    %39 = arith.mulf %1, %38 : vector<4x256xf32>
    %c0_15 = arith.constant 0 : index
    %c0_16 = arith.constant 0 : index
    %c0_17 = arith.constant 0 : index
    %40 = vector.load %arg4[%c0_15, %c0_16, %c0_17] : memref<1x4x256xf32, #tpu.memory_space<vmem>>, vector<1x4x256xf32>
    %41 = vector.shape_cast %40 : vector<1x4x256xf32> to vector<4x256xf32>
    %42 = vector.shape_cast %39 : vector<4x256xf32> to vector<1x4x256xf32>
    tpu.vector_store %arg4[%c0_15, %c0_16, %c0_17], %42 {strides = array<i32>} : memref<1x4x256xf32, #tpu.memory_space<vmem>>, vector<1x4x256xf32>,
    return
  }
  func.func @transform_0(%arg0: i32) -> (i32, i32) {
    %c0_i32 = arith.constant 0 : i32
    %c0_i32_0 = arith.constant 0 : i32
    %c0_i32_1 = arith.constant 0 : i32
    return %c0_i32, %c0_i32_0 : i32, i32
  }
  func.func @transform_1(%arg0: i32) -> (i32, i32, i32) {
    %c0_i32 = arith.constant 0 : i32
    %c0_i32_0 = arith.constant 0 : i32
    %c0_i32_1 = arith.constant 0 : i32
    return %arg0, %c0_i32, %c0_i32_0 : i32, i32, i32
  }
  func.func @transform_2(%arg0: i32) -> (i32, i32, i32) {
    %c0_i32 = arith.constant 0 : i32
    %c0_i32_0 = arith.constant 0 : i32
    %c0_i32_1 = arith.constant 0 : i32
    return %arg0, %c0_i32, %c0_i32_0 : i32, i32, i32
  }
  func.func @transform_3(%arg0: i32) -> (i32, i32, i32) {
    %c0_i32 = arith.constant 0 : i32
    %c0_i32_0 = arith.constant 0 : i32
    %c0_i32_1 = arith.constant 0 : i32
    return %arg0, %c0_i32, %c0_i32_0 : i32, i32, i32
  }
}

</mosaic_0001>

<bundles_post_ra>
// kernel: tpu_custom_call.1
= control target key start
LH: loop header
LB: loop body
LE: loop exit
PB: predicated region body
PF: predicated region fallthrough
CT: control target
= control target key end

     0   :  { %8 = vsyncpa [#allocation3], 0  ;;  %s6339_s0 = inlined_call_operand.hbm [shape: f32[512,256], index: 0, kind: input, shape index: {}]   ;;  %s6340_s1 = inlined_call_operand.hbm [shape: f32[2,4,256], index: 1, kind: input, shape index: {}]   ;;  %s6341_s2 = inlined_call_operand.hbm [shape: f32[2,4,1], index: 2, kind: input, shape index: {}]   ;;  %s6342_s3 = inlined_call_operand.hbm [shape: f32[2,4,256], index: 3, kind: output, shape index: {}]  }
   0x1   :  { %9 = vsyncpa [#allocation6], 0 }
   0x2   :  { %11 = vsyncpa [#allocation6 + $0x1], 0 }
   0x3   :  { %12 = vsyncpa [#allocation4], 0 }
   0x4   :  { %14 = vsyncpa [#allocation4 + $0x1], 0  ;;  %s4275_s12 = smov 0   ;;  %s4277_s13 = smov 0  }
   0x5   :  { %s4279_s14 = smov 0   ;;  %s4281_s15 = smov 0  }
   0x6 LB: > { %s4296_s16 = sadd.s32 1, %s4245_s15   ;;  %s48_s17 = sadd.s32 1, %s4241_s14  ;;  %s4245_s15 = sphi %s4281_s15, %s7691_s15   ;;  %s4241_s14 = sphi %s4279_s14, %s7690_s14   ;;  %s4237_s13 = sphi %s4277_s13, %s7689_s13   ;;  %s4233_s12 = sphi %s4275_s12, %s7688_s12  }
   0x7   : > { %s45_s18 = ssub.s32 %s4245_s15, %s4296_s16  ;;  %p55_p0 = scmp.ne.s32.totalorder %s4241_s14, %s4237_s13 }
   0x8   : > { %p46_p1 = scmp.eq.s32.totalorder %s45_s18, 0  ;;  %p56_p2 = scmp.eq.s32.totalorder %s4245_s15, 0 }
   0x9   : > { %p4037_p4 = scmp.lt.s32.totalorder %s4245_s15, 2  ;;  %s150_s20 = sand.u32 1, %s4245_s15  }
   0xa   : > { %s4307_s19 = scalar_select %p46_p1, %s4241_s14, %s48_s17  }
   0xb   : > { %p57_p5 = por %p56_p2, %p55_p0  ;;  %s152_s21 = sand.u32 1, %s4241_s14  }
   0xc   : > { %s3202_s22 = sshll.u32 %s152_s21, 3  ;;  %s3219_s23 = sshll.u32 %s4245_s15, 7 }
   0xd   : > { %s4318_s26 = scalar_lea.hbm %s6340_s1, %s3219_s23  ;;  %s154_s27 = scalar_lea.vmem [#allocation5], %s3202_s22 }
   0xe   : > { %s162_s28 = sshll.u32 %s154_s27, 4  ;;  %p4320_p6 = pnand %p4037_p4, %p57_p5  ;;  %s4324_s28 = int_to_ptr.vmem [resolvable:$true] %s162_s28 }
   0xf   : > { %s4326_s30 = sshll.u32 %s152_s21, 2  ;;  %s4328_s4 = scalar_lea.sflag [#allocation6], %s150_s20 }
  0x10   : > { %s6868_s29 = scalar_select %p4320_p6, 1, 0 }
  0x11   : > { %s4087_s5 = scalar_lea.hbm %s4318_s26, 128  ;;  %p6344_p8 = pneg %p4320_p6 }
  0x12   : > { %p4088_p7 = scmp.ne.s32.totalorder %s4318_s26, %s4087_s5  ;;  %s4092_s8 = scalar_lea.hbm %s6340_s1, 256 }
  0x13   : > { %p4093_p11 = scmp.lt.u32.totalorder %s4318_s26, %s6340_s1  ;;  %p4094_p12 = scmp.lt.u32.totalorder %s4092_s8, %s4087_s5 }
  0x14   : > { %p4090_p9 = pnand %p6344_p8, %p4088_p7  ;;  %p4096_p1 = scmp.lt.u32.totalorder %s4087_s5, %s4318_s26 }
  0x15   : > { %p4095_p13 = por %p4094_p12, %p4093_p11 }
  0x16   : > { %p4091_p10 = pneg %p4090_p9 }
  0x17   : > { %p4097_p2 = por %p4096_p1, %p4095_p13 }
  0x19   : > { %p4098_p4 = pnand %p4097_p2, %p4091_p10 }
  0x1b   : > { %4101 = shalt.err (!%p4098_p4)
}
  0x1c   : > { %s4102_s11 = scalar_lea.vmem %s4324_s28, 128  ;;  %s4247_s17 = smov [#allocation5]  }
  0x1d   : > { %p4103_p5 = scmp.ne.s32.totalorder %s4324_s28, %s4102_s11  ;;  %s4107_s18 = sshll.u32 %s4247_s17, 4  ;;  %s4108_s18 = int_to_ptr.vmem [resolvable:$false] %s4107_s18 }
  0x1e   : > { %s4109_s20 = scalar_lea.vmem %s4108_s18, 256  ;;  %p4110_p3 = scmp.lt.s32.totalorder %s4324_s28, %s4108_s18 }
  0x1f   : > { %p4105_p7 = pnand %p4103_p5, %p6344_p8  ;;  %p4111_p11 = scmp.lt.s32.totalorder %s4109_s20, %s4102_s11 }
  0x21   : > { %p4106_p9 = pneg %p4105_p7  ;;  %p4112_p12 = por %p4111_p11, %p4110_p3 }
  0x23   : > { %p4113_p13 = pnand %p4112_p12, %p4106_p9 }
  0x25   : > { %4116 = shalt.err (!%p4113_p13)
}
  0x26   : > { %4028 = dma.hbm_to_vmem [thread:$0]  (!%p4320_p6), %s4318_s26, 128, %s4324_s28, %s4328_s4  }
  0x27   : > { %s4357_s21 = sadd.s32 4294967295, %s4245_s15   ;;  %s3198_s22 = sadd.s32 4294967294, %s4245_s15  }
  0x28   : > { %p61_p3 = scmp.ne.s32.totalorder %s4237_s13, %s4233_s12  ;;  %p6343_p10 = scmp.eq.s32.totalorder %s4357_s21, 0 }
  0x29   : > { %p111_p1 = scmp.eq.s32.totalorder %s4357_s21, 1  ;;  %p117_p2 = scmp.eq.s32.totalorder %s3198_s22, 1 }
  0x2a   : > { %p3199_p4 = scmp.ge.s32.totalorder %s4245_s15, 1  ;;  %p4367_p5 = por %p6343_p10, %p61_p3 }
  0x2b   : > { %p4374_p7 = por %p111_p1, %p55_p0  ;;  %p4378_p9 = por %p117_p2, %p61_p3 }
  0x2c   : > { %s6869_s23 = scalar_select %p4367_p5, 1, 0 }
  0x2d   : > { %s6870_s24 = scalar_select %p4374_p7, 1, 0 }
  0x2e   : > { %s6871_s25 = scalar_select %p4378_p9, 1, 0 }
  0x2f   : > { %p124_p11 = scmp.lt.s32.totalorder %s4245_s15, 3  ;;  %s4248_s27 = smov [#allocation2]  }
  0x30   : > { %s136_s28 = sshll.u32 %s4248_s27, 4  ;;  %s3206_s5 = sshll.u32 %s4245_s15, 6  ;;  %s4387_s28 = int_to_ptr.vmem [resolvable:$true] %s136_s28 }
  0x31   : > { %p4383_p12 = pnand %p3199_p4, %p124_p11  ;;  %s4401_s9 = scalar_lea.hbm %s6341_s2, %s3206_s5 }
  0x32   : > { %s173_s10 = scalar_lea.vmem [#allocation7], %s4326_s30  ;;  %s4117_s20 = scalar_lea.hbm %s6339_s0, 16384 }
  0x33   : > { %s6872_s26 = scalar_select %p4383_p12, 1, 0 }
  0x34   : > { %p4021_p13 = pneg %p4383_p12  ;;  %s180_s11 = sshll.u32 %s173_s10, 4  ;;  %s4404_s11 = int_to_ptr.vmem [resolvable:$true] %s180_s11 }
  0x35   : > { %p4118_p3 = scmp.ne.s32.totalorder %s6339_s0, %s4117_s20  ;;  %p4124_p11 = scmp.lt.u32.totalorder %s4117_s20, %s6339_s0 }
  0x36   : > { %p4394_p0 = pnand %p4021_p13, %p6343_p10 }
  0x38   : > { %p4119_p1 = pneg %p4394_p0 }
  0x3a   : > { %p4120_p2 = pnand %p4119_p1, %p4118_p3 }
  0x3c   : > { %p4121_p4 = pneg %p4120_p2 }
  0x3e   : > { %p4126_p13 = pnand %p4124_p11, %p4121_p4 }
  0x40   : > { %4129 = shalt.err (!%p4126_p13)
}
  0x41   : > { %s4130_s30 = scalar_lea.vmem %s4387_s28, 16384  ;;  %p4138_p7 = scmp.lt.s32.totalorder %s4387_s28, %s4387_s28 }
  0x42   : > { %p4131_p10 = scmp.ne.s32.totalorder %s4387_s28, %s4130_s30  ;;  %p4139_p5 = scmp.lt.s32.totalorder %s4130_s30, %s4130_s30 }
  0x44   : > { %p4133_p8 = pnand %p4131_p10, %p4119_p1  ;;  %p4140_p12 = por %p4139_p5, %p4138_p7 }
  0x46   : > { %p4134_p9 = pneg %p4133_p8 }
  0x48   : > { %p4141_p6 = pnand %p4140_p12, %p4134_p9 }
  0x4a   : > { %4144 = shalt.err (!%p4141_p6)
}
  0x4b   : > { %s4249_s5 = smov 256   ;;  %s4250_s10 = smov 16  }
  0x4c   : > { %4024 = dma.hbm_to_vmem [thread:$0]  (!%p4394_p0), %s6339_s0, 16384, %s4387_s28, [#allocation3], %s4249_s5, %s4249_s5, %s4250_s10  }
  0x4d   : > { %s4145_s20 = scalar_lea.hbm %s4401_s9, 64  ;;  %p6874_p10 = scmp.ne.s32.totalorder %s6868_s29, 0 }
  0x4e   : > { %p4146_p8 = scmp.ne.s32.totalorder %s4401_s9, %s4145_s20  ;;  %s4150_s7 = scalar_lea.hbm %s6341_s2, 128 }
  0x4f   : > { %p6875_p5 = pneg %p6874_p10  ;;  %p4151_p9 = scmp.lt.u32.totalorder %s4401_s9, %s6341_s2 }
  0x50   : > { %p4152_p12 = scmp.lt.u32.totalorder %s4150_s7, %s4145_s20  ;;  %p4154_p1 = scmp.lt.u32.totalorder %s4145_s20, %s4401_s9 }
  0x51   : > { %p4148_p7 = pnand %p4146_p8, %p6875_p5 }
  0x52   : > { %p4153_p3 = por %p4152_p12, %p4151_p9 }
  0x53   : > { %p4149_p6 = pneg %p4148_p7 }
  0x54   : > { %p4155_p2 = por %p4154_p1, %p4153_p3 }
  0x56   : > { %p4156_p4 = pnand %p4155_p2, %p4149_p6 }
  0x58   : > { %4159 = shalt.err (!%p4156_p4)
}
  0x59   : > { %s4160_s28 = scalar_lea.vmem %s4404_s11, 64  ;;  %p6876_p11 = pmov %p6875_p5 }
  0x5a   : > { %p4161_p0 = scmp.ne.s32.totalorder %s4404_s11, %s4160_s28  ;;  %s4251_s6 = smov [#allocation7]  }
  0x5b   : > { %s4165_s5 = sshll.u32 %s4251_s6, 4  ;;  %s4166_s5 = int_to_ptr.vmem [resolvable:$false] %s4165_s5 }
  0x5c   : > { %p4163_p13 = pnand %p4161_p0, %p6876_p11  ;;  %s4167_s10 = scalar_lea.vmem %s4166_s5, 128 }
  0x5d   : > { %p4168_p5 = scmp.lt.s32.totalorder %s4404_s11, %s4166_s5  ;;  %p4169_p7 = scmp.lt.s32.totalorder %s4167_s10, %s4160_s28 }
  0x5e   : > { %p4164_p8 = pneg %p4163_p13 }
  0x5f   : > { %p4170_p9 = por %p4169_p7, %p4168_p5 }
  0x61   : > { %p4171_p12 = pnand %p4170_p9, %p4164_p8 }
  0x63   : > { %4174 = shalt.err (!%p4171_p12)
}
  0x64   : > { %4031 = dma.hbm_to_vmem [thread:$0]  (!%p6874_p10), %s4401_s9, 64, %s4404_s11, %s4328_s4  }
  0x65   : > { %p6877_p6 = scmp.ne.s32.totalorder %s6872_s26, 0 }
  0x67   : > { %189 = sbr.rel (%p6877_p6) target bundleno = 889 (0x379), region = 32 }
  0x6e   : > { %p6878_p3 = scmp.eq.s32.totalorder %s4357_s21, 0 }
  0x70   : > { %4220 = dma.done.wait (%p6878_p3), [#allocation3], 16384   ;;  %p6879_p1 = pmov %p6878_p3 }
  0x71   : > { %s195_s17 = sand.u32 1, %s4357_s21   ;;  %s4459_s18 = sand.u32 1, %s4237_s13  }
  0x72   : > { %4222 = vsyncadd (%p6879_p1), [#allocation3], 4294950912  ;;  %s3209_s29 = sshll.u32 %s4459_s18, 3  ;;  %s196_s20 = scalar_lea.sflag [#allocation6], %s195_s17 }
  0x73   : > { %s4464_s4 = scalar_lea.vmem [#allocation5], %s3209_s29  ;;  %p6880_p10 = scmp.ne.s32.totalorder %s6869_s23, 0 }
  0x75   : > { %4224 = dma.done.wait (%p6880_p10), %s196_s20, 192  }
  0x76   : > { %4226 = vsyncadd (%p6880_p10), %s196_s20, 4294967104  ;;  %v4252_v0 = vmov 0   ;;  %s3210_s26 = sshll.u32 %s4459_s18, 2  ;;  %v246_v1 = vlaneseq  ;;  %v4253_v2 = vmov 839922192   ;;  %v402_v5 = vld [vmem:[#allocation2 + $0x208] sm:$0xff] }
  0x77   : > { %4077 = vset.pattern.permute.xlu0 %v4252_v0  ;;  %v4471_v3 = vunpack.c.l.s4 %v4253_v2  ;;  %s208_s9 = scalar_lea.vmem [#allocation7], %s3210_s26  ;;  %v404_v6 = vld [vmem:[#allocation2 + $0x218] sm:$0xff]  ;;  %v1749_v7 = vand.u32 4294901760, %v402_v5  ;;  %v401_v9 = vld [vmem:[#allocation2 + $0x200] sm:$0xff]  ;;  %v403_v10 = vld [vmem:[#allocation2 + $0x210] sm:$0xff]  ;;  %vm256_vm0 = vcmask 1043456  }
  0x78   : > { %v237_v4 = vld [vmem:[%s208_s9] sm:$0xf]  ;;  %v1753_v8 = vand.u32 4294901760, %v404_v6  ;;  %v338_v11 = vld [vmem:[#allocation2 + $0x8] sm:$0xff]  ;;  %v4473_v12 = vshrl.u32 %v246_v1, 7  ;;  %v1751_v13 = vand.u32 4294901760, %v401_v9 }
  0x79   : > { %240 = vperm.xlu0 %4077, %v237_v4   ;;  %v1755_v14 = vand.u32 4294901760, %v403_v10  ;;  %v340_v15 = vld [vmem:[#allocation2 + $0x18] sm:$0xff]  ;;  %v465_v16 = vand.u32 4294901760, %v338_v11  ;;  %v337_v17 = vld [vmem:[#allocation2] sm:$0xff]  ;;  %v339_v18 = vld [vmem:[#allocation2 + $0x10] sm:$0xff]  ;;  %v4478_v21 = vsub.f32 %v402_v5, %v1749_v7  ;;  %vm332_vm1 = vcmask 1040384  }
  0x7a   : > { %6881 = vst [vmem:[#allocation12_spill] sm:$0xff] %v4473_v12  ;;  %v4476_v20 = vpack.c.bf16 %v1753_v8, %v1749_v7  ;;  %v4480_v22 = vsub.f32 %v404_v6, %v1753_v8  ;;  %v469_v23 = vand.u32 4294901760, %v340_v15  ;;  %v406_v24 = vld [vmem:[#allocation2 + $0x228] sm:$0xff]  ;;  %v408_v25 = vld [vmem:[#allocation2 + $0x238] sm:$0xff]  ;;  %v405_v26 = vld [vmem:[#allocation2 + $0x220] sm:$0xff]  ;;  %v4484_v28 = vsub.f32 %v401_v9, %v1751_v13  ;;  %s3220_s23 = sshll.u32 %s4357_s21, 7 }
  0x7b   : > { %6883 = vst [vmem:[#allocation14_spill] sm:$0xff] %v4478_v21  ;;  %v4482_v27 = vpack.c.bf16 %v1755_v14, %v1751_v13  ;;  %v4486_v29 = vsub.f32 %v403_v10, %v1755_v14  ;;  %v4488_v30 = vsub.f32 %v338_v11, %v465_v16  ;;  %v407_v31 = vld [vmem:[#allocation2 + $0x230] sm:$0xff]  ;;  %v342_v32 = vld [vmem:[#allocation2 + $0x28] sm:$0xff]  ;;  %v467_v35 = vand.u32 4294901760, %v337_v17  ;;  %v344_v41 = vld [vmem:[#allocation2 + $0x38] sm:$0xff]  ;;  %s235_s11 = scalar_lea.vmem [#allocation8], %s3209_s29  ;;  %s6295_s8 = scalar_lea.hbm %s6342_s3, %s3220_s23 }
  0x7c   : > { %6882 = vst [vmem:[#allocation13_spill] sm:$0xff] %v4476_v20  ;;  %6884 = vst [vmem:[#allocation15_spill] sm:$0xff] %v4480_v22  ;;  %3606 = vmatprep.subr.bf16.mxu0 %v4476_v20  ;;  %v4491_v33 = vpack.c.bf16 %v469_v23, %v465_v16  ;;  %v4493_v34 = vsub.f32 %v340_v15, %v469_v23  ;;  %v471_v36 = vand.u32 4294901760, %v339_v18  ;;  %v1757_v37 = vand.u32 4294901760, %v406_v24  ;;  %v341_v42 = vld [vmem:[#allocation2 + $0x20] sm:$0xff]  ;;  %v343_v47 = vld [vmem:[#allocation2 + $0x30] sm:$0xff] }
  0x7d   : > { %6885 = vst [vmem:[#allocation16_spill] sm:$0xff] %v4482_v27  ;;  %6886 = vst [vmem:[#allocation17_spill] sm:$0xff] %v4484_v28  ;;  %3608 = vmatpush1.bf16.msra.mxu0 %v4482_v27  ;;  %v1761_v38 = vand.u32 4294901760, %v408_v25  ;;  %v1759_v39 = vand.u32 4294901760, %v405_v26  ;;  %v1763_v40 = vand.u32 4294901760, %v407_v31  ;;  %v4499_v44 = vsub.f32 %v337_v17, %v467_v35  ;;  %v410_v48 = vld [vmem:[#allocation2 + $0x248] sm:$0xff] }
  0x7e   : > { %6887 = vst [vmem:[#allocation18_spill] sm:$0xff] %v4486_v29  ;;  %6888 = vst [vmem:[#allocation19_spill] sm:$0xff] %v4488_v30  ;;  %3222 = vmatprep.subr.bf16.mxu1 %v4491_v33  ;;  %v4497_v43 = vpack.c.bf16 %v471_v36, %v467_v35  ;;  %v4501_v45 = vsub.f32 %v339_v18, %v471_v36  ;;  %v473_v46 = vand.u32 4294901760, %v342_v32  ;;  %v412_v49 = vld [vmem:[#allocation2 + $0x258] sm:$0xff]  ;;  %v409_v54 = vld [vmem:[#allocation2 + $0x240] sm:$0xff]  ;;  %v477_v58 = vand.u32 4294901760, %v344_v41 }
  0x7f   : > { %6889 = vst [vmem:[#allocation20_spill] sm:$0xff] %v4491_v33  ;;  %6890 = vst [vmem:[#allocation21_spill] sm:$0xff] %v4493_v34  ;;  %v4503_v50 = vpack.c.bf16 %v1761_v38, %v1757_v37  ;;  %v4505_v51 = vsub.f32 %v406_v24, %v1757_v37  ;;  %v4507_v52 = vsub.f32 %v408_v25, %v1761_v38  ;;  %v411_v55 = vld [vmem:[#allocation2 + $0x250] sm:$0xff]  ;;  %v475_v60 = vand.u32 4294901760, %v341_v42  ;;  %v346_v0 = vld [vmem:[#allocation2 + $0x48] sm:$0xff]  ;;  %s3096_s22 = sshll.u32 %s235_s11, 4  ;;  %s6297_s22 = int_to_ptr.vmem [resolvable:$true] %s3096_s22 }
  0x80   : > { %6891 = vst [vmem:[#allocation22_spill] sm:$0xff] %v4497_v43  ;;  %6892 = vst [vmem:[#allocation23_spill] sm:$0xff] %v4499_v44  ;;  %v4509_v53 = vpack.c.bf16 %v1763_v40, %v1759_v39  ;;  %3224 = vmatpush1.bf16.msra.mxu1 %v4497_v43  ;;  %v4512_v56 = vsub.f32 %v405_v26, %v1759_v39  ;;  %v4514_v57 = vsub.f32 %v407_v31, %v1763_v40  ;;  %v348_v6 = vld [vmem:[#allocation2 + $0x58] sm:$0xff]  ;;  %v345_v7 = vld [vmem:[#allocation2 + $0x40] sm:$0xff]  ;;  %s3082_s30 = scalar_lea.sflag [#allocation4], %s4459_s18  ;;  %s4175_s28 = scalar_lea.vmem %s6297_s22, 128 }
  0x81   : > { %6893 = vst [vmem:[#allocation24_spill] sm:$0xff] %v4501_v45  ;;  %6894 = vst [vmem:[#allocation25_spill] sm:$0xff] %v4503_v50  ;;  %v4516_v59 = vsub.f32 %v342_v32, %v473_v46  ;;  %3610 = vmatprep.subr.bf16.mxu0 %v4503_v50  ;;  %v479_v61 = vand.u32 4294901760, %v343_v47  ;;  %v1765_v62 = vand.u32 4294901760, %v410_v48  ;;  %v1769_v63 = vand.u32 4294901760, %v412_v49  ;;  %v347_v8 = vld [vmem:[#allocation2 + $0x50] sm:$0xff]  ;;  %p4176_p2 = scmp.ne.s32.totalorder %s6297_s22, %s4175_s28 }
  0x82   : > { %6895 = vst [vmem:[#allocation26_spill] sm:$0xff] %v4505_v51  ;;  %6896 = vst [vmem:[#allocation27_spill] sm:$0xff] %v4507_v52  ;;  %3612 = vmatpush1.bf16.msra.mxu0 %v4509_v53  ;;  %v4520_v1 = vpack.c.bf16 %v477_v58, %v473_v46  ;;  %v4522_v2 = vsub.f32 %v344_v41, %v477_v58  ;;  %v1767_v4 = vand.u32 4294901760, %v409_v54  ;;  %v1771_v5 = vand.u32 4294901760, %v411_v55  ;;  %v414_v14 = vld [vmem:[#allocation2 + $0x268] sm:$0xff]  ;;  %v416_v15 = vld [vmem:[#allocation2 + $0x278] sm:$0xff] }
  0x83   : > { %6897 = vst [vmem:[#allocation28_spill] sm:$0xff] %v4509_v53  ;;  %6898 = vst [vmem:[#allocation29_spill] sm:$0xff] %v4512_v56  ;;  %v4524_v9 = vpack.c.bf16 %v479_v61, %v475_v60  ;;  %v4526_v10 = vsub.f32 %v341_v42, %v475_v60  ;;  %v4528_v11 = vsub.f32 %v343_v47, %v479_v61  ;;  %v413_v16 = vld [vmem:[#allocation2 + $0x260] sm:$0xff]  ;;  %v481_v26 = vand.u32 4294901760, %v346_v0  ;;  %v415_v35 = vld [vmem:[#allocation2 + $0x270] sm:$0xff]  ;;  %p7685_p4 = scmp.ne.s32.totalorder %s6870_s24, 0 }
  0x84   : > { %6899 = vst [vmem:[#allocation30_spill] sm:$0xff] %v4514_v57  ;;  %6900 = vst [vmem:[#allocation31_spill] sm:$0xff] %v4516_v59  ;;  %v4530_v13 = vpack.c.bf16 %v1769_v63, %v1765_v62  ;;  %3226 = vmatprep.subr.bf16.mxu1 %v4520_v1  ;;  %v4533_v17 = vsub.f32 %v410_v48, %v1765_v62  ;;  %v4535_v18 = vsub.f32 %v412_v49, %v1769_v63  ;;  %v350_v40 = vld [vmem:[#allocation2 + $0x68] sm:$0xff]  ;;  %v352_v41 = vld [vmem:[#allocation2 + $0x78] sm:$0xff]  ;;  %s4254_s21 = smov [#allocation8]  }
  0x85   : > { %6901 = vst [vmem:[#allocation32_spill] sm:$0xff] %v4520_v1  ;;  %6902 = vst [vmem:[#allocation33_spill] sm:$0xff] %v4522_v2  ;;  %v4537_v23 = vpack.c.bf16 %v1771_v5, %v1767_v4  ;;  %v4539_v24 = vsub.f32 %v409_v54, %v1767_v4  ;;  %3228 = vmatpush1.bf16.msra.mxu1 %v4524_v9  ;;  %v4543_v25 = vsub.f32 %v411_v55, %v1771_v5  ;;  %v349_v49 = vld [vmem:[#allocation2 + $0x60] sm:$0xff]  ;;  %v351_v54 = vld [vmem:[#allocation2 + $0x70] sm:$0xff]  ;;  %p4177_p0 = pnand %p4176_p2, %p7685_p4  ;;  %s4179_s6 = sshll.u32 %s4254_s21, 4  ;;  %s4180_s6 = int_to_ptr.vmem [resolvable:$false] %s4179_s6 }
  0x86   : > { %6903 = vst [vmem:[#allocation34_spill] sm:$0xff] %v4524_v9  ;;  %6904 = vst [vmem:[#allocation35_spill] sm:$0xff] %v4526_v10  ;;  %3614 = vmatprep.subr.bf16.mxu0 %v4530_v13  ;;  %v485_v31 = vand.u32 4294901760, %v348_v6  ;;  %v483_v32 = vand.u32 4294901760, %v345_v7  ;;  %v487_v36 = vand.u32 4294901760, %v347_v8  ;;  %v1773_v37 = vand.u32 4294901760, %v414_v14  ;;  %p4182_p13 = scmp.lt.s32.totalorder %s6297_s22, %s4180_s6 }
  0x87   : > { %6905 = vst [vmem:[#allocation36_spill] sm:$0xff] %v4528_v11  ;;  %6906 = vst [vmem:[#allocation37_spill] sm:$0xff] %v4530_v13  ;;  %3616 = vmatpush1.bf16.msra.mxu0 %v4537_v23  ;;  %v1777_v38 = vand.u32 4294901760, %v416_v15  ;;  %v1775_v39 = vand.u32 4294901760, %v413_v16  ;;  %v4548_v46 = vsub.f32 %v346_v0, %v481_v26  ;;  %v418_v55 = vld [vmem:[#allocation2 + $0x288] sm:$0xff]  ;;  %v420_v63 = vld [vmem:[#allocation2 + $0x298] sm:$0xff]  ;;  %p4178_p11 = pneg %p4177_p0 }
  0x88   : > { %6907 = vst [vmem:[#allocation38_spill] sm:$0xff] %v4533_v17  ;;  %6908 = vst [vmem:[#allocation39_spill] sm:$0xff] %v4535_v18  ;;  %v4546_v42 = vpack.c.bf16 %v485_v31, %v481_v26  ;;  %v4550_v47 = vsub.f32 %v348_v6, %v485_v31  ;;  %v4552_v48 = vsub.f32 %v345_v7, %v483_v32  ;;  %v1779_v4 = vand.u32 4294901760, %v415_v35  ;;  %v356_v19 = vld [vmem:[#allocation2 + $0x98] sm:$0xff]  ;;  %v355_v13 = vld [vmem:[#allocation2 + $0x90] sm:$0xff]  ;;  %s4181_s5 = scalar_lea.vmem %s4180_s6, 256 }
  0x89   : > { %6909 = vst [vmem:[#allocation40_spill] sm:$0xff] %v4537_v23  ;;  %6910 = vst [vmem:[#allocation41_spill] sm:$0xff] %v4539_v24  ;;  %v4554_v58 = vpack.c.bf16 %v487_v36, %v483_v32  ;;  %v4556_v60 = vsub.f32 %v347_v8, %v487_v36  ;;  %v4558_v61 = vpack.c.bf16 %v1777_v38, %v1773_v37  ;;  %v489_v6 = vand.u32 4294901760, %v350_v40  ;;  %v417_v32 = vld [vmem:[#allocation2 + $0x280] sm:$0xff]  ;;  %v422_v53 = vld [vmem:[#allocation2 + $0x2a8] sm:$0xff]  ;;  %p4183_p8 = scmp.lt.s32.totalorder %s4181_s5, %s4175_s28 }
  0x8a   : > { %6911 = vst [vmem:[#allocation42_spill] sm:$0xff] %v4543_v25  ;;  %6912 = vst [vmem:[#allocation43_spill] sm:$0xff] %v4546_v42  ;;  %v4560_v62 = vsub.f32 %v414_v14, %v1773_v37  ;;  %3230 = vmatprep.subr.bf16.mxu1 %v4546_v42  ;;  %v4563_v0 = vsub.f32 %v416_v15, %v1777_v38  ;;  %v4565_v5 = vsub.f32 %v413_v16, %v1775_v39  ;;  %v419_v14 = vld [vmem:[#allocation2 + $0x290] sm:$0xff]  ;;  %v354_v16 = vld [vmem:[#allocation2 + $0x88] sm:$0xff] }
  0x8b   : > { %6913 = vst [vmem:[#allocation44_spill] sm:$0xff] %v4548_v46  ;;  %6914 = vst [vmem:[#allocation45_spill] sm:$0xff] %v4550_v47  ;;  %3232 = vmatpush1.bf16.msra.mxu1 %v4554_v58  ;;  %3618 = vmatprep.subr.bf16.mxu0 %v4558_v61  ;;  %v493_v7 = vand.u32 4294901760, %v352_v41  ;;  %v491_v8 = vand.u32 4294901760, %v349_v49  ;;  %v495_v26 = vand.u32 4294901760, %v351_v54  ;;  %v1781_v31 = vand.u32 4294901760, %v418_v55  ;;  %p4184_p5 = por %p4183_p8, %p4182_p13 }
  0x8c   : > { %6915 = vst [vmem:[#allocation46_spill] sm:$0xff] %v4552_v48  ;;  %6916 = vst [vmem:[#allocation47_spill] sm:$0xff] %v4554_v58  ;;  %v4569_v36 = vpack.c.bf16 %v1779_v4, %v1775_v39  ;;  %v4571_v37 = vsub.f32 %v415_v35, %v1779_v4  ;;  %v4573_v15 = vsub.f32 %v350_v40, %v489_v6  ;;  %v1785_v38 = vand.u32 4294901760, %v420_v63  ;;  %v353_v23 = vld [vmem:[#allocation2 + $0x80] sm:$0xff]  ;;  %v424_v39 = vld [vmem:[#allocation2 + $0x2b8] sm:$0xff] }
  0x8d   : > { %6917 = vst [vmem:[#allocation48_spill] sm:$0xff] %v4556_v60  ;;  %6918 = vst [vmem:[#allocation49_spill] sm:$0xff] %v4558_v61  ;;  %v4575_v42 = vpack.c.bf16 %v493_v7, %v489_v6  ;;  %v4577_v58 = vsub.f32 %v352_v41, %v493_v7  ;;  %v4579_v61 = vpack.c.bf16 %v495_v26, %v491_v8  ;;  %v1783_v41 = vand.u32 4294901760, %v417_v32  ;;  %v421_v43 = vld [vmem:[#allocation2 + $0x2a0] sm:$0xff]  ;;  %v360_v27 = vld [vmem:[#allocation2 + $0xb8] sm:$0xff]  ;;  %p4185_p7 = pnand %p4184_p5, %p4178_p11 }
  0x8e   : > { %6919 = vst [vmem:[#allocation50_spill] sm:$0xff] %v4560_v62  ;;  %6920 = vst [vmem:[#allocation51_spill] sm:$0xff] %v4563_v0  ;;  %v4581_v9 = vsub.f32 %v349_v49, %v491_v8  ;;  %3620 = vmatpush1.bf16.msra.mxu0 %v4569_v36  ;;  %v4584_v35 = vsub.f32 %v351_v54, %v495_v26  ;;  %v4586_v40 = vpack.c.bf16 %v1785_v38, %v1781_v31 }
  0x8f   : > { %6921 = vst [vmem:[#allocation52_spill] sm:$0xff] %v4565_v5  ;;  %6922 = vst [vmem:[#allocation53_spill] sm:$0xff] %v4569_v36  ;;  %v4588_v4 = vsub.f32 %v418_v55, %v1781_v31  ;;  %v4590_v1 = vsub.f32 %v420_v63, %v1785_v38  ;;  %3234 = vmatprep.subr.bf16.mxu1 %v4575_v42  ;;  %v1787_v6 = vand.u32 4294901760, %v419_v14  ;;  %v497_v7 = vand.u32 4294901760, %v354_v16  ;;  %v423_v38 = vld [vmem:[#allocation2 + $0x2b0] sm:$0xff] }
  0x90   : > { %6923 = vst [vmem:[#allocation54_spill] sm:$0xff] %v4571_v37  ;;  %6924 = vst [vmem:[#allocation55_spill] sm:$0xff] %v4573_v15  ;;  %v501_v49 = vand.u32 4294901760, %v356_v19  ;;  %3236 = vmatpush1.bf16.msra.mxu1 %v4579_v61  ;;  %3622 = vmatprep.subr.bf16.mxu0 %v4586_v40  ;;  %v499_v8 = vand.u32 4294901760, %v353_v23  ;;  %v503_v36 = vand.u32 4294901760, %v355_v13  ;;  %v1789_v54 = vand.u32 4294901760, %v422_v53 }
  0x91   : > { %6925 = vst [vmem:[#allocation56_spill] sm:$0xff] %v4575_v42  ;;  %6926 = vst [vmem:[#allocation57_spill] sm:$0xff] %v4577_v58  ;;  %v1793_v26 = vand.u32 4294901760, %v424_v39  ;;  %v4595_v50 = vpack.c.bf16 %v1787_v6, %v1783_v41  ;;  %v4597_v55 = vsub.f32 %v417_v32, %v1783_v41  ;;  %v4599_v63 = vsub.f32 %v419_v14, %v1787_v6  ;;  %v358_v42 = vld [vmem:[#allocation2 + $0xa8] sm:$0xff] }
  0x92   : > { %6927 = vst [vmem:[#allocation58_spill] sm:$0xff] %v4579_v61  ;;  %6928 = vst [vmem:[#allocation59_spill] sm:$0xff] %v4581_v9  ;;  %v4601_v31 = vpack.c.bf16 %v501_v49, %v497_v7  ;;  %v4603_v33 = vsub.f32 %v354_v16, %v497_v7  ;;  %v4605_v61 = vsub.f32 %v356_v19, %v501_v49  ;;  %v1791_v16 = vand.u32 4294901760, %v421_v43  ;;  %v428_v49 = vld [vmem:[#allocation2 + $0x2d8] sm:$0xff] }
  0x93   : > { %6929 = vst [vmem:[#allocation60_spill] sm:$0xff] %v4584_v35  ;;  %6930 = vst [vmem:[#allocation61_spill] sm:$0xff] %v4586_v40  ;;  %v4607_v40 = vpack.c.bf16 %v503_v36, %v499_v8  ;;  %v4609_v20 = vsub.f32 %v353_v23, %v499_v8  ;;  %v426_v35 = vld [vmem:[#allocation2 + $0x2c8] sm:$0xff]  ;;  %3624 = vmatpush1.bf16.msra.mxu0 %v4595_v50  ;;  %v4613_v32 = vsub.f32 %v355_v13, %v503_v36 }
  0x94   : > { %6931 = vst [vmem:[#allocation62_spill] sm:$0xff] %v4588_v4  ;;  %6932 = vst [vmem:[#allocation63_spill] sm:$0xff] %v4590_v1  ;;  %v357_v1 = vld [vmem:[#allocation2 + $0xa0] sm:$0xff]  ;;  %v359_v4 = vld [vmem:[#allocation2 + $0xb0] sm:$0xff]  ;;  %3238 = vmatprep.subr.bf16.mxu1 %v4601_v31  ;;  %v4615_v14 = vpack.c.bf16 %v1793_v26, %v1789_v54  ;;  %v4617_v41 = vsub.f32 %v422_v53, %v1789_v54  ;;  %v4620_v19 = vsub.f32 %v424_v39, %v1793_v26 }
  0x95   : > { %6933 = vst [vmem:[#allocation64_spill] sm:$0xff] %v4595_v50  ;;  %6934 = vst [vmem:[#allocation65_spill] sm:$0xff] %v4597_v55  ;;  %3240 = vmatpush1.bf16.msra.mxu1 %v4607_v40  ;;  %v1795_v23 = vand.u32 4294901760, %v423_v38  ;;  %v505_v6 = vand.u32 4294901760, %v358_v42  ;;  %v509_v7 = vand.u32 4294901760, %v360_v27  ;;  %v4623_v8 = vsub.f32 %v421_v43, %v1791_v16  ;;  %v362_v53 = vld [vmem:[#allocation2 + $0xc8] sm:$0xff] }
  0x96   : > { %6935 = vst [vmem:[#allocation66_spill] sm:$0xff] %v4599_v63  ;;  %6936 = vst [vmem:[#allocation67_spill] sm:$0xff] %v4601_v31  ;;  %3626 = vmatprep.subr.bf16.mxu0 %v4615_v14  ;;  %v507_v50 = vand.u32 4294901760, %v357_v1  ;;  %v511_v13 = vand.u32 4294901760, %v359_v4  ;;  %v1797_v36 = vand.u32 4294901760, %v426_v35  ;;  %v425_v31 = vld [vmem:[#allocation2 + $0x2c0] sm:$0xff] }
  0x97   : > { %6937 = vst [vmem:[#allocation68_spill] sm:$0xff] %v4603_v33  ;;  %6938 = vst [vmem:[#allocation69_spill] sm:$0xff] %v4605_v61  ;;  %v4625_v54 = vpack.c.bf16 %v1795_v23, %v1791_v16  ;;  %v4629_v39 = vpack.c.bf16 %v509_v7, %v505_v6  ;;  %v4631_v26 = vsub.f32 %v358_v42, %v505_v6  ;;  %v1799_v42 = vand.u32 4294901760, %v425_v31  ;;  %v368_v33 = vld [vmem:[#allocation2 + $0xf8] sm:$0xff]  ;;  %v367_v63 = vld [vmem:[#allocation2 + $0xf0] sm:$0xff] }
  0x98   : > { %6939 = vst [vmem:[#allocation70_spill] sm:$0xff] %v4607_v40  ;;  %6940 = vst [vmem:[#allocation71_spill] sm:$0xff] %v4609_v20  ;;  %v364_v40 = vld [vmem:[#allocation2 + $0xd8] sm:$0xff]  ;;  %v363_v20 = vld [vmem:[#allocation2 + $0xd0] sm:$0xff]  ;;  %v4635_v43 = vpack.c.bf16 %v511_v13, %v507_v50  ;;  %v4639_v61 = vsub.f32 %v359_v4, %v511_v13  ;;  %v4643_v16 = vsub.f32 %v426_v35, %v1797_v36  ;;  %v513_v6 = vand.u32 4294901760, %v362_v53 }
  0x99   : > { %6941 = vst [vmem:[#allocation72_spill] sm:$0xff] %v4613_v32  ;;  %6942 = vst [vmem:[#allocation73_spill] sm:$0xff] %v4615_v14  ;;  %v427_v32 = vld [vmem:[#allocation2 + $0x2d0] sm:$0xff]  ;;  %v4633_v14 = vsub.f32 %v360_v27, %v509_v7  ;;  %3628 = vmatpush1.bf16.msra.mxu0 %v4625_v54  ;;  %3242 = vmatprep.subr.bf16.mxu1 %v4629_v39  ;;  %v517_v27 = vand.u32 4294901760, %v364_v40  ;;  %v429_v35 = vld [vmem:[#allocation2 + $0x2e0] sm:$0xff] }
  0x9a   : > { %6943 = vst [vmem:[#allocation74_spill] sm:$0xff] %v4617_v41  ;;  %6944 = vst [vmem:[#allocation75_spill] sm:$0xff] %v4620_v19  ;;  %v4627_v41 = vsub.f32 %v423_v38, %v1795_v23  ;;  %v361_v19 = vld [vmem:[#allocation2 + $0xc0] sm:$0xff]  ;;  %v1801_v38 = vand.u32 4294901760, %v428_v49  ;;  %v1803_v23 = vand.u32 4294901760, %v427_v32  ;;  %3244 = vmatpush1.bf16.msra.mxu1 %v4635_v43 }
  0x9b   : > { %6945 = vst [vmem:[#allocation76_spill] sm:$0xff] %v4623_v8  ;;  %6946 = vst [vmem:[#allocation77_spill] sm:$0xff] %v4625_v54  ;;  %v4637_v8 = vsub.f32 %v357_v1, %v507_v50  ;;  %v515_v7 = vand.u32 4294901760, %v361_v19  ;;  %v432_v50 = vld [vmem:[#allocation2 + $0x2f8] sm:$0xff]  ;;  %v4652_v54 = vsub.f32 %v425_v31, %v1799_v42 }
  0x9c   : > { %6947 = vst [vmem:[#allocation78_spill] sm:$0xff] %v4627_v41  ;;  %6948 = vst [vmem:[#allocation79_spill] sm:$0xff] %v4629_v39  ;;  %v4646_v1 = vpack.c.bf16 %v1801_v38, %v1797_v36  ;;  %v4648_v4 = vsub.f32 %v428_v49, %v1801_v38  ;;  %v4650_v13 = vpack.c.bf16 %v1803_v23, %v1799_v42  ;;  %v431_v39 = vld [vmem:[#allocation2 + $0x2f0] sm:$0xff]  ;;  %v365_v36 = vld [vmem:[#allocation2 + $0xe0] sm:$0xff] }
  0x9d   : > { %6949 = vst [vmem:[#allocation80_spill] sm:$0xff] %v4631_v26  ;;  %6950 = vst [vmem:[#allocation81_spill] sm:$0xff] %v4633_v14  ;;  %v519_v14 = vand.u32 4294901760, %v363_v20  ;;  %v430_v26 = vld [vmem:[#allocation2 + $0x2e8] sm:$0xff]  ;;  %v4660_v41 = vsub.f32 %v364_v40, %v517_v27  ;;  %v4665_v31 = vsub.f32 %v361_v19, %v515_v7  ;;  %v1811_v40 = vand.u32 4294901760, %v431_v39 }
  0x9e   : > { %6951 = vst [vmem:[#allocation82_spill] sm:$0xff] %v4635_v43  ;;  %6952 = vst [vmem:[#allocation83_spill] sm:$0xff] %v4637_v8  ;;  %v4656_v43 = vpack.c.bf16 %v517_v27, %v513_v6  ;;  %v4658_v8 = vsub.f32 %v362_v53, %v513_v6  ;;  %3630 = vmatprep.subr.bf16.mxu0 %v4646_v1  ;;  %v1805_v42 = vand.u32 4294901760, %v430_v26  ;;  %v1807_v53 = vand.u32 4294901760, %v429_v35  ;;  %v434_v19 = vld [vmem:[#allocation2 + $0x308] sm:$0xff] }
  0x9f   : > { %6953 = vst [vmem:[#allocation84_spill] sm:$0xff] %v4639_v61  ;;  %6954 = vst [vmem:[#allocation85_spill] sm:$0xff] %v4643_v16  ;;  %v366_v16 = vld [vmem:[#allocation2 + $0xe8] sm:$0xff]  ;;  %v4654_v61 = vsub.f32 %v427_v32, %v1803_v23  ;;  %v4663_v49 = vpack.c.bf16 %v519_v14, %v515_v7  ;;  %v4667_v38 = vsub.f32 %v363_v20, %v519_v14  ;;  %3632 = vmatpush1.bf16.msra.mxu0 %v4650_v13  ;;  %v436_v7 = vld [vmem:[#allocation2 + $0x318] sm:$0xff] }
  0xa0   : > { %6955 = vst [vmem:[#allocation86_spill] sm:$0xff] %v4646_v1  ;;  %6956 = vst [vmem:[#allocation87_spill] sm:$0xff] %v4648_v4  ;;  %3246 = vmatprep.subr.bf16.mxu1 %v4656_v43  ;;  %v1809_v32 = vand.u32 4294901760, %v432_v50  ;;  %v521_v23 = vand.u32 4294901760, %v366_v16  ;;  %v4672_v6 = vsub.f32 %v430_v26, %v1805_v42  ;;  %v525_v27 = vand.u32 4294901760, %v368_v33  ;;  %v371_v4 = vld [vmem:[#allocation2 + $0x110] sm:$0xff] }
  0xa1   : > { %6957 = vst [vmem:[#allocation88_spill] sm:$0xff] %v4650_v13  ;;  %6958 = vst [vmem:[#allocation89_spill] sm:$0xff] %v4652_v54  ;;  %3248 = vmatpush1.bf16.msra.mxu1 %v4663_v49  ;;  %v523_v1 = vand.u32 4294901760, %v365_v36  ;;  %v4678_v13 = vpack.c.bf16 %v1811_v40, %v1807_v53  ;;  %v372_v54 = vld [vmem:[#allocation2 + $0x118] sm:$0xff] }
  0xa2   : > { %6959 = vst [vmem:[#allocation90_spill] sm:$0xff] %v4654_v61  ;;  %6960 = vst [vmem:[#allocation91_spill] sm:$0xff] %v4656_v43  ;;  %v4674_v20 = vpack.c.bf16 %v1809_v32, %v1805_v42  ;;  %v4676_v14 = vsub.f32 %v432_v50, %v1809_v32  ;;  %v4680_v43 = vsub.f32 %v429_v35, %v1807_v53  ;;  %v369_v42 = vld [vmem:[#allocation2 + $0x100] sm:$0xff]  ;;  %v1813_v53 = vand.u32 4294901760, %v434_v19 }
  0xa3   : > { %6961 = vst [vmem:[#allocation92_spill] sm:$0xff] %v4658_v8  ;;  %6962 = vst [vmem:[#allocation93_spill] sm:$0xff] %v4660_v41  ;;  %v527_v41 = vand.u32 4294901760, %v367_v63  ;;  %v370_v8 = vld [vmem:[#allocation2 + $0x108] sm:$0xff]  ;;  %v4682_v61 = vsub.f32 %v431_v39, %v1811_v40  ;;  %v4684_v26 = vpack.c.bf16 %v525_v27, %v521_v23  ;;  %v4693_v35 = vsub.f32 %v365_v36, %v523_v1  ;;  %v440_v36 = vld [vmem:[#allocation2 + $0x338] sm:$0xff] }
  0xa4   : > { %6963 = vst [vmem:[#allocation94_spill] sm:$0xff] %v4663_v49  ;;  %6964 = vst [vmem:[#allocation95_spill] sm:$0xff] %v4665_v31  ;;  %v435_v31 = vld [vmem:[#allocation2 + $0x310] sm:$0xff]  ;;  %v4686_v49 = vsub.f32 %v366_v16, %v521_v23  ;;  %3634 = vmatprep.subr.bf16.mxu0 %v4674_v20  ;;  %v1817_v39 = vand.u32 4294901760, %v436_v7  ;;  %v529_v40 = vand.u32 4294901760, %v370_v8  ;;  %v4700_v23 = vsub.f32 %v434_v19, %v1813_v53 }
  0xa5   : > { %6965 = vst [vmem:[#allocation96_spill] sm:$0xff] %v4667_v38  ;;  %6966 = vst [vmem:[#allocation97_spill] sm:$0xff] %v4672_v6  ;;  %v433_v38 = vld [vmem:[#allocation2 + $0x300] sm:$0xff]  ;;  %v4688_v6 = vsub.f32 %v368_v33, %v525_v27  ;;  %v4691_v50 = vpack.c.bf16 %v527_v41, %v523_v1  ;;  %v4695_v32 = vsub.f32 %v367_v63, %v527_v41  ;;  %3636 = vmatpush1.bf16.msra.mxu0 %v4678_v13  ;;  %v438_v1 = vld [vmem:[#allocation2 + $0x328] sm:$0xff] }
  0xa6   : > { %6967 = vst [vmem:[#allocation98_spill] sm:$0xff] %v4674_v20  ;;  %6968 = vst [vmem:[#allocation99_spill] sm:$0xff] %v4676_v14  ;;  %3250 = vmatprep.subr.bf16.mxu1 %v4684_v26  ;;  %v1815_v16 = vand.u32 4294901760, %v433_v38  ;;  %v1819_v33 = vand.u32 4294901760, %v435_v31  ;;  %v533_v27 = vand.u32 4294901760, %v372_v54  ;;  %v531_v20 = vand.u32 4294901760, %v369_v42 }
  0xa7   : > { %6969 = vst [vmem:[#allocation100_spill] sm:$0xff] %v4678_v13  ;;  %6970 = vst [vmem:[#allocation101_spill] sm:$0xff] %v4680_v43  ;;  %3252 = vmatpush1.bf16.msra.mxu1 %v4691_v50  ;;  %v4702_v63 = vpack.c.bf16 %v1817_v39, %v1813_v53  ;;  %v4704_v41 = vsub.f32 %v436_v7, %v1817_v39  ;;  %v376_v43 = vld [vmem:[#allocation2 + $0x138] sm:$0xff]  ;;  %v373_v53 = vld [vmem:[#allocation2 + $0x120] sm:$0xff] }
  0xa8   : > { %6971 = vst [vmem:[#allocation102_spill] sm:$0xff] %v4682_v61  ;;  %6972 = vst [vmem:[#allocation103_spill] sm:$0xff] %v4684_v26  ;;  %v4706_v13 = vpack.c.bf16 %v1819_v33, %v1815_v16  ;;  %v4708_v26 = vsub.f32 %v433_v38, %v1815_v16  ;;  %v4710_v61 = vsub.f32 %v435_v31, %v1819_v33  ;;  %v375_v14 = vld [vmem:[#allocation2 + $0x130] sm:$0xff]  ;;  %v1821_v16 = vand.u32 4294901760, %v438_v1 }
  0xa9   : > { %6973 = vst [vmem:[#allocation104_spill] sm:$0xff] %v4686_v49  ;;  %6974 = vst [vmem:[#allocation105_spill] sm:$0xff] %v4688_v6  ;;  %v535_v6 = vand.u32 4294901760, %v371_v4  ;;  %v374_v49 = vld [vmem:[#allocation2 + $0x128] sm:$0xff]  ;;  %v4712_v19 = vpack.c.bf16 %v533_v27, %v529_v40  ;;  %3638 = vmatprep.subr.bf16.mxu0 %v4702_v63  ;;  %v4721_v38 = vsub.f32 %v369_v42, %v531_v20  ;;  %v444_v42 = vld [vmem:[#allocation2 + $0x358] sm:$0xff] }
  0xaa   : > { %6975 = vst [vmem:[#allocation106_spill] sm:$0xff] %v4691_v50  ;;  %6976 = vst [vmem:[#allocation107_spill] sm:$0xff] %v4693_v35  ;;  %v439_v35 = vld [vmem:[#allocation2 + $0x330] sm:$0xff]  ;;  %v4714_v50 = vsub.f32 %v370_v8, %v529_v40  ;;  %3640 = vmatpush1.bf16.msra.mxu0 %v4706_v13  ;;  %v1825_v8 = vand.u32 4294901760, %v440_v36  ;;  %v537_v33 = vand.u32 4294901760, %v374_v49  ;;  %v4728_v40 = vsub.f32 %v438_v1, %v1821_v16 }
  0xab   : > { %6977 = vst [vmem:[#allocation108_spill] sm:$0xff] %v4695_v32  ;;  %6978 = vst [vmem:[#allocation109_spill] sm:$0xff] %v4700_v23  ;;  %v437_v32 = vld [vmem:[#allocation2 + $0x320] sm:$0xff]  ;;  %v4716_v23 = vsub.f32 %v372_v54, %v533_v27  ;;  %v4719_v7 = vpack.c.bf16 %v535_v6, %v531_v20  ;;  %v4723_v39 = vsub.f32 %v371_v4, %v535_v6  ;;  %3254 = vmatprep.subr.bf16.mxu1 %v4712_v19  ;;  %v442_v20 = vld [vmem:[#allocation2 + $0x348] sm:$0xff] }
  0xac   : > { %6979 = vst [vmem:[#allocation110_spill] sm:$0xff] %v4702_v63  ;;  %6980 = vst [vmem:[#allocation111_spill] sm:$0xff] %v4704_v41  ;;  %v1823_v31 = vand.u32 4294901760, %v437_v32  ;;  %v1827_v54 = vand.u32 4294901760, %v439_v35  ;;  %v541_v27 = vand.u32 4294901760, %v376_v43  ;;  %v539_v63 = vand.u32 4294901760, %v373_v53 }
  0xad   : > { %6981 = vst [vmem:[#allocation112_spill] sm:$0xff] %v4706_v13  ;;  %6982 = vst [vmem:[#allocation113_spill] sm:$0xff] %v4708_v26  ;;  %3256 = vmatpush1.bf16.msra.mxu1 %v4719_v7  ;;  %v4730_v4 = vpack.c.bf16 %v1825_v8, %v1821_v16  ;;  %v4732_v6 = vsub.f32 %v440_v36, %v1825_v8  ;;  %v380_v26 = vld [vmem:[#allocation2 + $0x158] sm:$0xff]  ;;  %v377_v16 = vld [vmem:[#allocation2 + $0x140] sm:$0xff] }
  0xae   : > { %6983 = vst [vmem:[#allocation114_spill] sm:$0xff] %v4710_v61  ;;  %6984 = vst [vmem:[#allocation115_spill] sm:$0xff] %v4712_v19  ;;  %v4734_v13 = vpack.c.bf16 %v1827_v54, %v1823_v31  ;;  %v4736_v19 = vsub.f32 %v437_v32, %v1823_v31  ;;  %v4738_v61 = vsub.f32 %v439_v35, %v1827_v54  ;;  %v379_v41 = vld [vmem:[#allocation2 + $0x150] sm:$0xff]  ;;  %v1829_v31 = vand.u32 4294901760, %v442_v20 }
  0xaf   : > { %6985 = vst [vmem:[#allocation116_spill] sm:$0xff] %v4714_v50  ;;  %6986 = vst [vmem:[#allocation117_spill] sm:$0xff] %v4716_v23  ;;  %v543_v23 = vand.u32 4294901760, %v375_v14  ;;  %v378_v50 = vld [vmem:[#allocation2 + $0x148] sm:$0xff]  ;;  %v4740_v1 = vpack.c.bf16 %v541_v27, %v537_v33  ;;  %3642 = vmatprep.subr.bf16.mxu0 %v4730_v4  ;;  %v4749_v32 = vsub.f32 %v373_v53, %v539_v63  ;;  %v448_v53 = vld [vmem:[#allocation2 + $0x378] sm:$0xff] }
  0xb0   : > { %6987 = vst [vmem:[#allocation118_spill] sm:$0xff] %v4719_v7  ;;  %6988 = vst [vmem:[#allocation119_spill] sm:$0xff] %v4721_v38  ;;  %v443_v38 = vld [vmem:[#allocation2 + $0x350] sm:$0xff]  ;;  %v4742_v7 = vsub.f32 %v374_v49, %v537_v33  ;;  %3644 = vmatpush1.bf16.msra.mxu0 %v4734_v13  ;;  %v1833_v49 = vand.u32 4294901760, %v444_v42  ;;  %v545_v54 = vand.u32 4294901760, %v378_v50  ;;  %v4756_v33 = vsub.f32 %v442_v20, %v1829_v31 }
  0xb1   : > { %6989 = vst [vmem:[#allocation120_spill] sm:$0xff] %v4723_v39  ;;  %6990 = vst [vmem:[#allocation121_spill] sm:$0xff] %v4728_v40  ;;  %v441_v39 = vld [vmem:[#allocation2 + $0x340] sm:$0xff]  ;;  %v4744_v40 = vsub.f32 %v376_v43, %v541_v27  ;;  %v4747_v36 = vpack.c.bf16 %v543_v23, %v539_v63  ;;  %v4751_v8 = vsub.f32 %v375_v14, %v543_v23  ;;  %3258 = vmatprep.subr.bf16.mxu1 %v4740_v1  ;;  %v446_v63 = vld [vmem:[#allocation2 + $0x368] sm:$0xff] }
  0xb2   : > { %6991 = vst [vmem:[#allocation122_spill] sm:$0xff] %v4730_v4  ;;  %6992 = vst [vmem:[#allocation123_spill] sm:$0xff] %v4732_v6  ;;  %v1831_v35 = vand.u32 4294901760, %v441_v39  ;;  %v1835_v43 = vand.u32 4294901760, %v443_v38  ;;  %v549_v27 = vand.u32 4294901760, %v380_v26  ;;  %v547_v4 = vand.u32 4294901760, %v377_v16 }
  0xb3   : > { %6993 = vst [vmem:[#allocation124_spill] sm:$0xff] %v4734_v13  ;;  %6994 = vst [vmem:[#allocation125_spill] sm:$0xff] %v4736_v19  ;;  %3260 = vmatpush1.bf16.msra.mxu1 %v4747_v36  ;;  %v4758_v14 = vpack.c.bf16 %v1833_v49, %v1829_v31  ;;  %v4760_v23 = vsub.f32 %v444_v42, %v1833_v49  ;;  %v384_v19 = vld [vmem:[#allocation2 + $0x178] sm:$0xff]  ;;  %v381_v31 = vld [vmem:[#allocation2 + $0x160] sm:$0xff] }
  0xb4   : > { %6995 = vst [vmem:[#allocation126_spill] sm:$0xff] %v4738_v61  ;;  %6996 = vst [vmem:[#allocation127_spill] sm:$0xff] %v4740_v1  ;;  %v4762_v13 = vpack.c.bf16 %v1835_v43, %v1831_v35  ;;  %v4764_v1 = vsub.f32 %v441_v39, %v1831_v35  ;;  %v4766_v61 = vsub.f32 %v443_v38, %v1835_v43  ;;  %v383_v6 = vld [vmem:[#allocation2 + $0x170] sm:$0xff]  ;;  %v1837_v35 = vand.u32 4294901760, %v446_v63 }
  0xb5   : > { %6997 = vst [vmem:[#allocation128_spill] sm:$0xff] %v4742_v7  ;;  %6998 = vst [vmem:[#allocation129_spill] sm:$0xff] %v4744_v40  ;;  %v551_v40 = vand.u32 4294901760, %v379_v41  ;;  %v382_v7 = vld [vmem:[#allocation2 + $0x168] sm:$0xff]  ;;  %v4768_v20 = vpack.c.bf16 %v549_v27, %v545_v54  ;;  %3646 = vmatprep.subr.bf16.mxu0 %v4758_v14  ;;  %v4777_v39 = vsub.f32 %v377_v16, %v547_v4  ;;  %v452_v16 = vld [vmem:[#allocation2 + $0x398] sm:$0xff] }
  0xb6   : > { %6999 = vst [vmem:[#allocation130_spill] sm:$0xff] %v4747_v36  ;;  %7000 = vst [vmem:[#allocation131_spill] sm:$0xff] %v4749_v32  ;;  %v447_v32 = vld [vmem:[#allocation2 + $0x370] sm:$0xff]  ;;  %v4770_v36 = vsub.f32 %v378_v50, %v545_v54  ;;  %3648 = vmatpush1.bf16.msra.mxu0 %v4762_v13  ;;  %v1841_v50 = vand.u32 4294901760, %v448_v53  ;;  %v553_v43 = vand.u32 4294901760, %v382_v7  ;;  %v4784_v54 = vsub.f32 %v446_v63, %v1837_v35 }
  0xb7   : > { %7001 = vst [vmem:[#allocation132_spill] sm:$0xff] %v4751_v8  ;;  %7002 = vst [vmem:[#allocation133_spill] sm:$0xff] %v4756_v33  ;;  %v445_v8 = vld [vmem:[#allocation2 + $0x360] sm:$0xff]  ;;  %v4772_v33 = vsub.f32 %v380_v26, %v549_v27  ;;  %v4775_v42 = vpack.c.bf16 %v551_v40, %v547_v4  ;;  %v4779_v49 = vsub.f32 %v379_v41, %v551_v40  ;;  %3262 = vmatprep.subr.bf16.mxu1 %v4768_v20  ;;  %v450_v4 = vld [vmem:[#allocation2 + $0x388] sm:$0xff] }
  0xb8   : > { %7003 = vst [vmem:[#allocation134_spill] sm:$0xff] %v4758_v14  ;;  %7004 = vst [vmem:[#allocation135_spill] sm:$0xff] %v4760_v23  ;;  %v1839_v38 = vand.u32 4294901760, %v445_v8  ;;  %v1843_v26 = vand.u32 4294901760, %v447_v32  ;;  %v557_v27 = vand.u32 4294901760, %v384_v19  ;;  %v555_v14 = vand.u32 4294901760, %v381_v31 }
  0xb9   : > { %7005 = vst [vmem:[#allocation136_spill] sm:$0xff] %v4762_v13  ;;  %7006 = vst [vmem:[#allocation137_spill] sm:$0xff] %v4764_v1  ;;  %3264 = vmatpush1.bf16.msra.mxu1 %v4775_v42  ;;  %v4786_v41 = vpack.c.bf16 %v1841_v50, %v1837_v35  ;;  %v4788_v40 = vsub.f32 %v448_v53, %v1841_v50  ;;  %v388_v1 = vld [vmem:[#allocation2 + $0x198] sm:$0xff]  ;;  %v385_v35 = vld [vmem:[#allocation2 + $0x180] sm:$0xff] }
  0xba   : > { %7007 = vst [vmem:[#allocation138_spill] sm:$0xff] %v4766_v61  ;;  %7008 = vst [vmem:[#allocation139_spill] sm:$0xff] %v4768_v20  ;;  %v4790_v13 = vpack.c.bf16 %v1843_v26, %v1839_v38  ;;  %v4792_v20 = vsub.f32 %v445_v8, %v1839_v38  ;;  %v4794_v61 = vsub.f32 %v447_v32, %v1843_v26  ;;  %v387_v23 = vld [vmem:[#allocation2 + $0x190] sm:$0xff]  ;;  %v1845_v38 = vand.u32 4294901760, %v450_v4 }
  0xbb   : > { %7009 = vst [vmem:[#allocation140_spill] sm:$0xff] %v4770_v36  ;;  %7010 = vst [vmem:[#allocation141_spill] sm:$0xff] %v4772_v33  ;;  %v559_v33 = vand.u32 4294901760, %v383_v6  ;;  %v386_v36 = vld [vmem:[#allocation2 + $0x188] sm:$0xff]  ;;  %v4796_v63 = vpack.c.bf16 %v557_v27, %v553_v43  ;;  %3650 = vmatprep.subr.bf16.mxu0 %v4786_v41  ;;  %v4805_v8 = vsub.f32 %v381_v31, %v555_v14  ;;  %v456_v31 = vld [vmem:[#allocation2 + $0x3b8] sm:$0xff] }
  0xbc   : > { %7011 = vst [vmem:[#allocation142_spill] sm:$0xff] %v4775_v42  ;;  %7012 = vst [vmem:[#allocation143_spill] sm:$0xff] %v4777_v39  ;;  %v451_v39 = vld [vmem:[#allocation2 + $0x390] sm:$0xff]  ;;  %v4798_v42 = vsub.f32 %v382_v7, %v553_v43  ;;  %3652 = vmatpush1.bf16.msra.mxu0 %v4790_v13  ;;  %v1849_v7 = vand.u32 4294901760, %v452_v16  ;;  %v561_v26 = vand.u32 4294901760, %v386_v36  ;;  %v4812_v43 = vsub.f32 %v450_v4, %v1845_v38 }
  0xbd   : > { %7013 = vst [vmem:[#allocation144_spill] sm:$0xff] %v4779_v49  ;;  %7014 = vst [vmem:[#allocation145_spill] sm:$0xff] %v4784_v54  ;;  %v449_v49 = vld [vmem:[#allocation2 + $0x380] sm:$0xff]  ;;  %v4800_v54 = vsub.f32 %v384_v19, %v557_v27  ;;  %v4803_v53 = vpack.c.bf16 %v559_v33, %v555_v14  ;;  %v4807_v50 = vsub.f32 %v383_v6, %v559_v33  ;;  %3266 = vmatprep.subr.bf16.mxu1 %v4796_v63  ;;  %v454_v14 = vld [vmem:[#allocation2 + $0x3a8] sm:$0xff] }
  0xbe   : > { %7015 = vst [vmem:[#allocation146_spill] sm:$0xff] %v4786_v41  ;;  %7016 = vst [vmem:[#allocation147_spill] sm:$0xff] %v4788_v40  ;;  %v1847_v32 = vand.u32 4294901760, %v449_v49  ;;  %v1851_v19 = vand.u32 4294901760, %v451_v39  ;;  %v565_v27 = vand.u32 4294901760, %v388_v1  ;;  %v563_v41 = vand.u32 4294901760, %v385_v35 }
  0xbf   : > { %7017 = vst [vmem:[#allocation148_spill] sm:$0xff] %v4790_v13  ;;  %7018 = vst [vmem:[#allocation149_spill] sm:$0xff] %v4792_v20  ;;  %3268 = vmatpush1.bf16.msra.mxu1 %v4803_v53  ;;  %v4814_v6 = vpack.c.bf16 %v1849_v7, %v1845_v38  ;;  %v4816_v33 = vsub.f32 %v452_v16, %v1849_v7  ;;  %v392_v20 = vld [vmem:[#allocation2 + $0x1b8] sm:$0xff]  ;;  %v389_v38 = vld [vmem:[#allocation2 + $0x1a0] sm:$0xff] }
  0xc0   : > { %7019 = vst [vmem:[#allocation150_spill] sm:$0xff] %v4794_v61  ;;  %7020 = vst [vmem:[#allocation151_spill] sm:$0xff] %v4796_v63  ;;  %v4818_v13 = vpack.c.bf16 %v1851_v19, %v1847_v32  ;;  %v4820_v63 = vsub.f32 %v449_v49, %v1847_v32  ;;  %v4822_v61 = vsub.f32 %v451_v39, %v1851_v19  ;;  %v391_v40 = vld [vmem:[#allocation2 + $0x1b0] sm:$0xff]  ;;  %v1853_v32 = vand.u32 4294901760, %v454_v14 }
  0xc1   : > { %7021 = vst [vmem:[#allocation152_spill] sm:$0xff] %v4798_v42  ;;  %7022 = vst [vmem:[#allocation153_spill] sm:$0xff] %v4800_v54  ;;  %v567_v54 = vand.u32 4294901760, %v387_v23  ;;  %v390_v42 = vld [vmem:[#allocation2 + $0x1a8] sm:$0xff]  ;;  %v4824_v4 = vpack.c.bf16 %v565_v27, %v561_v26  ;;  %3654 = vmatprep.subr.bf16.mxu0 %v4814_v6  ;;  %v4833_v49 = vsub.f32 %v385_v35, %v563_v41  ;;  %v460_v35 = vld [vmem:[#allocation2 + $0x3d8] sm:$0xff] }
  0xc2   : > { %7023 = vst [vmem:[#allocation154_spill] sm:$0xff] %v4803_v53  ;;  %7024 = vst [vmem:[#allocation155_spill] sm:$0xff] %v4805_v8  ;;  %v455_v8 = vld [vmem:[#allocation2 + $0x3b0] sm:$0xff]  ;;  %v4826_v53 = vsub.f32 %v386_v36, %v561_v26  ;;  %3656 = vmatpush1.bf16.msra.mxu0 %v4818_v13  ;;  %v1857_v36 = vand.u32 4294901760, %v456_v31  ;;  %v569_v19 = vand.u32 4294901760, %v390_v42  ;;  %v4840_v26 = vsub.f32 %v454_v14, %v1853_v32 }
  0xc3   : > { %7025 = vst [vmem:[#allocation156_spill] sm:$0xff] %v4807_v50  ;;  %7026 = vst [vmem:[#allocation157_spill] sm:$0xff] %v4812_v43  ;;  %v453_v50 = vld [vmem:[#allocation2 + $0x3a0] sm:$0xff]  ;;  %v4828_v43 = vsub.f32 %v388_v1, %v565_v27  ;;  %v4831_v16 = vpack.c.bf16 %v567_v54, %v563_v41  ;;  %v4835_v7 = vsub.f32 %v387_v23, %v567_v54  ;;  %3270 = vmatprep.subr.bf16.mxu1 %v4824_v4  ;;  %v458_v41 = vld [vmem:[#allocation2 + $0x3c8] sm:$0xff] }
  0xc4   : > { %7027 = vst [vmem:[#allocation158_spill] sm:$0xff] %v4814_v6  ;;  %7028 = vst [vmem:[#allocation159_spill] sm:$0xff] %v4816_v33  ;;  %v1855_v39 = vand.u32 4294901760, %v453_v50  ;;  %v1859_v1 = vand.u32 4294901760, %v455_v8  ;;  %v573_v27 = vand.u32 4294901760, %v392_v20  ;;  %v571_v6 = vand.u32 4294901760, %v389_v38 }
  0xc5   : > { %7029 = vst [vmem:[#allocation160_spill] sm:$0xff] %v4818_v13  ;;  %7030 = vst [vmem:[#allocation161_spill] sm:$0xff] %v4820_v63  ;;  %3272 = vmatpush1.bf16.msra.mxu1 %v4831_v16  ;;  %v4842_v23 = vpack.c.bf16 %v1857_v36, %v1853_v32  ;;  %v4844_v54 = vsub.f32 %v456_v31, %v1857_v36  ;;  %v396_v63 = vld [vmem:[#allocation2 + $0x1d8] sm:$0xff]  ;;  %v393_v32 = vld [vmem:[#allocation2 + $0x1c0] sm:$0xff] }
  0xc6   : > { %7031 = vst [vmem:[#allocation162_spill] sm:$0xff] %v4822_v61  ;;  %7032 = vst [vmem:[#allocation163_spill] sm:$0xff] %v4824_v4  ;;  %v4846_v13 = vpack.c.bf16 %v1859_v1, %v1855_v39  ;;  %v4848_v4 = vsub.f32 %v453_v50, %v1855_v39  ;;  %v4850_v61 = vsub.f32 %v455_v8, %v1859_v1  ;;  %v395_v33 = vld [vmem:[#allocation2 + $0x1d0] sm:$0xff]  ;;  %v1861_v39 = vand.u32 4294901760, %v458_v41 }
  0xc7   : > { %7033 = vst [vmem:[#allocation164_spill] sm:$0xff] %v4826_v53  ;;  %7034 = vst [vmem:[#allocation165_spill] sm:$0xff] %v4828_v43  ;;  %v575_v43 = vand.u32 4294901760, %v391_v40  ;;  %v394_v53 = vld [vmem:[#allocation2 + $0x1c8] sm:$0xff]  ;;  %v4852_v14 = vpack.c.bf16 %v573_v27, %v569_v19  ;;  %3658 = vmatprep.subr.bf16.mxu0 %v4842_v23  ;;  %v4861_v50 = vsub.f32 %v389_v38, %v571_v6  ;;  %v464_v38 = vld [vmem:[#allocation2 + $0x3f8] sm:$0xff] }
  0xc8   : > { %7035 = vst [vmem:[#allocation166_spill] sm:$0xff] %v4831_v16  ;;  %7036 = vst [vmem:[#allocation167_spill] sm:$0xff] %v4833_v49  ;;  %v459_v49 = vld [vmem:[#allocation2 + $0x3d0] sm:$0xff]  ;;  %v4854_v16 = vsub.f32 %v390_v42, %v569_v19  ;;  %3660 = vmatpush1.bf16.msra.mxu0 %v4846_v13  ;;  %v1865_v42 = vand.u32 4294901760, %v460_v35  ;;  %v577_v1 = vand.u32 4294901760, %v394_v53  ;;  %v4868_v19 = vsub.f32 %v458_v41, %v1861_v39 }
  0xc9   : > { %7037 = vst [vmem:[#allocation168_spill] sm:$0xff] %v4835_v7  ;;  %7038 = vst [vmem:[#allocation169_spill] sm:$0xff] %v4840_v26  ;;  %v457_v7 = vld [vmem:[#allocation2 + $0x3c0] sm:$0xff]  ;;  %v4856_v26 = vsub.f32 %v392_v20, %v573_v27  ;;  %v4859_v31 = vpack.c.bf16 %v575_v43, %v571_v6  ;;  %v4863_v36 = vsub.f32 %v391_v40, %v575_v43  ;;  %3274 = vmatprep.subr.bf16.mxu1 %v4852_v14  ;;  %v462_v6 = vld [vmem:[#allocation2 + $0x3e8] sm:$0xff] }
  0xca   : > { %7039 = vst [vmem:[#allocation170_spill] sm:$0xff] %v4842_v23  ;;  %7040 = vst [vmem:[#allocation171_spill] sm:$0xff] %v4844_v54  ;;  %v1863_v8 = vand.u32 4294901760, %v457_v7  ;;  %v1867_v20 = vand.u32 4294901760, %v459_v49  ;;  %v581_v27 = vand.u32 4294901760, %v396_v63  ;;  %v579_v23 = vand.u32 4294901760, %v393_v32 }
  0xcb   : > { %7041 = vst [vmem:[#allocation172_spill] sm:$0xff] %v4846_v13  ;;  %7042 = vst [vmem:[#allocation173_spill] sm:$0xff] %v4848_v4  ;;  %3276 = vmatpush1.bf16.msra.mxu1 %v4859_v31  ;;  %v4870_v40 = vpack.c.bf16 %v1865_v42, %v1861_v39  ;;  %v4872_v43 = vsub.f32 %v460_v35, %v1865_v42  ;;  %v400_v4 = vld [vmem:[#allocation2 + $0x1f8] sm:$0xff]  ;;  %v397_v39 = vld [vmem:[#allocation2 + $0x1e0] sm:$0xff] }
  0xcc   : > { %7043 = vst [vmem:[#allocation174_spill] sm:$0xff] %v4850_v61  ;;  %7044 = vst [vmem:[#allocation175_spill] sm:$0xff] %v4852_v14  ;;  %v4874_v13 = vpack.c.bf16 %v1867_v20, %v1863_v8  ;;  %v4876_v14 = vsub.f32 %v457_v7, %v1863_v8  ;;  %v4878_v61 = vsub.f32 %v459_v49, %v1867_v20  ;;  %v399_v54 = vld [vmem:[#allocation2 + $0x1f0] sm:$0xff]  ;;  %v1869_v8 = vand.u32 4294901760, %v462_v6 }
  0xcd   : > { %7045 = vst [vmem:[#allocation176_spill] sm:$0xff] %v4854_v16  ;;  %7046 = vst [vmem:[#allocation177_spill] sm:$0xff] %v4856_v26  ;;  %v583_v26 = vand.u32 4294901760, %v395_v33  ;;  %v398_v16 = vld [vmem:[#allocation2 + $0x1e8] sm:$0xff]  ;;  %v4880_v41 = vpack.c.bf16 %v581_v27, %v577_v1  ;;  %3662 = vmatprep.subr.bf16.mxu0 %v4870_v40  ;;  %v4889_v7 = vsub.f32 %v393_v32, %v579_v23 }
  0xce   : > { %7047 = vst [vmem:[#allocation178_spill] sm:$0xff] %v4859_v31  ;;  %7048 = vst [vmem:[#allocation179_spill] sm:$0xff] %v4861_v50  ;;  %v463_v50 = vld [vmem:[#allocation2 + $0x3f0] sm:$0xff]  ;;  %v4882_v31 = vsub.f32 %v394_v53, %v577_v1  ;;  %3664 = vmatpush1.bf16.msra.mxu0 %v4874_v13  ;;  %v1873_v53 = vand.u32 4294901760, %v464_v38  ;;  %v585_v20 = vand.u32 4294901760, %v398_v16  ;;  %v4896_v1 = vsub.f32 %v462_v6, %v1869_v8 }
  0xcf   : > { %7049 = vst [vmem:[#allocation180_spill] sm:$0xff] %v4863_v36  ;;  %7050 = vst [vmem:[#allocation181_spill] sm:$0xff] %v4868_v19  ;;  %v461_v36 = vld [vmem:[#allocation2 + $0x3e0] sm:$0xff]  ;;  %v4884_v19 = vsub.f32 %v396_v63, %v581_v27  ;;  %v4887_v35 = vpack.c.bf16 %v583_v26, %v579_v23  ;;  %v4891_v42 = vsub.f32 %v395_v33, %v583_v26  ;;  %3278 = vmatprep.subr.bf16.mxu1 %v4880_v41 }
  0xd0   : > { %7051 = vst [vmem:[#allocation182_spill] sm:$0xff] %v4870_v40  ;;  %7052 = vst [vmem:[#allocation183_spill] sm:$0xff] %v4872_v43  ;;  %v1871_v49 = vand.u32 4294901760, %v461_v36  ;;  %v1875_v63 = vand.u32 4294901760, %v463_v50  ;;  %v589_v27 = vand.u32 4294901760, %v400_v4  ;;  %v587_v40 = vand.u32 4294901760, %v397_v39 }
  0xd1   : > { %7053 = vst [vmem:[#allocation184_spill] sm:$0xff] %v4874_v13  ;;  %7054 = vst [vmem:[#allocation185_spill] sm:$0xff] %v4876_v14  ;;  %3280 = vmatpush1.bf16.msra.mxu1 %v4887_v35  ;;  %v4898_v23 = vpack.c.bf16 %v1873_v53, %v1869_v8  ;;  %v4900_v33 = vsub.f32 %v464_v38, %v1873_v53  ;;  %v7071_v6 = vunpack.c.0.s8 %v4471_v3  ;;  %v6555_v3 = vand.u32 4294901760, %v4484_v28 }
  0xd2   : > { %7055 = vst [vmem:[#allocation186_spill] sm:$0xff] %v4878_v61  ;;  %7056 = vst [vmem:[#allocation187_spill] sm:$0xff] %v4880_v41  ;;  %v4902_v26 = vpack.c.bf16 %v1875_v63, %v1871_v49  ;;  %v4904_v32 = vsub.f32 %v461_v36, %v1871_v49  ;;  %v4906_v13 = vsub.f32 %v463_v50, %v1875_v63  ;;  %v6561_v50 = vand.u32 4294901760, %v4486_v29 }
  0xd3   : > { %7057 = vst [vmem:[#allocation188_spill] sm:$0xff] %v4882_v31  ;;  %7058 = vst [vmem:[#allocation189_spill] sm:$0xff] %v4884_v19  ;;  %v591_v19 = vand.u32 4294901760, %v399_v54  ;;  %v4908_v41 = vpack.c.bf16 %v589_v27, %v585_v20  ;;  %3666 = vmatprep.subr.bf16.mxu0 %v4898_v23  ;;  %v4922_v8 = vsub.f32 %v397_v39, %v587_v40  ;;  %v6568_v53 = vand.u32 4294901760, %v4488_v30 }
  0xd4   : > { %7059 = vst [vmem:[#allocation190_spill] sm:$0xff] %v4887_v35  ;;  %7060 = vst [vmem:[#allocation191_spill] sm:$0xff] %v4889_v7  ;;  %v4912_v35 = vsub.f32 %v400_v4, %v589_v27  ;;  %3668 = vmatpush1.bf16.msra.mxu0 %v4902_v26  ;;  %v6556_v4 = vand.u32 4294901760, %v4478_v21  ;;  %v1903_v63 = vsub.f32 %v4484_v28, %v6555_v3 }
  0xd5   : > { %7061 = vst [vmem:[#allocation192_spill] sm:$0xff] %v4891_v42  ;;  %7062 = vst [vmem:[#allocation193_spill] sm:$0xff] %v4896_v1  ;;  %v4910_v42 = vsub.f32 %v398_v16, %v585_v20  ;;  %v4917_v1 = vsub.s32 %v7071_v6, %v4473_v12  ;;  %v4920_v38 = vpack.c.bf16 %v591_v19, %v587_v40  ;;  %3282 = vmatprep.subr.bf16.mxu1 %v4908_v41 }
  0xd6   : > { %7063 = vst [vmem:[#allocation194_spill] sm:$0xff] %v4898_v23  ;;  %7064 = vst [vmem:[#allocation195_spill] sm:$0xff] %v4900_v33  ;;  %v4924_v36 = vsub.f32 %v399_v54, %v591_v19  ;;  %v6554_v16 = vand.u32 4294901760, %v4480_v22  ;;  %v6573_v40 = vand.u32 4294901760, %v4493_v34  ;;  %v6576_v54 = vand.u32 4294901760, %v4499_v44 }
  0xd7   : > { %7065 = vst [vmem:[#allocation196_spill] sm:$0xff] %v4902_v26  ;;  %7066 = vst [vmem:[#allocation197_spill] sm:$0xff] %v4904_v32  ;;  %3284 = vmatpush1.bf16.msra.mxu1 %v4920_v38  ;;  %v6579_v19 = vand.u32 4294901760, %v4501_v45  ;;  %v1897_v39 = vsub.f32 %v4478_v21, %v6556_v4  ;;  %v1915_v20 = vsub.f32 %v4486_v29, %v6561_v50 }
  0xd8   : > { %7067 = vst [vmem:[#allocation198_spill] sm:$0xff] %v4906_v13  ;;  %7068 = vst [vmem:[#allocation199_spill] sm:$0xff] %v4908_v41  ;;  %v1909_v49 = vsub.f32 %v4480_v22, %v6554_v16  ;;  %v613_v27 = vsub.f32 %v4488_v30, %v6568_v53  ;;  %v625_v6 = vsub.f32 %v4493_v34, %v6573_v40  ;;  %v6591_v40 = vand.u32 4294901760, %v4505_v51 }
  0xd9   : > { %7069 = vst [vmem:[#allocation200_spill] sm:$0xff] %v4910_v42  ;;  %7070 = vst [vmem:[#allocation201_spill] sm:$0xff] %v4912_v35  ;;  %v619_v16 = vsub.f32 %v4499_v44, %v6576_v54  ;;  %v631_v3 = vsub.f32 %v4501_v45, %v6579_v19  ;;  %v1898_v4 = vand.u32 4294901760, %v1897_v39  ;;  %v1916_v50 = vand.u32 4294901760, %v1915_v20 }
  0xda   : > { %7072 = vst [vmem:[#allocation202_spill] sm:$0xff] %v4920_v38  ;;  %7073 = vst [vmem:[#allocation203_spill] sm:$0xff] %v4922_v8  ;;  %v1910_v12 = vand.u32 4294901760, %v1909_v49  ;;  %v1904_v38 = vand.u32 4294901760, %v1903_v63  ;;  %v614_v26 = vand.u32 4294901760, %v613_v27  ;;  %v626_v41 = vand.u32 4294901760, %v625_v6 }
  0xdb   : > { %7074 = vst [vmem:[#allocation204_spill] sm:$0xff] %v4924_v36  ;;  %v620_v23 = vand.u32 4294901760, %v619_v16  ;;  %v632_v53 = vand.u32 4294901760, %v631_v3  ;;  %v6590_v34 = vand.u32 4294901760, %v4507_v52  ;;  %v6581_v19 = vand.u32 4294901760, %v4512_v56 }
  0xdc   : > { %v3669_v30 = vpack.c.bf16 %v1910_v12, %v1898_v4  ;;  %v4961_v29 = vpack.c.bf16 %v1916_v50, %v1904_v38  ;;  %v3285_v54 = vpack.c.bf16 %v626_v41, %v614_v26  ;;  %v6580_v39 = vand.u32 4294901760, %v4514_v57 }
  0xdd   : > { %v4965_v44 = vpack.c.bf16 %v632_v53, %v620_v23  ;;  %v1921_v16 = vsub.f32 %v4505_v51, %v6591_v40  ;;  %v1933_v12 = vsub.f32 %v4507_v52, %v6590_v34  ;;  %v6582_v38 = vand.u32 4294901760, %v4516_v59 }
  0xde   : > { %3670 = vmatprep.subr.bf16.mxu0 %v3669_v30  ;;  %v6583_v4 = vand.u32 4294901760, %v4522_v2  ;;  %3286 = vmatprep.subr.bf16.mxu1 %v3285_v54  ;;  %v1927_v41 = vsub.f32 %v4512_v56, %v6581_v19  ;;  %v1939_v30 = vsub.f32 %v4514_v57, %v6580_v39  ;;  %v6584_v23 = vand.u32 4294901760, %v4526_v10 }
  0xdf   : > { %v6585_v26 = vand.u32 4294901760, %v4528_v11  ;;  %v1922_v3 = vand.u32 4294901760, %v1921_v16  ;;  %v1934_v50 = vand.u32 4294901760, %v1933_v12  ;;  %v637_v53 = vsub.f32 %v4516_v59, %v6582_v38 }
  0xe0   : > { %v649_v54 = vsub.f32 %v4522_v2, %v6583_v4  ;;  %v1928_v49 = vand.u32 4294901760, %v1927_v41  ;;  %v1940_v63 = vand.u32 4294901760, %v1939_v30  ;;  %v643_v20 = vsub.f32 %v4526_v10, %v6584_v23 }
  0xe1   : > { %v655_v27 = vsub.f32 %v4528_v11, %v6585_v26  ;;  %v4997_v6 = vpack.c.bf16 %v1934_v50, %v1922_v3  ;;  %v638_v16 = vand.u32 4294901760, %v637_v53  ;;  %v6587_v39 = vand.u32 4294901760, %v4533_v17 }
  0xe2   : > { %v650_v12 = vand.u32 4294901760, %v649_v54  ;;  %v5000_v19 = vpack.c.bf16 %v1940_v63, %v1928_v49  ;;  %v644_v38 = vand.u32 4294901760, %v643_v20  ;;  %v6586_v41 = vand.u32 4294901760, %v4535_v18 }
  0xe3   : > { %v656_v4 = vand.u32 4294901760, %v655_v27  ;;  %v1945_v23 = vsub.f32 %v4533_v17, %v6587_v39  ;;  %v6588_v26 = vand.u32 4294901760, %v4539_v24  ;;  %v6589_v3 = vand.u32 4294901760, %v4543_v25 }
  0xe4   : > { %v5003_v30 = vpack.c.bf16 %v650_v12, %v638_v16  ;;  %v1957_v53 = vsub.f32 %v4535_v18, %v6586_v41  ;;  %v6592_v54 = vand.u32 4294901760, %v4548_v46  ;;  %v6595_v49 = vand.u32 4294901760, %v4550_v47 }
  0xe5   : > { %v5010_v50 = vpack.c.bf16 %v656_v4, %v644_v38  ;;  %v1946_v63 = vand.u32 4294901760, %v1945_v23  ;;  %v1951_v20 = vsub.f32 %v4539_v24, %v6588_v26  ;;  %v1963_v27 = vsub.f32 %v4543_v25, %v6589_v3 }
  0xe6   : > { %v6596_v38 = vand.u32 4294901760, %v4552_v48  ;;  %v1958_v4 = vand.u32 4294901760, %v1957_v53  ;;  %v661_v16 = vsub.f32 %v4548_v46, %v6592_v54  ;;  %v673_v12 = vsub.f32 %v4550_v47, %v6595_v49 }
  0xe7   : > { %v6599_v23 = vand.u32 4294901760, %v4556_v60  ;;  %v1952_v41 = vand.u32 4294901760, %v1951_v20  ;;  %v1964_v39 = vand.u32 4294901760, %v1963_v27  ;;  %v6601_v3 = vand.u32 4294901760, %v4560_v62 }
  0xe8   : > { %v667_v26 = vsub.f32 %v4552_v48, %v6596_v38  ;;  %v5035_v34 = vpack.c.bf16 %v1958_v4, %v1946_v63  ;;  %v662_v53 = vand.u32 4294901760, %v661_v16  ;;  %v674_v40 = vand.u32 4294901760, %v673_v12 }
  0xe9   : > { %v679_v54 = vsub.f32 %v4556_v60, %v6599_v23  ;;  %v5040_v25 = vpack.c.bf16 %v1964_v39, %v1952_v41  ;;  %v1969_v20 = vsub.f32 %v4560_v62, %v6601_v3  ;;  %v6600_v27 = vand.u32 4294901760, %v4563_v0 }
  0xea   : > { %v668_v49 = vand.u32 4294901760, %v667_v26  ;;  %v5046_v38 = vpack.c.bf16 %v674_v40, %v662_v53  ;;  %v6604_v63 = vand.u32 4294901760, %v4565_v5  ;;  %v6605_v4 = vand.u32 4294901760, %v4571_v37 }
  0xeb   : > { %v680_v48 = vand.u32 4294901760, %v679_v54  ;;  %v1970_v16 = vand.u32 4294901760, %v1969_v20  ;;  %v1981_v39 = vsub.f32 %v4563_v0, %v6600_v27  ;;  %v6612_v26 = vand.u32 4294901760, %v4573_v15 }
  0xec   : > { %v6615_v41 = vand.u32 4294901760, %v4577_v58  ;;  %v1975_v40 = vsub.f32 %v4565_v5, %v6604_v63  ;;  %v1987_v54 = vsub.f32 %v4571_v37, %v6605_v4  ;;  %v6618_v53 = vand.u32 4294901760, %v4581_v9  ;;  %v7076_v4 = vld [vmem:[#allocation62_spill] sm:$0xff] }
  0xed   : > { %v5055_v12 = vpack.c.bf16 %v680_v48, %v668_v49  ;;  %v1982_v20 = vand.u32 4294901760, %v1981_v39  ;;  %v685_v23 = vsub.f32 %v4573_v15, %v6612_v26  ;;  %v7075_v49 = vld [vmem:[#allocation60_spill] sm:$0xff]  ;;  %v6625_v37 = vand.u32 4294901760, %v7076_v4 }
  0xee   : > { %v697_v48 = vsub.f32 %v4577_v58, %v6615_v41  ;;  %v6621_v27 = vand.u32 4294901760, %v7075_v49  ;;  %v1976_v3 = vand.u32 4294901760, %v1975_v40  ;;  %v1988_v60 = vand.u32 4294901760, %v1987_v54  ;;  %v7077_v54 = vld [vmem:[#allocation63_spill] sm:$0xff] }
  0xef   : > { %v691_v63 = vsub.f32 %v4581_v9, %v6618_v53  ;;  %v5075_v5 = vpack.c.bf16 %v1982_v20, %v1970_v16  ;;  %v686_v39 = vand.u32 4294901760, %v685_v23  ;;  %v1993_v40 = vsub.f32 %v7076_v4, %v6625_v37  ;;  %v7078_v23 = vld [vmem:[#allocation66_spill] sm:$0xff] }
  0xf0   : > { %v698_v0 = vand.u32 4294901760, %v697_v48  ;;  %v703_v26 = vsub.f32 %v7075_v49, %v6621_v27  ;;  %v5080_v15 = vpack.c.bf16 %v1988_v60, %v1976_v3  ;;  %v6626_v58 = vand.u32 4294901760, %v7077_v54  ;;  %v7079_v3 = vld [vmem:[#allocation68_spill] sm:$0xff]  ;;  %v7080_v27 = vld [vmem:[#allocation69_spill] sm:$0xff] }
  0xf1   : > { %v692_v41 = vand.u32 4294901760, %v691_v63  ;;  %v6631_v16 = vand.u32 4294901760, %v4597_v55  ;;  %v6632_v20 = vand.u32 4294901760, %v7078_v23  ;;  %v1994_v48 = vand.u32 4294901760, %v1993_v40 }
  0xf2   : > { %v5086_v53 = vpack.c.bf16 %v698_v0, %v686_v39  ;;  %v704_v9 = vand.u32 4294901760, %v703_v26  ;;  %v2005_v60 = vsub.f32 %v7077_v54, %v6626_v58  ;;  %v6638_v63 = vand.u32 4294901760, %v7079_v3  ;;  %v7081_v39 = vld [vmem:[#allocation71_spill] sm:$0xff] }
  0xf3   : > { %v6640_v49 = vand.u32 4294901760, %v7080_v27  ;;  %v1999_v0 = vsub.f32 %v4597_v55, %v6631_v16  ;;  %v2011_v26 = vsub.f32 %v7078_v23, %v6632_v20  ;;  %v6642_v40 = vand.u32 4294901760, %v7081_v39  ;;  %v7083_v20 = vld [vmem:[#allocation74_spill] sm:$0xff] }
  0xf4   : > { %v5095_v62 = vpack.c.bf16 %v704_v9, %v692_v41  ;;  %v2006_v37 = vand.u32 4294901760, %v2005_v60  ;;  %v709_v58 = vsub.f32 %v7079_v3, %v6638_v63  ;;  %v7082_v41 = vld [vmem:[#allocation72_spill] sm:$0xff]  ;;  %v6650_v23 = vand.u32 4294901760, %v7083_v20 }
  0xf5   : > { %v721_v9 = vsub.f32 %v7080_v27, %v6640_v49  ;;  %v6646_v54 = vand.u32 4294901760, %v7082_v41  ;;  %v2000_v4 = vand.u32 4294901760, %v1999_v0  ;;  %v2012_v24 = vand.u32 4294901760, %v2011_v26  ;;  %v7084_v26 = vld [vmem:[#allocation75_spill] sm:$0xff] }
  0xf6   : > { %v715_v16 = vsub.f32 %v7081_v39, %v6642_v40  ;;  %v5115_v55 = vpack.c.bf16 %v2006_v37, %v1994_v48  ;;  %v710_v60 = vand.u32 4294901760, %v709_v58  ;;  %v2017_v0 = vsub.f32 %v7083_v20, %v6650_v23  ;;  %v7085_v37 = vld [vmem:[#allocation76_spill] sm:$0xff]  ;;  %v7086_v58 = vld [vmem:[#allocation78_spill] sm:$0xff] }
  0xf7   : > { %v722_v47 = vand.u32 4294901760, %v721_v9  ;;  %v727_v63 = vsub.f32 %v7082_v41, %v6646_v54  ;;  %v5120_v3 = vpack.c.bf16 %v2012_v24, %v2000_v4  ;;  %v6651_v27 = vand.u32 4294901760, %v7084_v26  ;;  %v7087_v4 = vld [vmem:[#allocation80_spill] sm:$0xff]  ;;  %v7088_v54 = vld [vmem:[#allocation81_spill] sm:$0xff] }
  0xf8   : > { %v716_v49 = vand.u32 4294901760, %v715_v16  ;;  %v6656_v48 = vand.u32 4294901760, %v7085_v37  ;;  %v6657_v9 = vand.u32 4294901760, %v7086_v58  ;;  %v2018_v46 = vand.u32 4294901760, %v2017_v0  ;;  %v5191_v2 = vpop.permute.xlu0 %240 }
  0xf9   : > { %v5126_v40 = vpack.c.bf16 %v722_v47, %v710_v60  ;;  %v728_v39 = vand.u32 4294901760, %v727_v63  ;;  %v2029_v24 = vsub.f32 %v7084_v26, %v6651_v27  ;;  %v6662_v16 = vand.u32 4294901760, %v7087_v4  ;;  %v7089_v60 = vld [vmem:[#allocation83_spill] sm:$0xff]  ;;  %7099 = vst [vmem:[#allocation205_spill] sm:$0xff] %v5191_v2 }
  0xfa   : > { %v6663_v41 = vand.u32 4294901760, %v7088_v54  ;;  %v2023_v47 = vsub.f32 %v7085_v37, %v6656_v48  ;;  %v2035_v63 = vsub.f32 %v7086_v58, %v6657_v9  ;;  %v6665_v0 = vand.u32 4294901760, %v7089_v60  ;;  %v7091_v9 = vld [vmem:[#allocation85_spill] sm:$0xff] }
  0xfb   : > { %v5135_v18 = vpack.c.bf16 %v728_v39, %v716_v49  ;;  %v2030_v23 = vand.u32 4294901760, %v2029_v24  ;;  %v733_v27 = vsub.f32 %v7087_v4, %v6662_v16  ;;  %v7090_v39 = vld [vmem:[#allocation84_spill] sm:$0xff]  ;;  %v6672_v58 = vand.u32 4294901760, %v7091_v9 }
  0xfc   : > { %v745_v49 = vsub.f32 %v7088_v54, %v6663_v41  ;;  %v6670_v26 = vand.u32 4294901760, %v7090_v39  ;;  %v2024_v20 = vand.u32 4294901760, %v2023_v47  ;;  %v2036_v17 = vand.u32 4294901760, %v2035_v63  ;;  %v7092_v63 = vld [vmem:[#allocation87_spill] sm:$0xff] }
  0xfd   : > { %v739_v48 = vsub.f32 %v7089_v60, %v6665_v0  ;;  %v5155_v24 = vpack.c.bf16 %v2030_v23, %v2018_v46  ;;  %v734_v37 = vand.u32 4294901760, %v733_v27  ;;  %v2041_v47 = vsub.f32 %v7091_v9, %v6672_v58  ;;  %v7093_v46 = vld [vmem:[#allocation89_spill] sm:$0xff]  ;;  %v7094_v23 = vld [vmem:[#allocation90_spill] sm:$0xff] }
  0xfe   : > { %v746_v11 = vand.u32 4294901760, %v745_v49  ;;  %v751_v16 = vsub.f32 %v7090_v39, %v6670_v26  ;;  %v5160_v41 = vpack.c.bf16 %v2036_v17, %v2024_v20  ;;  %v6674_v0 = vand.u32 4294901760, %v7092_v63  ;;  %v7095_v20 = vld [vmem:[#allocation92_spill] sm:$0xff]  ;;  %v7096_v26 = vld [vmem:[#allocation93_spill] sm:$0xff] }
  0xff   : > { %v740_v54 = vand.u32 4294901760, %v739_v48  ;;  %v6678_v27 = vand.u32 4294901760, %v7093_v46  ;;  %v6682_v49 = vand.u32 4294901760, %v7094_v23  ;;  %v2042_v10 = vand.u32 4294901760, %v2041_v47 }
 0x100   : > { %v5166_v60 = vpack.c.bf16 %v746_v11, %v734_v37  ;;  %v752_v4 = vand.u32 4294901760, %v751_v16  ;;  %v2053_v17 = vsub.f32 %v7092_v63, %v6674_v0  ;;  %v6684_v48 = vand.u32 4294901760, %v7095_v20  ;;  %v7097_v16 = vld [vmem:[#allocation95_spill] sm:$0xff] }
 0x101   : > { %v6688_v39 = vand.u32 4294901760, %v7096_v26  ;;  %v2047_v11 = vsub.f32 %v7093_v46, %v6678_v27  ;;  %v2059_v37 = vsub.f32 %v7094_v23, %v6682_v49  ;;  %v6692_v47 = vand.u32 4294901760, %v7097_v16  ;;  %v236_v27 = vld [vmem:[%s4464_s4] sm:$0xff] }
 0x102   : > { %v5175_v58 = vpack.c.bf16 %v752_v4, %v740_v54  ;;  %v2054_v9 = vand.u32 4294901760, %v2053_v17  ;;  %v757_v0 = vsub.f32 %v7095_v20, %v6684_v48  ;;  %v7098_v4 = vld [vmem:[#allocation96_spill] sm:$0xff]  ;;  %v7100_v17 = vld [vmem:[#allocation97_spill] sm:$0xff]  ;;  %v249_v48 = vrot.slane %v5191_v2, %v4917_v1  ;;  %v7102_v1 = vld [vmem:[#allocation99_spill] sm:$0xff] }
 0x103   : > { %v769_v54 = vsub.f32 %v7096_v26, %v6688_v39  ;;  %v2048_v46 = vand.u32 4294901760, %v2047_v11  ;;  %v2060_v59 = vand.u32 4294901760, %v2059_v37  ;;  %v763_v49 = vsub.f32 %v7097_v16, %v6692_v47  ;;  %v7105_v2 = vld [vmem:[#allocation104_spill] sm:$0xff] }
 0x104   : > { %v6701_v23 = vand.u32 4294901760, %v7100_v17  ;;  %v5200_v20 = vpack.c.bf16 %v2054_v9, %v2042_v10  ;;  %v758_v57 = vand.u32 4294901760, %v757_v0  ;;  %v7101_v56 = vand.u32 4294901760, %v7098_v4  ;;  %v7103_v9 = vld [vmem:[#allocation101_spill] sm:$0xff] }
 0x105   : > { %v770_v39 = vand.u32 4294901760, %v769_v54  ;;  %v5202_v26 = vpack.c.bf16 %v2060_v59, %v2048_v46  ;;  %v764_v63 = vand.u32 4294901760, %v763_v49  ;;  %v251_v47 = vmul.f32 %v249_v48, %v236_v27  ;;  %v7104_v46 = vld [vmem:[#allocation102_spill] sm:$0xff] }
 0x106   : > { %v775_v11 = vsub.f32 %v7098_v4, %v7101_v56  ;;  %v5210_v37 = vsub.f32 %v7100_v17, %v6701_v23  ;;  %v6711_v10 = vand.u32 4294901760, %v7102_v1 }
 0x107   : > { %v5212_v16 = vpack.c.bf16 %v770_v39, %v758_v57  ;;  %v252_v56 = vsub.f32 %v236_v27, %v251_v47  ;;  %v254_v4 = vcombine.high %v251_v47, %v251_v47  ;;  %v257_v51 = vsel %vm256_vm0, %v251_v47, 0.0 }
 0x108   : > { %v776_v54 = vand.u32 4294901760, %v775_v11  ;;  %v273_v23 = vsel %vm256_vm0, %v251_v47, -inf  ;;  %v258_v48 = vrot.slane %v257_v51, 4  ;;  %v2077_v11 = vsub.f32 %v7102_v1, %v6711_v10 }
 0x109   : > { %v274_v57 = vrot.slane %v273_v23, 4  ;;  %v264_v0 = vsel %vm256_vm0, %v254_v4, 0.0  ;;  %v280_v49 = vsel %vm256_vm0, %v254_v4, -inf  ;;  %v288_v59 = vcombine.high %v252_v56, %v252_v56 }
 0x10a   : > { %v5221_v39 = vpack.c.bf16 %v776_v54, %v764_v63  ;;  %v290_v27 = vsel %vm256_vm0, %v252_v56, 0.0  ;;  %v259_v52 = vadd.f32 %v258_v48, %v257_v51  ;;  %v265_v17 = vrot.slane %v264_v0, 4 }
 0x10b   : > { %v275_v45 = vmax.f32 %v273_v23, %v274_v57  ;;  %v281_v28 = vrot.slane %v280_v49, 4  ;;  %v291_v47 = vrot.slane %v290_v27, 4  ;;  %v297_v22 = vsel %vm256_vm0, %v288_v59, 0.0 }
 0x10c   : > { %v306_v63 = vsel %vm256_vm0, %v252_v56, -inf  ;;  %v313_v54 = vsel %vm256_vm0, %v288_v59, -inf  ;;  %v260_v21 = vrot.slane %v259_v52, 2  ;;  %v266_v10 = vadd.f32 %v265_v17, %v264_v0 }
 0x10d   : > { %v276_v1 = vrot.slane %v275_v45, 2  ;;  %v298_v36 = vrot.slane %v297_v22, 4  ;;  %v292_v8 = vadd.f32 %v291_v47, %v290_v27  ;;  %v307_v4 = vrot.slane %v306_v63, 4 }
 0x10e   : > { %v314_v35 = vrot.slane %v313_v54, 4  ;;  %v282_v42 = vmax.f32 %v280_v49, %v281_v28  ;;  %v261_v13 = vadd.f32 %v260_v21, %v259_v52  ;;  %v267_v48 = vrot.slane %v266_v10, 2 }
 0x10f   : > { %v277_v51 = vmax.f32 %v275_v45, %v276_v1  ;;  %v299_v23 = vadd.f32 %v298_v36, %v297_v22  ;;  %v293_v57 = vrot.slane %v292_v8, 2  ;;  %v308_v32 = vmax.f32 %v306_v63, %v307_v4 }
 0x110   : > { %v283_v33 = vrot.slane %v282_v42, 2  ;;  %v315_v7 = vmax.f32 %v313_v54, %v314_v35  ;;  %v262_v31 = vrot.slane %v261_v13, 1  ;;  %v268_v59 = vadd.f32 %v267_v48, %v266_v10 }
 0x111   : > { %v278_v56 = vrot.slane %v277_v51, 1  ;;  %v300_v61 = vrot.slane %v299_v23, 2  ;;  %v294_v17 = vadd.f32 %v293_v57, %v292_v8  ;;  %v309_v0 = vrot.slane %v308_v32, 2 }
 0x112   : > { %v284_v14 = vmax.f32 %v282_v42, %v283_v33  ;;  %v316_v27 = vrot.slane %v315_v7, 2  ;;  %v269_v43 = vrot.slane %v268_v59, 1  ;;  %v263_v21 = vadd.f32 %v262_v31, %v261_v13 }
 0x113   : > { %v279_v47 = vmax.f32 %v277_v51, %v278_v56  ;;  %v301_v28 = vadd.f32 %v300_v61, %v299_v23  ;;  %v310_v45 = vmax.f32 %v308_v32, %v309_v0  ;;  %v295_v36 = vrot.slane %v294_v17, 1 }
 0x114   : > { %v285_v52 = vrot.slane %v284_v14, 1  ;;  %v317_v22 = vmax.f32 %v315_v7, %v316_v27  ;;  %v270_v1 = vadd.f32 %v269_v43, %v268_v59  ;;  %v271_v35 = vmul.f32 0.5, %v263_v21 }
 0x115   : > { %v302_v49 = vrot.slane %v301_v28, 1  ;;  %v2078_v63 = vand.u32 4294901760, %v2077_v11  ;;  %v311_v10 = vrot.slane %v310_v45, 1  ;;  %v296_v48 = vadd.f32 %v295_v36, %v294_v17 }
 0x116   : > { %v286_v54 = vmax.f32 %v284_v14, %v285_v52  ;;  %v318_v4 = vrot.slane %v317_v22, 1  ;;  %v272_v8 = vmul.f32 0.5, %v270_v1  ;;  %v7106_v42 = vand.u32 4294901760, %v5210_v37  ;;  %v7110_v37 = vld [vmem:[#allocation105_spill] sm:$0xff] }
 0x117   : > { %v303_v57 = vadd.f32 %v302_v49, %v301_v28  ;;  %v7107_v61 = vand.u32 4294901760, %v7103_v9  ;;  %v312_v7 = vmax.f32 %v310_v45, %v311_v10  ;;  %v304_v43 = vmul.f32 0.5, %v296_v48 }
 0x118   : > { %v5234_v33 = vpack.c.bf16 %v2078_v63, %v7106_v42  ;;  %v319_v31 = vmax.f32 %v317_v22, %v318_v4  ;;  %v7108_v32 = vand.u32 4294901760, %v7104_v46  ;;  %v7109_v23 = vand.u32 4294901760, %v7105_v2  ;;  %v7111_v22 = vld [vmem:[#allocation107_spill] sm:$0xff] }
 0x119   : > { %v2071_v13 = vsub.f32 %v7103_v9, %v7107_v61  ;;  %v305_v11 = vmul.f32 0.5, %v303_v57  ;;  %v6728_v59 = vand.u32 4294901760, %v7110_v37  ;;  %v326_v0 = vrot.slane %v312_v7, 7 }
 0x11a   : > { %v2083_v14 = vsub.f32 %v7104_v46, %v7108_v32  ;;  %v781_v56 = vsub.f32 %v7105_v2, %v7109_v23  ;;  %v327_v17 = vrot.slane %v319_v31, 7  ;;  %v324_v27 = vrot.slane %v304_v43, 7  ;;  %v7143_v2 = vld [vmem:[#allocation141_spill] sm:$0xff] }
 0x11b   : > { %v2072_v51 = vand.u32 4294901760, %v2071_v13  ;;  %v325_v21 = vrot.slane %v305_v11, 7  ;;  %v793_v45 = vsub.f32 %v7110_v37, %v6728_v59  ;;  %v6726_v36 = vand.u32 4294901760, %v7111_v22 }
 0x11c   : > { %v2084_v28 = vand.u32 4294901760, %v2083_v14  ;;  %v782_v52 = vand.u32 4294901760, %v781_v56  ;;  %v336_v1 = vsel %vm332_vm1, %v286_v54, %v327_v17  ;;  %v335_v49 = vsel %vm332_vm1, %v279_v47, %v326_v0  ;;  %v7116_v47 = vld [vmem:[#allocation108_spill] sm:$0xff] }
 0x11d   : > { %v333_v63 = vsel %vm332_vm1, %v271_v35, %v324_v27  ;;  %v5255_v10 = vand.u32 4294901760, %v336_v1  ;;  %v5257_v48 = vand.u32 4294901760, %v335_v49  ;;  %v334_v57 = vsel %vm332_vm1, %v272_v8, %v325_v21  ;;  %v7120_v8 = vld [vmem:[#allocation109_spill] sm:$0xff] }
 0x11e   : > { %v5253_v4 = vpack.c.bf16 %v2084_v28, %v2072_v51  ;;  %v5260_v42 = vand.u32 4294901760, %v333_v63  ;;  %v5262_v61 = vand.u32 4294901760, %v334_v57  ;;  %v794_v13 = vand.u32 4294901760, %v793_v45 }
 0x11f   : > { %7112 = vst [vmem:[#allocation206_spill] sm:$0xff] %v5255_v10  ;;  %7113 = vst [vmem:[#allocation207_spill] sm:$0xff] %v5257_v48  ;;  %v787_v54 = vsub.f32 %v7111_v22, %v6726_v36  ;;  %v6725_v31 = vand.u32 4294901760, %v7116_v47  ;;  %v5269_v35 = vsub.f32 %v336_v1, %v5255_v10  ;;  %v5272_v7 = vsub.f32 %v335_v49, %v5257_v48  ;;  %v7123_v1 = vld [vmem:[#allocation113_spill] sm:$0xff]  ;;  %v7125_v22 = vld [vmem:[#allocation116_spill] sm:$0xff] }
 0x120   : > { %7114 = vst [vmem:[#allocation208_spill] sm:$0xff] %v5260_v42  ;;  %7115 = vst [vmem:[#allocation209_spill] sm:$0xff] %v5262_v61  ;;  %v5275_v43 = vsub.f32 %v333_v63, %v5260_v42  ;;  %v6727_v32 = vand.u32 4294901760, %v7120_v8  ;;  %v5279_v14 = vsub.f32 %v334_v57, %v5262_v61  ;;  %v5281_v11 = vpack.c.bf16 %v794_v13, %v782_v52  ;;  %v7122_v52 = vld [vmem:[#allocation111_spill] sm:$0xff] }
 0x121   : > { %7117 = vst [vmem:[#allocation210_spill] sm:$0xff] %v5269_v35  ;;  %7118 = vst [vmem:[#allocation211_spill] sm:$0xff] %v5272_v7  ;;  %v788_v51 = vand.u32 4294901760, %v787_v54  ;;  %v799_v23 = vsub.f32 %v7116_v47, %v6725_v31  ;;  %v6730_v56 = vand.u32 4294901760, %v5269_v35  ;;  %v6729_v17 = vand.u32 4294901760, %v5272_v7 }
 0x122   : > { %7119 = vst [vmem:[#allocation212_spill] sm:$0xff] %v5275_v43  ;;  %7121 = vst [vmem:[#allocation213_spill] sm:$0xff] %v5279_v14  ;;  %v6733_v0 = vand.u32 4294901760, %v5275_v43  ;;  %v2089_v27 = vsub.f32 %v7120_v8, %v6727_v32  ;;  %v6738_v28 = vand.u32 4294901760, %v5279_v14  ;;  %v6739_v45 = vand.u32 4294901760, %v7122_v52 }
 0x123   : > { %v800_v21 = vand.u32 4294901760, %v799_v23  ;;  %v6742_v49 = vand.u32 4294901760, %v7123_v1  ;;  %v1880_v63 = vsub.f32 %v5269_v35, %v6730_v56  ;;  %v1886_v57 = vsub.f32 %v5272_v7, %v6729_v17  ;;  %v7124_v7 = vld [vmem:[#allocation114_spill] sm:$0xff] }
 0x124   : > { %v602_v13 = vsub.f32 %v5275_v43, %v6733_v0  ;;  %v2090_v54 = vand.u32 4294901760, %v2089_v27  ;;  %v596_v23 = vsub.f32 %v5279_v14, %v6738_v28  ;;  %v2101_v36 = vsub.f32 %v7122_v52, %v6739_v45  ;;  %v7127_v52 = vld [vmem:[#allocation119_spill] sm:$0xff] }
 0x125   : > { %v5307_v31 = vpack.c.bf16 %v800_v21, %v788_v51  ;;  %v2095_v32 = vsub.f32 %v7123_v1, %v6742_v49  ;;  %v1881_v59 = vand.u32 4294901760, %v1880_v63  ;;  %v1887_v17 = vand.u32 4294901760, %v1886_v57  ;;  %v7126_v21 = vld [vmem:[#allocation117_spill] sm:$0xff]  ;;  %v7128_v49 = vld [vmem:[#allocation120_spill] sm:$0xff] }
 0x126   : > { %v603_v56 = vand.u32 4294901760, %v602_v13  ;;  %v6743_v0 = vand.u32 4294901760, %v7124_v7  ;;  %v597_v27 = vand.u32 4294901760, %v596_v23  ;;  %v2102_v43 = vand.u32 4294901760, %v2101_v36  ;;  %v7130_v13 = vld [vmem:[#allocation123_spill] sm:$0xff] }
 0x127   : > { %v2096_v47 = vand.u32 4294901760, %v2095_v32  ;;  %v6745_v28 = vand.u32 4294901760, %v7125_v22  ;;  %1882 = vmatprep.mubr.f32.mxu0 %v1881_v59  ;;  %v6744_v45 = vand.u32 4294901760, %v7126_v21  ;;  %v6746_v8 = vand.u32 4294901760, %v7127_v52  ;;  %v7129_v32 = vld [vmem:[#allocation121_spill] sm:$0xff] }
 0x128   : > { %v2107_v51 = vsub.f32 %v7124_v7, %v6743_v0  ;;  %v6747_v63 = vand.u32 4294901760, %v7128_v49  ;;  %1888 = vmatmul.mubr.f32.vlgmr.msra.gmra.mrb[0].mxu0 %v1887_v17  ;;  %598 = vmatprep.mubr.f32.mxu1 %v597_v27  ;;  %v5323_v57 = vpack.c.bf16 %v2102_v43, %v2090_v54  ;;  %v6750_v59 = vand.u32 4294901760, %v7129_v32 }
 0x129   : > { %v805_v36 = vsub.f32 %v7125_v22, %v6745_v28  ;;  %v6751_v23 = vand.u32 4294901760, %v7130_v13  ;;  %3672 = vmatpush1.bf16.msra.mxu0 %v4961_v29  ;;  %2279 = vmatprep.mubr.f32.mxu0 %v5255_v10  ;;  %v817_v17 = vsub.f32 %v7126_v21, %v6744_v45  ;;  %v811_v43 = vsub.f32 %v7127_v52, %v6746_v8  ;;  %v7131_v45 = vld [vmem:[#allocation125_spill] sm:$0xff] }
 0x12a   : > { %v2108_v0 = vand.u32 4294901760, %v2107_v51  ;;  %v823_v54 = vsub.f32 %v7128_v49, %v6747_v63  ;;  %604 = vmatmul.mubr.f32.vlgmr.msra.gmra.mrb[0].mxu1 %v603_v56  ;;  %3674 = vmatprep.subr.bf16.mxu0 %v4997_v6  ;;  %v2113_v29 = vsub.f32 %v7129_v32, %v6750_v59  ;;  %v6755_v28 = vand.u32 4294901760, %v7131_v45 }
 0x12b   : > { %v806_v27 = vand.u32 4294901760, %v805_v36  ;;  %v2125_v51 = vsub.f32 %v7130_v13, %v6751_v23  ;;  %3288 = vmatpush1.bf16.msra.mxu1 %v4965_v44  ;;  %995 = vmatprep.mubr.f32.mxu1 %v5262_v61  ;;  %v818_v56 = vand.u32 4294901760, %v817_v17  ;;  %v812_v63 = vand.u32 4294901760, %v811_v43  ;;  %v7132_v23 = vld [vmem:[#allocation126_spill] sm:$0xff]  ;;  %v7134_v17 = vld [vmem:[#allocation129_spill] sm:$0xff] }
 0x12c   : > { %v5351_v8 = vpack.c.bf16 %v2108_v0, %v2096_v47  ;;  %v824_v6 = vand.u32 4294901760, %v823_v54  ;;  %3290 = vmatprep.subr.bf16.mxu1 %v5003_v30  ;;  %v2114_v36 = vand.u32 4294901760, %v2113_v29  ;;  %v2119_v59 = vsub.f32 %v7131_v45, %v6755_v28  ;;  %v7133_v47 = vld [vmem:[#allocation128_spill] sm:$0xff] }
 0x12d   : > { %v2126_v10 = vand.u32 4294901760, %v2125_v51  ;;  %v6756_v7 = vand.u32 4294901760, %v7132_v23  ;;  %3676 = vmatpush1.bf16.msra.mxu0 %v5000_v19  ;;  %v5359_v44 = vpack.c.bf16 %v818_v56, %v806_v27  ;;  %v6758_v0 = vand.u32 4294901760, %v7133_v47  ;;  %v7135_v51 = vld [vmem:[#allocation131_spill] sm:$0xff]  ;;  %v7137_v27 = vld [vmem:[#allocation133_spill] sm:$0xff] }
 0x12e   : > { %v5361_v61 = vpack.c.bf16 %v824_v6, %v812_v63  ;;  %v6760_v43 = vand.u32 4294901760, %v7134_v17  ;;  %3678 = vmatprep.subr.bf16.mxu0 %v5035_v34  ;;  %v2120_v54 = vand.u32 4294901760, %v2119_v59  ;;  %v6761_v28 = vand.u32 4294901760, %v7135_v51  ;;  %v7136_v34 = vld [vmem:[#allocation132_spill] sm:$0xff] }
 0x12f   : > { %v5366_v30 = vpack.c.bf16 %v2126_v10, %v2114_v36  ;;  %v2131_v29 = vsub.f32 %v7132_v23, %v6756_v7  ;;  %3292 = vmatpush1.bf16.msra.mxu1 %v5010_v50  ;;  %v829_v19 = vsub.f32 %v7133_v47, %v6758_v0  ;;  %v6762_v10 = vand.u32 4294901760, %v7136_v34  ;;  %v7138_v50 = vld [vmem:[#allocation135_spill] sm:$0xff]  ;;  %v7139_v7 = vld [vmem:[#allocation137_spill] sm:$0xff] }
 0x130   : > { %v841_v63 = vsub.f32 %v7134_v17, %v6760_v43  ;;  %v6764_v59 = vand.u32 4294901760, %v7137_v27  ;;  %3294 = vmatprep.subr.bf16.mxu1 %v5046_v38  ;;  %v835_v6 = vsub.f32 %v7135_v51, %v6761_v28  ;;  %v6767_v36 = vand.u32 4294901760, %v7138_v50 }
 0x131   : > { %v2132_v56 = vand.u32 4294901760, %v2131_v29  ;;  %3680 = vmatpush1.bf16.msra.mxu0 %v5040_v25  ;;  %v830_v0 = vand.u32 4294901760, %v829_v19  ;;  %v847_v43 = vsub.f32 %v7136_v34, %v6762_v10  ;;  %v7140_v25 = vand.u32 4294901760, %v7139_v7 }
 0x132   : > { %v842_v46 = vand.u32 4294901760, %v841_v63  ;;  %v2137_v38 = vsub.f32 %v7137_v27, %v6764_v59  ;;  %3682 = vmatprep.subr.bf16.mxu0 %v5075_v5  ;;  %v836_v28 = vand.u32 4294901760, %v835_v6  ;;  %v2149_v1 = vsub.f32 %v7138_v50, %v6767_v36  ;;  %v7141_v59 = vld [vmem:[#allocation138_spill] sm:$0xff] }
 0x133   : > { %v5395_v29 = vpack.c.bf16 %v2132_v56, %v2120_v54  ;;  %v2143_v19 = vsub.f32 %v7139_v7, %v7140_v25  ;;  %3296 = vmatpush1.bf16.msra.mxu1 %v5055_v12  ;;  %v848_v10 = vand.u32 4294901760, %v847_v43  ;;  %v6770_v37 = vand.u32 4294901760, %v7141_v59  ;;  %v7142_v56 = vld [vmem:[#allocation140_spill] sm:$0xff] }
 0x134   : > { %v5404_v63 = vpack.c.bf16 %v842_v46, %v830_v0  ;;  %v2138_v9 = vand.u32 4294901760, %v2137_v38  ;;  %3298 = vmatprep.subr.bf16.mxu1 %v5086_v53  ;;  %v2150_v5 = vand.u32 4294901760, %v2149_v1  ;;  %v6771_v6 = vand.u32 4294901760, %v7142_v56  ;;  %v7144_v46 = vld [vmem:[#allocation143_spill] sm:$0xff]  ;;  %v7145_v43 = vld [vmem:[#allocation144_spill] sm:$0xff] }
 0x135   : > { %v2144_v54 = vand.u32 4294901760, %v2143_v19  ;;  %v6772_v36 = vand.u32 4294901760, %v7143_v2  ;;  %3684 = vmatpush1.bf16.msra.mxu0 %v5080_v15  ;;  %v5411_v14 = vpack.c.bf16 %v848_v10, %v836_v28  ;;  %v2155_v12 = vsub.f32 %v7141_v59, %v6770_v37  ;;  %v7146_v28 = vld [vmem:[#allocation145_spill] sm:$0xff] }
 0x136   : > { %v6775_v0 = vand.u32 4294901760, %v7144_v46  ;;  %v6778_v38 = vand.u32 4294901760, %v7145_v43  ;;  %3686 = vmatprep.subr.bf16.mxu0 %v5115_v55  ;;  %v5419_v53 = vpack.c.bf16 %v2150_v5, %v2138_v9  ;;  %v853_v1 = vsub.f32 %v7142_v56, %v6771_v6  ;;  %v7147_v9 = vld [vmem:[#allocation147_spill] sm:$0xff] }
 0x137   : > { %v865_v15 = vsub.f32 %v7143_v2, %v6772_v36  ;;  %v6779_v10 = vand.u32 4294901760, %v7146_v28  ;;  %3300 = vmatpush1.bf16.msra.mxu1 %v5095_v62  ;;  %v2156_v25 = vand.u32 4294901760, %v2155_v12  ;;  %v6782_v5 = vand.u32 4294901760, %v7147_v9  ;;  %v7148_v62 = vld [vmem:[#allocation149_spill] sm:$0xff] }
 0x138   : > { %v859_v19 = vsub.f32 %v7144_v46, %v6775_v0  ;;  %v871_v55 = vsub.f32 %v7145_v43, %v6778_v38  ;;  %3302 = vmatprep.subr.bf16.mxu1 %v5126_v40  ;;  %v854_v37 = vand.u32 4294901760, %v853_v1  ;;  %v6783_v12 = vand.u32 4294901760, %v7148_v62 }
 0x139   : > { %v866_v6 = vand.u32 4294901760, %v865_v15  ;;  %v2161_v36 = vsub.f32 %v7146_v28, %v6779_v10  ;;  %3688 = vmatpush1.bf16.msra.mxu0 %v5120_v3  ;;  %v5442_v42 = vpack.c.bf16 %v2156_v25, %v2144_v54  ;;  %v2173_v38 = vsub.f32 %v7147_v9, %v6782_v5  ;;  %v7149_v10 = vld [vmem:[#allocation150_spill] sm:$0xff]  ;;  %v7150_v25 = vld [vmem:[#allocation152_spill] sm:$0xff] }
 0x13a   : > { %v860_v0 = vand.u32 4294901760, %v859_v19  ;;  %v872_v35 = vand.u32 4294901760, %v871_v55  ;;  %3690 = vmatprep.subr.bf16.mxu0 %v5155_v24  ;;  %v2167_v15 = vsub.f32 %v7148_v62, %v6783_v12  ;;  %v6785_v48 = vand.u32 4294901760, %v7149_v10  ;;  %v7151_v55 = vld [vmem:[#allocation153_spill] sm:$0xff]  ;;  %v7153_v12 = vld [vmem:[#allocation156_spill] sm:$0xff] }
 0x13b   : > { %v5448_v40 = vpack.c.bf16 %v866_v6, %v854_v37  ;;  %v2162_v1 = vand.u32 4294901760, %v2161_v36  ;;  %3304 = vmatpush1.bf16.msra.mxu1 %v5135_v18  ;;  %v2174_v54 = vand.u32 4294901760, %v2173_v38  ;;  %v6786_v19 = vand.u32 4294901760, %v7150_v25  ;;  %v7152_v36 = vld [vmem:[#allocation155_spill] sm:$0xff] }
 0x13c   : > { %v5455_v3 = vpack.c.bf16 %v872_v35, %v860_v0  ;;  %v6788_v5 = vand.u32 4294901760, %v7151_v55  ;;  %3306 = vmatprep.subr.bf16.mxu1 %v5166_v60  ;;  %v2168_v24 = vand.u32 4294901760, %v2167_v15  ;;  %v2179_v37 = vsub.f32 %v7149_v10, %v6785_v48  ;;  %v7154_v0 = vld [vmem:[#allocation157_spill] sm:$0xff] }
 0x13d   : > { %v6790_v6 = vand.u32 4294901760, %v7152_v36  ;;  %v6792_v62 = vand.u32 4294901760, %v7153_v12  ;;  %3692 = vmatpush1.bf16.msra.mxu0 %v5160_v41  ;;  %v5466_v18 = vpack.c.bf16 %v2174_v54, %v2162_v1  ;;  %v877_v35 = vsub.f32 %v7150_v25, %v6786_v19  ;;  %v7155_v1 = vld [vmem:[#allocation159_spill] sm:$0xff] }
 0x13e   : > { %v889_v60 = vsub.f32 %v7151_v55, %v6788_v5  ;;  %v6793_v38 = vand.u32 4294901760, %v7154_v0  ;;  %3694 = vmatprep.subr.bf16.mxu0 %v5200_v20  ;;  %v2180_v15 = vand.u32 4294901760, %v2179_v37  ;;  %v6795_v54 = vand.u32 4294901760, %v7155_v1  ;;  %v7156_v20 = vld [vmem:[#allocation161_spill] sm:$0xff] }
 0x13f   : > { %v883_v48 = vsub.f32 %v7152_v36, %v6790_v6  ;;  %v895_v41 = vsub.f32 %v7153_v12, %v6792_v62  ;;  %3308 = vmatpush1.bf16.msra.mxu1 %v5175_v58  ;;  %v878_v19 = vand.u32 4294901760, %v877_v35  ;;  %v6796_v37 = vand.u32 4294901760, %v7156_v20 }
 0x140   : > { %v890_v25 = vand.u32 4294901760, %v889_v60  ;;  %v2185_v5 = vsub.f32 %v7154_v0, %v6793_v38  ;;  %3310 = vmatprep.subr.bf16.mxu1 %v5212_v16  ;;  %v5489_v55 = vpack.c.bf16 %v2180_v15, %v2168_v24  ;;  %v2197_v62 = vsub.f32 %v7155_v1, %v6795_v54  ;;  %v7157_v38 = vld [vmem:[#allocation162_spill] sm:$0xff]  ;;  %v7158_v24 = vld [vmem:[#allocation164_spill] sm:$0xff] }
 0x141   : > { %v884_v6 = vand.u32 4294901760, %v883_v48  ;;  %v896_v36 = vand.u32 4294901760, %v895_v41  ;;  %3696 = vmatpush1.bf16.msra.mxu0 %v5202_v26  ;;  %v2191_v60 = vsub.f32 %v7156_v20, %v6796_v37  ;;  %v6798_v0 = vand.u32 4294901760, %v7157_v38  ;;  %v7159_v41 = vld [vmem:[#allocation165_spill] sm:$0xff]  ;;  %v7161_v37 = vld [vmem:[#allocation168_spill] sm:$0xff] }
 0x142   : > { %v5495_v58 = vpack.c.bf16 %v890_v25, %v878_v19  ;;  %v2186_v35 = vand.u32 4294901760, %v2185_v5  ;;  %3698 = vmatprep.subr.bf16.mxu0 %v5234_v33  ;;  %v2198_v48 = vand.u32 4294901760, %v2197_v62  ;;  %v6799_v15 = vand.u32 4294901760, %v7158_v24  ;;  %v7160_v25 = vld [vmem:[#allocation167_spill] sm:$0xff] }
 0x143   : > { %v5502_v16 = vpack.c.bf16 %v896_v36, %v884_v6  ;;  %v6801_v54 = vand.u32 4294901760, %v7159_v41  ;;  %3312 = vmatpush1.bf16.msra.mxu1 %v5221_v39  ;;  %v2192_v26 = vand.u32 4294901760, %v2191_v60  ;;  %v2203_v5 = vsub.f32 %v7157_v38, %v6798_v0  ;;  %v7162_v36 = vld [vmem:[#allocation169_spill] sm:$0xff]  ;;  %v7242_v38 = vld [vmem:[#allocation54_spill] sm:$0xff] }
 0x144   : > { %v6803_v19 = vand.u32 4294901760, %v7160_v25  ;;  %v6805_v20 = vand.u32 4294901760, %v7161_v37  ;;  %3314 = vmatprep.subr.bf16.mxu1 %v5281_v11  ;;  %v5513_v33 = vpack.c.bf16 %v2198_v48, %v2186_v35  ;;  %v901_v62 = vsub.f32 %v7158_v24, %v6799_v15  ;;  %v7163_v35 = vld [vmem:[#allocation171_spill] sm:$0xff] }
 0x145   : > { %v913_v39 = vsub.f32 %v7159_v41, %v6801_v54  ;;  %v6806_v6 = vand.u32 4294901760, %v7162_v36  ;;  %3700 = vmatpush1.bf16.msra.mxu0 %v5253_v4  ;;  %v2204_v60 = vand.u32 4294901760, %v2203_v5  ;;  %v6808_v48 = vand.u32 4294901760, %v7163_v35  ;;  %v7164_v4 = vld [vmem:[#allocation173_spill] sm:$0xff] }
 0x146   : > { %v907_v0 = vsub.f32 %v7160_v25, %v6803_v19  ;;  %v919_v11 = vsub.f32 %v7161_v37, %v6805_v20  ;;  %3702 = vmatprep.subr.bf16.mxu0 %v5323_v57  ;;  %v902_v15 = vand.u32 4294901760, %v901_v62  ;;  %v6809_v5 = vand.u32 4294901760, %v7164_v4 }
 0x147   : > { %v914_v24 = vand.u32 4294901760, %v913_v39  ;;  %v2209_v54 = vsub.f32 %v7162_v36, %v6806_v6  ;;  %3316 = vmatpush1.bf16.msra.mxu1 %v5307_v31  ;;  %v5536_v41 = vpack.c.bf16 %v2204_v60, %v2192_v26  ;;  %v2221_v20 = vsub.f32 %v7163_v35, %v6808_v48  ;;  %v7165_v6 = vld [vmem:[#allocation174_spill] sm:$0xff]  ;;  %v7166_v26 = vld [vmem:[#allocation176_spill] sm:$0xff] }
 0x148   : > { %v908_v19 = vand.u32 4294901760, %v907_v0  ;;  %v920_v25 = vand.u32 4294901760, %v919_v11  ;;  %3318 = vmatprep.subr.bf16.mxu1 %v5359_v44  ;;  %v2215_v39 = vsub.f32 %v7164_v4, %v6809_v5  ;;  %v6811_v36 = vand.u32 4294901760, %v7165_v6  ;;  %v7167_v11 = vld [vmem:[#allocation177_spill] sm:$0xff]  ;;  %v7169_v5 = vld [vmem:[#allocation180_spill] sm:$0xff] }
 0x149   : > { %v5542_v57 = vpack.c.bf16 %v914_v24, %v902_v15  ;;  %v2210_v62 = vand.u32 4294901760, %v2209_v54  ;;  %3704 = vmatpush1.bf16.msra.mxu0 %v5351_v8  ;;  %v2222_v0 = vand.u32 4294901760, %v2221_v20  ;;  %v6812_v60 = vand.u32 4294901760, %v7166_v26  ;;  %v7168_v24 = vld [vmem:[#allocation179_spill] sm:$0xff] }
 0x14a   : > { %v5549_v31 = vpack.c.bf16 %v920_v25, %v908_v19  ;;  %v6814_v48 = vand.u32 4294901760, %v7167_v11  ;;  %3706 = vmatprep.subr.bf16.mxu0 %v5366_v30  ;;  %v2216_v44 = vand.u32 4294901760, %v2215_v39  ;;  %v2227_v54 = vsub.f32 %v7165_v6, %v6811_v36  ;;  %v7170_v25 = vld [vmem:[#allocation181_spill] sm:$0xff] }
 0x14b   : > { %v6816_v15 = vand.u32 4294901760, %v7168_v24  ;;  %v6818_v4 = vand.u32 4294901760, %v7169_v5  ;;  %3320 = vmatpush1.bf16.msra.mxu1 %v5361_v61  ;;  %v5560_v8 = vpack.c.bf16 %v2222_v0, %v2210_v62  ;;  %v925_v20 = vsub.f32 %v7166_v26, %v6812_v60  ;;  %v7171_v62 = vld [vmem:[#allocation183_spill] sm:$0xff] }
 0x14c   : > { %v937_v30 = vsub.f32 %v7167_v11, %v6814_v48  ;;  %v6819_v19 = vand.u32 4294901760, %v7170_v25  ;;  %3322 = vmatprep.subr.bf16.mxu1 %v5404_v63  ;;  %v2228_v39 = vand.u32 4294901760, %v2227_v54  ;;  %v6823_v0 = vand.u32 4294901760, %v7171_v62  ;;  %v7172_v63 = vld [vmem:[#allocation185_spill] sm:$0xff] }
 0x14d   : > { %v931_v36 = vsub.f32 %v7168_v24, %v6816_v15  ;;  %v943_v61 = vsub.f32 %v7169_v5, %v6818_v4  ;;  %3708 = vmatpush1.bf16.msra.mxu0 %v5395_v29  ;;  %v926_v60 = vand.u32 4294901760, %v925_v20  ;;  %v6822_v54 = vand.u32 4294901760, %v7172_v63 }
 0x14e   : > { %v938_v26 = vand.u32 4294901760, %v937_v30  ;;  %v2233_v48 = vsub.f32 %v7170_v25, %v6819_v19  ;;  %3710 = vmatprep.subr.bf16.mxu0 %v5419_v53  ;;  %v5583_v11 = vpack.c.bf16 %v2228_v39, %v2216_v44  ;;  %v2245_v4 = vsub.f32 %v7171_v62, %v6823_v0  ;;  %v7173_v19 = vld [vmem:[#allocation186_spill] sm:$0xff]  ;;  %v7174_v44 = vld [vmem:[#allocation188_spill] sm:$0xff] }
 0x14f   : > { %v932_v15 = vand.u32 4294901760, %v931_v36  ;;  %v944_v24 = vand.u32 4294901760, %v943_v61  ;;  %3324 = vmatpush1.bf16.msra.mxu1 %v5411_v14  ;;  %v2239_v30 = vsub.f32 %v7172_v63, %v6822_v54  ;;  %v6824_v25 = vand.u32 4294901760, %v7173_v19  ;;  %v7175_v61 = vld [vmem:[#allocation189_spill] sm:$0xff]  ;;  %v7177_v54 = vld [vmem:[#allocation192_spill] sm:$0xff] }
 0x150   : > { %v3337_v29 = vpack.c.bf16 %v938_v26, %v926_v60  ;;  %v2234_v20 = vand.u32 4294901760, %v2233_v48  ;;  %3326 = vmatprep.subr.bf16.mxu1 %v5448_v40  ;;  %v2246_v36 = vand.u32 4294901760, %v2245_v4  ;;  %v6825_v39 = vand.u32 4294901760, %v7174_v44  ;;  %v7176_v26 = vld [vmem:[#allocation191_spill] sm:$0xff]  ;;  %v7246_v63 = vld [vmem:[#allocation60_spill] sm:$0xff] }
 0x151   : > { %v5594_v53 = vpack.c.bf16 %v944_v24, %v932_v15  ;;  %v6827_v5 = vand.u32 4294901760, %v7175_v61  ;;  %3712 = vmatpush1.bf16.msra.mxu0 %v5442_v42  ;;  %v2240_v14 = vand.u32 4294901760, %v2239_v30  ;;  %v2251_v48 = vsub.f32 %v7173_v19, %v6824_v25  ;;  %v7178_v24 = vld [vmem:[#allocation193_spill] sm:$0xff]  ;;  %v7234_v19 = vld [vmem:[#allocation204_spill] sm:$0xff] }
 0x152   : > { %v6829_v60 = vand.u32 4294901760, %v7176_v26  ;;  %v6831_v0 = vand.u32 4294901760, %v7177_v54  ;;  %3714 = vmatprep.subr.bf16.mxu0 %v5466_v18  ;;  %v3725_v40 = vpack.c.bf16 %v2246_v36, %v2234_v20  ;;  %v949_v4 = vsub.f32 %v7174_v44, %v6825_v39  ;;  %v7179_v20 = vld [vmem:[#allocation195_spill] sm:$0xff] }
 0x153   : > { %v961_v42 = vsub.f32 %v7175_v61, %v6827_v5  ;;  %v6832_v15 = vand.u32 4294901760, %v7178_v24  ;;  %3328 = vmatpush1.bf16.msra.mxu1 %v5455_v3  ;;  %v2252_v30 = vand.u32 4294901760, %v2251_v48  ;;  %v6835_v36 = vand.u32 4294901760, %v7179_v20  ;;  %v7180_v3 = vld [vmem:[#allocation197_spill] sm:$0xff] }
 0x154   : > { %v955_v25 = vsub.f32 %v7176_v26, %v6829_v60  ;;  %v967_v18 = vsub.f32 %v7177_v54, %v6831_v0  ;;  %3330 = vmatprep.subr.bf16.mxu1 %v5495_v58  ;;  %v950_v39 = vand.u32 4294901760, %v949_v4  ;;  %v6836_v48 = vand.u32 4294901760, %v7180_v3 }
 0x155   : > { %v962_v44 = vand.u32 4294901760, %v961_v42  ;;  %v2257_v5 = vsub.f32 %v7178_v24, %v6832_v15  ;;  %3716 = vmatpush1.bf16.msra.mxu0 %v5489_v55  ;;  %v3727_v61 = vpack.c.bf16 %v2252_v30, %v2240_v14  ;;  %v2269_v0 = vsub.f32 %v7179_v20, %v6835_v36  ;;  %v7181_v15 = vld [vmem:[#allocation198_spill] sm:$0xff] }
 0x156   : > { %v956_v60 = vand.u32 4294901760, %v955_v25  ;;  %v968_v26 = vand.u32 4294901760, %v967_v18  ;;  %3718 = vmatprep.subr.bf16.mxu0 %v5513_v33  ;;  %v2263_v42 = vsub.f32 %v7180_v3, %v6836_v48  ;;  %v6837_v24 = vand.u32 4294901760, %v7181_v15  ;;  %v7182_v25 = vld [vmem:[#allocation200_spill] sm:$0xff]  ;;  %v7183_v18 = vld [vmem:[#allocation201_spill] sm:$0xff] }
 0x157   : > { %v3341_v58 = vpack.c.bf16 %v962_v44, %v950_v39  ;;  %v2258_v4 = vand.u32 4294901760, %v2257_v5  ;;  %3332 = vmatpush1.bf16.msra.mxu1 %v5502_v16  ;;  %v2270_v14 = vand.u32 4294901760, %v2269_v0  ;;  %v6838_v30 = vand.u32 4294901760, %v7182_v25  ;;  %v7184_v5 = vld [vmem:[#allocation203_spill] sm:$0xff]  ;;  %v7185_v39 = vld [vmem:[#allocation204_spill] sm:$0xff]  ;;  %v7240_v3 = vld [vmem:[#allocation57_spill] sm:$0xff] }
 0x158   : > { %v3343_v55 = vpack.c.bf16 %v968_v26, %v956_v60  ;;  %v6841_v54 = vand.u32 4294901760, %v7183_v18  ;;  %3334 = vmatprep.subr.bf16.mxu1 %v5542_v57  ;;  %v2264_v36 = vand.u32 4294901760, %v2263_v42  ;;  %v2275_v33 = vsub.f32 %v7181_v15, %v6837_v24 }
 0x159   : > { %v6839_v44 = vand.u32 4294901760, %v7184_v5  ;;  %v6840_v48 = vand.u32 4294901760, %v7185_v39  ;;  %3720 = vmatpush1.bf16.msra.mxu0 %v5536_v41  ;;  %v3729_v16 = vpack.c.bf16 %v2270_v14, %v2258_v4  ;;  %v973_v0 = vsub.f32 %v7182_v25, %v6838_v30 }
 0x15a   : > { %v985_v57 = vsub.f32 %v7183_v18, %v6841_v54  ;;  %3722 = vmatprep.subr.bf16.mxu0 %v5560_v8  ;;  %v2276_v26 = vand.u32 4294901760, %v2275_v33 }
 0x15b   : > { %v979_v60 = vsub.f32 %v7184_v5, %v6839_v44  ;;  %v991_v41 = vsub.f32 %v7185_v39, %v6840_v48  ;;  %3336 = vmatpush1.bf16.msra.mxu1 %v5549_v31  ;;  %v974_v4 = vand.u32 4294901760, %v973_v0  ;;  %v7186_v44 = vld [vmem:[#allocation14_spill] sm:$0xff]  ;;  %v7187_v48 = vld [vmem:[#allocation15_spill] sm:$0xff]  ;;  %v7188_v31 = vld [vmem:[#allocation17_spill] sm:$0xff] }
 0x15c   : > { %v986_v42 = vand.u32 4294901760, %v985_v57  ;;  %3338 = vmatprep.subr.bf16.mxu1 %v3337_v29  ;;  %v3731_v14 = vpack.c.bf16 %v2276_v26, %v2264_v36  ;;  %v3733_v54 = vpack.c.bf16 %v7187_v48, %v7186_v44  ;;  %v7189_v0 = vld [vmem:[#allocation18_spill] sm:$0xff]  ;;  %v7190_v29 = vld [vmem:[#allocation19_spill] sm:$0xff]  ;;  %v7191_v36 = vld [vmem:[#allocation21_spill] sm:$0xff] }
 0x15d   : > { %v980_v24 = vand.u32 4294901760, %v979_v60  ;;  %v992_v30 = vand.u32 4294901760, %v991_v41  ;;  %3724 = vmatpush1.bf16.msra.mxu0 %v5583_v11  ;;  %v3735_v57 = vpack.c.bf16 %v7189_v0, %v7188_v31  ;;  %v3349_v26 = vpack.c.bf16 %v7191_v36, %v7190_v29  ;;  %v7192_v60 = vld [vmem:[#allocation23_spill] sm:$0xff]  ;;  %v7193_v11 = vld [vmem:[#allocation24_spill] sm:$0xff]  ;;  %v7202_v31 = vld [vmem:[#allocation38_spill] sm:$0xff] }
 0x15e   : > { %v3345_v8 = vpack.c.bf16 %v986_v42, %v974_v4  ;;  %3726 = vmatprep.subr.bf16.mxu0 %v3725_v40  ;;  %v3351_v41 = vpack.c.bf16 %v7193_v11, %v7192_v60  ;;  %v7194_v40 = vld [vmem:[#allocation26_spill] sm:$0xff]  ;;  %v7199_v4 = vld [vmem:[#allocation33_spill] sm:$0xff]  ;;  %v7200_v48 = vld [vmem:[#allocation35_spill] sm:$0xff] }
 0x15f   : > { %v3347_v33 = vpack.c.bf16 %v992_v30, %v980_v24  ;;  %3340 = vmatpush1.bf16.msra.mxu1 %v5594_v53  ;;  %v7195_v24 = vld [vmem:[#allocation27_spill] sm:$0xff]  ;;  %v7196_v53 = vld [vmem:[#allocation29_spill] sm:$0xff]  ;;  %v7201_v44 = vld [vmem:[#allocation36_spill] sm:$0xff] }
 0x160   : > { %3342 = vmatprep.subr.bf16.mxu1 %v3341_v58  ;;  %v3737_v30 = vpack.c.bf16 %v7195_v24, %v7194_v40  ;;  %v7197_v58 = vld [vmem:[#allocation30_spill] sm:$0xff]  ;;  %v3355_v0 = vpack.c.bf16 %v7201_v44, %v7200_v48  ;;  %v7203_v39 = vld [vmem:[#allocation39_spill] sm:$0xff]  ;;  %v7205_v29 = vld [vmem:[#allocation45_spill] sm:$0xff] }
 0x161   : > { %3728 = vmatpush1.bf16.msra.mxu0 %v3727_v61  ;;  %v3739_v61 = vpack.c.bf16 %v7197_v58, %v7196_v53  ;;  %v3741_v36 = vpack.c.bf16 %v7203_v39, %v7202_v31  ;;  %v7209_v11 = vld [vmem:[#allocation207_spill] sm:$0xff]  ;;  %v7211_v58 = vld [vmem:[#allocation157_spill] sm:$0xff]  ;;  %v7213_v44 = vld [vmem:[#allocation210_spill] sm:$0xff] }
 0x162   : > { %3730 = vmatprep.subr.bf16.mxu0 %v3729_v16  ;;  %v7198_v16 = vld [vmem:[#allocation31_spill] sm:$0xff]  ;;  %v7215_v53 = vld [vmem:[#allocation165_spill] sm:$0xff]  ;;  %v7218_v24 = vld [vmem:[#allocation208_spill] sm:$0xff] }
 0x163   : > { %3344 = vmatpush1.bf16.msra.mxu1 %v3343_v55  ;;  %v3353_v42 = vpack.c.bf16 %v7199_v4, %v7198_v16  ;;  %v7204_v55 = vld [vmem:[#allocation44_spill] sm:$0xff]  ;;  %v7222_v31 = vld [vmem:[#allocation179_spill] sm:$0xff]  ;;  %v7224_v16 = vld [vmem:[#allocation213_spill] sm:$0xff] }
 0x164   : > { %3346 = vmatprep.subr.bf16.mxu1 %v3345_v8  ;;  %v3357_v5 = vpack.c.bf16 %v7205_v29, %v7204_v55  ;;  %v7207_v29 = vld [vmem:[#allocation152_spill] sm:$0xff]  ;;  %v7208_v55 = vld [vmem:[#allocation153_spill] sm:$0xff] }
 0x165   : > { %3732 = vmatpush1.bf16.msra.mxu0 %v3731_v14  ;;  %v7210_v14 = vld [vmem:[#allocation155_spill] sm:$0xff]  ;;  %v7221_v8 = vld [vmem:[#allocation177_spill] sm:$0xff]  ;;  %v7238_v40 = vld [vmem:[#allocation48_spill] sm:$0xff] }
 0x166   : > { %3734 = vmatprep.subr.bf16.mxu0 %v3733_v54  ;;  %v7206_v54 = vld [vmem:[#allocation149_spill] sm:$0xff] }
 0x167   : > { %3348 = vmatpush1.bf16.msra.mxu1 %v3347_v33  ;;  %v7225_v4 = vld [vmem:[#allocation181_spill] sm:$0xff]  ;;  %v7237_v33 = vld [vmem:[#allocation46_spill] sm:$0xff] }
 0x168   : > { %2281 = vmatmul.mubr.f32.vlgmr.msra.gmra.mrb[0].mxu0 %v7209_v11  ;;  %3350 = vmatprep.subr.bf16.mxu1 %v3349_v26  ;;  %v7217_v11 = vld [vmem:[#allocation169_spill] sm:$0xff]  ;;  %v3359_v39 = vpack.c.bf16 %v7238_v40, %v7237_v33  ;;  %v7250_v33 = vld [vmem:[#allocation66_spill] sm:$0xff] }
 0x169   : > { %3736 = vmatpush1.bf16.msra.mxu0 %v3735_v57  ;;  %2481 = vmatprep.mubr.f32.mxu0 %v7213_v44  ;;  %v7223_v44 = vld [vmem:[#allocation180_spill] sm:$0xff]  ;;  %v7230_v57 = vld [vmem:[#allocation193_spill] sm:$0xff] }
 0x16a   : > { %997 = vmatmul.mubr.f32.vlgmr.msra.gmra.mrb[0].mxu1 %v7218_v24  ;;  %3738 = vmatprep.subr.bf16.mxu0 %v3737_v30  ;;  %v7227_v30 = vld [vmem:[#allocation189_spill] sm:$0xff]  ;;  %v7236_v24 = vld [vmem:[#allocation51_spill] sm:$0xff] }
 0x16b   : > { %3352 = vmatpush1.bf16.msra.mxu1 %v3351_v41  ;;  %1197 = vmatprep.mubr.f32.mxu1 %v7224_v16  ;;  %v7231_v48 = vld [vmem:[#allocation41_spill] sm:$0xff]  ;;  %v7232_v16 = vld [vmem:[#allocation42_spill] sm:$0xff]  ;;  %v7239_v41 = vld [vmem:[#allocation55_spill] sm:$0xff] }
 0x16c   : > { %3354 = vmatprep.subr.bf16.mxu1 %v3353_v42  ;;  %v3743_v26 = vpack.c.bf16 %v7232_v16, %v7231_v48  ;;  %v7235_v42 = vld [vmem:[#allocation50_spill] sm:$0xff]  ;;  %v3361_v15 = vpack.c.bf16 %v7240_v3, %v7239_v41  ;;  %v7244_v48 = vld [vmem:[#allocation63_spill] sm:$0xff] }
 0x16d   : > { %3740 = vmatpush1.bf16.msra.mxu0 %v3739_v61  ;;  %v3745_v6 = vpack.c.bf16 %v7236_v24, %v7235_v42  ;;  %v7241_v61 = vld [vmem:[#allocation52_spill] sm:$0xff]  ;;  %v7243_v16 = vld [vmem:[#allocation62_spill] sm:$0xff]  ;;  %v7248_v42 = vld [vmem:[#allocation69_spill] sm:$0xff] }
 0x16e   : > { %3742 = vmatprep.subr.bf16.mxu0 %v3741_v36  ;;  %v3747_v25 = vpack.c.bf16 %v7242_v38, %v7241_v61  ;;  %v3749_v60 = vpack.c.bf16 %v7244_v48, %v7243_v16  ;;  %v7245_v36 = vld [vmem:[#allocation59_spill] sm:$0xff]  ;;  %v7254_v61 = vld [vmem:[#allocation72_spill] sm:$0xff]  ;;  %v7256_v16 = vld [vmem:[#allocation81_spill] sm:$0xff] }
 0x16f   : > { %3356 = vmatpush1.bf16.msra.mxu1 %v3355_v0  ;;  %v3363_v24 = vpack.c.bf16 %v7246_v63, %v7245_v36  ;;  %v7247_v0 = vld [vmem:[#allocation68_spill] sm:$0xff]  ;;  %v7252_v41 = vld [vmem:[#allocation75_spill] sm:$0xff]  ;;  %v7258_v36 = vld [vmem:[#allocation78_spill] sm:$0xff] }
 0x170   : > { %3358 = vmatprep.subr.bf16.mxu1 %v3357_v5  ;;  %v3365_v40 = vpack.c.bf16 %v7248_v42, %v7247_v0  ;;  %v7249_v5 = vld [vmem:[#allocation65_spill] sm:$0xff]  ;;  %v7260_v0 = vld [vmem:[#allocation87_spill] sm:$0xff] }
 0x171   : > { %3744 = vmatpush1.bf16.msra.mxu0 %v3743_v26  ;;  %v3751_v3 = vpack.c.bf16 %v7250_v33, %v7249_v5  ;;  %v7251_v26 = vld [vmem:[#allocation74_spill] sm:$0xff]  ;;  %v7262_v5 = vld [vmem:[#allocation84_spill] sm:$0xff] }
 0x172   : > { %3746 = vmatprep.subr.bf16.mxu0 %v3745_v6  ;;  %v3753_v38 = vpack.c.bf16 %v7252_v41, %v7251_v26  ;;  %v7253_v6 = vld [vmem:[#allocation71_spill] sm:$0xff]  ;;  %v7264_v26 = vld [vmem:[#allocation93_spill] sm:$0xff] }
 0x173   : > { %3360 = vmatpush1.bf16.msra.mxu1 %v3359_v39  ;;  %v3367_v48 = vpack.c.bf16 %v7254_v61, %v7253_v6  ;;  %v7255_v39 = vld [vmem:[#allocation80_spill] sm:$0xff]  ;;  %v7266_v6 = vld [vmem:[#allocation90_spill] sm:$0xff] }
 0x174   : > { %3362 = vmatprep.subr.bf16.mxu1 %v3361_v15  ;;  %v3369_v63 = vpack.c.bf16 %v7256_v16, %v7255_v39  ;;  %v7257_v15 = vld [vmem:[#allocation76_spill] sm:$0xff]  ;;  %v7268_v39 = vld [vmem:[#allocation99_spill] sm:$0xff] }
 0x175   : > { %3748 = vmatpush1.bf16.msra.mxu0 %v3747_v25  ;;  %v3755_v42 = vpack.c.bf16 %v7258_v36, %v7257_v15  ;;  %v7259_v25 = vld [vmem:[#allocation85_spill] sm:$0xff]  ;;  %v7270_v15 = vld [vmem:[#allocation96_spill] sm:$0xff] }
 0x176   : > { %3750 = vmatprep.subr.bf16.mxu0 %v3749_v60  ;;  %v3757_v33 = vpack.c.bf16 %v7260_v0, %v7259_v25  ;;  %v7261_v60 = vld [vmem:[#allocation83_spill] sm:$0xff]  ;;  %v7272_v25 = vld [vmem:[#allocation105_spill] sm:$0xff] }
 0x177   : > { %3364 = vmatpush1.bf16.msra.mxu1 %v3363_v24  ;;  %v3371_v41 = vpack.c.bf16 %v7262_v5, %v7261_v60  ;;  %v7263_v24 = vld [vmem:[#allocation92_spill] sm:$0xff]  ;;  %v7274_v60 = vld [vmem:[#allocation102_spill] sm:$0xff] }
 0x178   : > { %3366 = vmatprep.subr.bf16.mxu1 %v3365_v40  ;;  %v3373_v61 = vpack.c.bf16 %v7264_v26, %v7263_v24  ;;  %v7265_v40 = vld [vmem:[#allocation89_spill] sm:$0xff]  ;;  %v7276_v24 = vld [vmem:[#allocation111_spill] sm:$0xff] }
 0x179   : > { %3752 = vmatpush1.bf16.msra.mxu0 %v3751_v3  ;;  %v3759_v16 = vpack.c.bf16 %v7266_v6, %v7265_v40  ;;  %v7267_v3 = vld [vmem:[#allocation97_spill] sm:$0xff]  ;;  %v7278_v40 = vld [vmem:[#allocation108_spill] sm:$0xff] }
 0x17a   : > { %3754 = vmatprep.subr.bf16.mxu0 %v3753_v38  ;;  %v3761_v36 = vpack.c.bf16 %v7268_v39, %v7267_v3  ;;  %v7269_v38 = vld [vmem:[#allocation95_spill] sm:$0xff] }
 0x17b   : > { %3368 = vmatpush1.bf16.msra.mxu1 %v3367_v48  ;;  %v3375_v0 = vpack.c.bf16 %v7270_v15, %v7269_v38  ;;  %v7271_v48 = vld [vmem:[#allocation104_spill] sm:$0xff]  ;;  %v7280_v15 = vld [vmem:[#allocation114_spill] sm:$0xff] }
 0x17c   : > { %3370 = vmatprep.subr.bf16.mxu1 %v3369_v63  ;;  %v3377_v5 = vpack.c.bf16 %v7272_v25, %v7271_v48  ;;  %v7273_v63 = vld [vmem:[#allocation101_spill] sm:$0xff] }
 0x17d   : > { %3756 = vmatpush1.bf16.msra.mxu0 %v3755_v42  ;;  %v3763_v26 = vpack.c.bf16 %v7274_v60, %v7273_v63  ;;  %v7275_v42 = vld [vmem:[#allocation109_spill] sm:$0xff] }
 0x17e   : > { %3758 = vmatprep.subr.bf16.mxu0 %v3757_v33  ;;  %v3765_v6 = vpack.c.bf16 %v7276_v24, %v7275_v42  ;;  %v7277_v33 = vld [vmem:[#allocation107_spill] sm:$0xff] }
 0x17f   : > { %3372 = vmatpush1.bf16.msra.mxu1 %v3371_v41  ;;  %v3379_v39 = vpack.c.bf16 %v7278_v40, %v7277_v33  ;;  %v7279_v41 = vld [vmem:[#allocation113_spill] sm:$0xff] }
 0x180   : > { %3374 = vmatprep.subr.bf16.mxu1 %v3373_v61  ;;  %v3767_v61 = vpack.c.bf16 %v7280_v15, %v7279_v41 }
 0x181   : > { %3760 = vmatpush1.bf16.msra.mxu0 %v3759_v16  ;;  %v7281_v16 = vpack.c.bf16 %v7126_v21, %v7125_v22 }
 0x182   : > { %3762 = vmatprep.subr.bf16.mxu0 %v3761_v36  ;;  %v7282_v36 = vpack.c.bf16 %v7130_v13, %v7129_v32 }
 0x183   : > { %3376 = vmatpush1.bf16.msra.mxu1 %v3375_v0  ;;  %v7283_v0 = vpack.c.bf16 %v7128_v49, %v7127_v52 }
 0x184   : > { %3378 = vmatprep.subr.bf16.mxu1 %v3377_v5  ;;  %v7284_v5 = vpack.c.bf16 %v7134_v17, %v7133_v47 }
 0x185   : > { %3764 = vmatpush1.bf16.msra.mxu0 %v3763_v26  ;;  %v7285_v26 = vpack.c.bf16 %v7132_v23, %v7131_v45 }
 0x186   : > { %3766 = vmatprep.subr.bf16.mxu0 %v3765_v6  ;;  %v7286_v6 = vpack.c.bf16 %v7138_v50, %v7137_v27 }
 0x187   : > { %3380 = vmatpush1.bf16.msra.mxu1 %v3379_v39  ;;  %v7287_v39 = vpack.c.bf16 %v7136_v34, %v7135_v51 }
 0x188   : > { %3382 = vmatprep.subr.bf16.mxu1 %v7281_v16  ;;  %v7289_v16 = vpack.c.bf16 %v7141_v59, %v7139_v7 }
 0x189   : > { %3768 = vmatpush1.bf16.msra.mxu0 %v3767_v61  ;;  %v7288_v61 = vpack.c.bf16 %v7143_v2, %v7142_v56 }
 0x18a   : > { %3770 = vmatprep.subr.bf16.mxu0 %v7282_v36  ;;  %v7290_v36 = vpack.c.bf16 %v7147_v9, %v7146_v28 }
 0x18b   : > { %3384 = vmatpush1.bf16.msra.mxu1 %v7283_v0  ;;  %v7291_v0 = vpack.c.bf16 %v7145_v43, %v7144_v46 }
 0x18c   : > { %3386 = vmatprep.subr.bf16.mxu1 %v7284_v5  ;;  %v7292_v5 = vpack.c.bf16 %v7208_v55, %v7207_v29 }
 0x18d   : > { %3772 = vmatpush1.bf16.msra.mxu0 %v7285_v26  ;;  %v7293_v26 = vpack.c.bf16 %v7149_v10, %v7206_v54 }
 0x18e   : > { %3774 = vmatprep.subr.bf16.mxu0 %v7286_v6  ;;  %v7294_v6 = vpack.c.bf16 %v7155_v1, %v7211_v58 }
 0x18f   : > { %3388 = vmatpush1.bf16.msra.mxu1 %v7287_v39  ;;  %v7295_v39 = vpack.c.bf16 %v7153_v12, %v7210_v14  ;;  %v7307_v14 = vld [vmem:[#allocation173_spill] sm:$0xff] }
 0x190   : > { %3390 = vmatprep.subr.bf16.mxu1 %v7288_v61  ;;  %v7296_v61 = vld [vmem:[#allocation164_spill] sm:$0xff] }
 0x191   : > { %3776 = vmatpush1.bf16.msra.mxu0 %v7289_v16  ;;  %v7297_v16 = vpack.c.bf16 %v7215_v53, %v7296_v61 }
 0x192   : > { %3778 = vmatprep.subr.bf16.mxu0 %v7290_v36  ;;  %v7298_v36 = vld [vmem:[#allocation162_spill] sm:$0xff] }
 0x193   : > { %3392 = vmatpush1.bf16.msra.mxu1 %v7291_v0  ;;  %v7299_v0 = vld [vmem:[#allocation161_spill] sm:$0xff] }
 0x194   : > { %3394 = vmatprep.subr.bf16.mxu1 %v7292_v5  ;;  %v7300_v55 = vpack.c.bf16 %v7298_v36, %v7299_v0  ;;  %v7301_v5 = vpack.c.bf16 %v7163_v35, %v7217_v11  ;;  %v7415_v35 = vld [vmem:[#allocation24_spill] sm:$0xff] }
 0x195   : > { %3780 = vmatpush1.bf16.msra.mxu0 %v7293_v26  ;;  %v7302_v26 = vld [vmem:[#allocation167_spill] sm:$0xff] }
 0x196   : > { %3782 = vmatprep.subr.bf16.mxu0 %v7294_v6  ;;  %v7303_v1 = vpack.c.bf16 %v7161_v37, %v7302_v26  ;;  %v7304_v6 = vld [vmem:[#allocation176_spill] sm:$0xff]  ;;  %v7314_v26 = vld [vmem:[#allocation185_spill] sm:$0xff] }
 0x197   : > { %3396 = vmatpush1.bf16.msra.mxu1 %v7295_v39  ;;  %v7305_v12 = vpack.c.bf16 %v7221_v8, %v7304_v6  ;;  %v7306_v39 = vld [vmem:[#allocation174_spill] sm:$0xff] }
 0x198   : > { %3398 = vmatprep.subr.bf16.mxu1 %v7297_v16  ;;  %v7308_v53 = vpack.c.bf16 %v7306_v39, %v7307_v14  ;;  %v7309_v16 = vpack.c.bf16 %v7171_v62, %v7225_v4  ;;  %v7318_v39 = vld [vmem:[#allocation191_spill] sm:$0xff]  ;;  %v7406_v4 = vld [vmem:[#allocation18_spill] sm:$0xff] }
 0x199   : > { %3784 = vmatpush1.bf16.msra.mxu0 %v7300_v55  ;;  %v7310_v55 = vpack.c.bf16 %v7223_v44, %v7222_v31  ;;  %v7323_v31 = vld [vmem:[#allocation197_spill] sm:$0xff]  ;;  %v7412_v6 = vld [vmem:[#allocation202_spill] sm:$0xff] }
 0x19a   : > { %3786 = vmatprep.subr.bf16.mxu0 %v7301_v5  ;;  %v7311_v5 = vld [vmem:[#allocation188_spill] sm:$0xff] }
 0x19b   : > { %3400 = vmatpush1.bf16.msra.mxu1 %v7303_v1  ;;  %v7312_v37 = vpack.c.bf16 %v7227_v30, %v7311_v5  ;;  %v7313_v1 = vld [vmem:[#allocation186_spill] sm:$0xff]  ;;  %v7403_v5 = vld [vmem:[#allocation196_spill] sm:$0xff] }
 0x19c   : > { %3402 = vmatprep.subr.bf16.mxu1 %v7305_v12  ;;  %v7315_v8 = vpack.c.bf16 %v7313_v1, %v7314_v26  ;;  %v7316_v12 = vpack.c.bf16 %v7179_v20, %v7230_v57  ;;  %v7328_v20 = vld [vmem:[#allocation211_spill] sm:$0xff] }
 0x19d   : > { %3788 = vmatpush1.bf16.msra.mxu0 %v7308_v53  ;;  %v7317_v53 = vld [vmem:[#allocation192_spill] sm:$0xff] }
 0x19e   : > { %3790 = vmatprep.subr.bf16.mxu0 %v7309_v16  ;;  %v7319_v62 = vpack.c.bf16 %v7317_v53, %v7318_v39  ;;  %v7320_v16 = vld [vmem:[#allocation200_spill] sm:$0xff] }
 0x19f   : > { %3404 = vmatpush1.bf16.msra.mxu1 %v7310_v55  ;;  %v7321_v44 = vpack.c.bf16 %v7183_v18, %v7320_v16  ;;  %v7322_v55 = vld [vmem:[#allocation198_spill] sm:$0xff]  ;;  %v7330_v53 = vld [vmem:[#allocation16_spill] sm:$0xff]  ;;  %v7334_v18 = vld [vmem:[#allocation25_spill] sm:$0xff] }
 0x1a0   : > { %3406 = vmatprep.subr.bf16.mxu1 %v7312_v37  ;;  %v7324_v30 = vpack.c.bf16 %v7322_v55, %v7323_v31  ;;  %v7325_v37 = vld [vmem:[#allocation13_spill] sm:$0xff]  ;;  %v7395_v31 = vld [vmem:[#allocation15_spill] sm:$0xff] }
 0x1a1   : > { %3792 = vmatpush1.bf16.msra.mxu0 %v7315_v8  ;;  %v7326_v8 = vld [vmem:[#allocation203_spill] sm:$0xff] }
 0x1a2   : > { %3794 = vmatprep.subr.bf16.mxu0 %v7316_v12  ;;  %v7327_v1 = vpack.c.bf16 %v7234_v19, %v7326_v8  ;;  %v7329_v12 = vld [vmem:[#allocation20_spill] sm:$0xff]  ;;  %v7340_v8 = vld [vmem:[#allocation37_spill] sm:$0xff] }
 0x1a3   : > { %3408 = vmatpush1.bf16.msra.mxu1 %v7319_v62  ;;  %v7331_v62 = vld [vmem:[#allocation210_spill] sm:$0xff]  ;;  %v7338_v19 = vld [vmem:[#allocation32_spill] sm:$0xff] }
 0x1a4   : > { %3410 = vmatprep.subr.bf16.mxu1 %v7321_v44  ;;  %v7332_v39 = vand.u32 4294901760, %v7331_v62  ;;  %v7333_v44 = vld [vmem:[#allocation212_spill] sm:$0xff]  ;;  %v7344_v62 = vld [vmem:[#allocation49_spill] sm:$0xff] }
 0x1a5   : > { %3796 = vmatpush1.bf16.msra.mxu0 %v7324_v30  ;;  %v7335_v30 = vld [vmem:[#allocation22_spill] sm:$0xff] }
 0x1a6   : > { %3798 = vmatprep.subr.bf16.mxu0 %v7325_v37  ;;  %v7336_v37 = vld [vmem:[#allocation213_spill] sm:$0xff] }
 0x1a7   : > { %3412 = vmatpush1.bf16.msra.mxu1 %v7327_v1  ;;  %v7337_v55 = vand.u32 4294901760, %v7336_v37  ;;  %v7339_v1 = vld [vmem:[#allocation28_spill] sm:$0xff]  ;;  %v7347_v37 = vld [vmem:[#allocation53_spill] sm:$0xff] }
 0x1a8   : > { %2484 = vmatmul.mubr.f32.vlgmr.msra.gmra.mrb[0].mxu0 %v7328_v20  ;;  %3414 = vmatprep.subr.bf16.mxu1 %v7329_v12  ;;  %v7341_v12 = vld [vmem:[#allocation34_spill] sm:$0xff] }
 0x1a9   : > { %3800 = vmatpush1.bf16.msra.mxu0 %v7330_v53  ;;  %2621 = vmatprep.mubr.f32.mxu0 %v7332_v39  ;;  %v7342_v53 = vld [vmem:[#allocation43_spill] sm:$0xff]  ;;  %v7343_v39 = vld [vmem:[#allocation40_spill] sm:$0xff] }
 0x1aa   : > { %1200 = vmatmul.mubr.f32.vlgmr.msra.gmra.mrb[0].mxu1 %v7333_v44  ;;  %3802 = vmatprep.subr.bf16.mxu0 %v7334_v18  ;;  %v7345_v18 = vld [vmem:[#allocation47_spill] sm:$0xff] }
 0x1ab   : > { %3416 = vmatpush1.bf16.msra.mxu1 %v7335_v30  ;;  %1337 = vmatprep.mubr.f32.mxu1 %v7337_v55  ;;  %v7346_v30 = vld [vmem:[#allocation56_spill] sm:$0xff]  ;;  %v7348_v55 = vld [vmem:[#allocation61_spill] sm:$0xff] }
 0x1ac   : > { %3418 = vmatprep.subr.bf16.mxu1 %v7338_v19  ;;  %v7349_v19 = vld [vmem:[#allocation58_spill] sm:$0xff] }
 0x1ad   : > { %3804 = vmatpush1.bf16.msra.mxu0 %v7339_v1  ;;  %v7350_v1 = vld [vmem:[#allocation67_spill] sm:$0xff] }
 0x1ae   : > { %3806 = vmatprep.subr.bf16.mxu0 %v7340_v8  ;;  %v7351_v8 = vld [vmem:[#allocation64_spill] sm:$0xff] }
 0x1af   : > { %3420 = vmatpush1.bf16.msra.mxu1 %v7341_v12  ;;  %v7352_v12 = vld [vmem:[#allocation73_spill] sm:$0xff] }
 0x1b0   : > { %3422 = vmatprep.subr.bf16.mxu1 %v7342_v53  ;;  %v7353_v53 = vld [vmem:[#allocation70_spill] sm:$0xff] }
 0x1b1   : > { %3808 = vmatpush1.bf16.msra.mxu0 %v7343_v39  ;;  %v7354_v39 = vld [vmem:[#allocation79_spill] sm:$0xff] }
 0x1b2   : > { %3810 = vmatprep.subr.bf16.mxu0 %v7344_v62  ;;  %v7355_v62 = vld [vmem:[#allocation77_spill] sm:$0xff] }
 0x1b3   : > { %3424 = vmatpush1.bf16.msra.mxu1 %v7345_v18  ;;  %v7356_v18 = vld [vmem:[#allocation86_spill] sm:$0xff] }
 0x1b4   : > { %3426 = vmatprep.subr.bf16.mxu1 %v7346_v30  ;;  %v7357_v30 = vld [vmem:[#allocation82_spill] sm:$0xff] }
 0x1b5   : > { %3812 = vmatpush1.bf16.msra.mxu0 %v7347_v37  ;;  %v7358_v37 = vld [vmem:[#allocation91_spill] sm:$0xff] }
 0x1b6   : > { %3814 = vmatprep.subr.bf16.mxu0 %v7348_v55  ;;  %v7359_v55 = vld [vmem:[#allocation88_spill] sm:$0xff] }
 0x1b7   : > { %3428 = vmatpush1.bf16.msra.mxu1 %v7349_v19  ;;  %v7360_v19 = vld [vmem:[#allocation98_spill] sm:$0xff] }
 0x1b8   : > { %3430 = vmatprep.subr.bf16.mxu1 %v7350_v1  ;;  %v7361_v1 = vld [vmem:[#allocation94_spill] sm:$0xff] }
 0x1b9   : > { %3816 = vmatpush1.bf16.msra.mxu0 %v7351_v8  ;;  %v7362_v8 = vld [vmem:[#allocation103_spill] sm:$0xff] }
 0x1ba   : > { %3818 = vmatprep.subr.bf16.mxu0 %v7352_v12  ;;  %v7363_v12 = vld [vmem:[#allocation100_spill] sm:$0xff] }
 0x1bb   : > { %3432 = vmatpush1.bf16.msra.mxu1 %v7353_v53  ;;  %v7364_v53 = vld [vmem:[#allocation110_spill] sm:$0xff] }
 0x1bc   : > { %3434 = vmatprep.subr.bf16.mxu1 %v7354_v39  ;;  %v7365_v39 = vld [vmem:[#allocation106_spill] sm:$0xff] }
 0x1bd   : > { %3820 = vmatpush1.bf16.msra.mxu0 %v7355_v62  ;;  %v7366_v62 = vld [vmem:[#allocation115_spill] sm:$0xff] }
 0x1be   : > { %3822 = vmatprep.subr.bf16.mxu0 %v7356_v18  ;;  %v7367_v18 = vld [vmem:[#allocation112_spill] sm:$0xff] }
 0x1bf   : > { %3436 = vmatpush1.bf16.msra.mxu1 %v7357_v30  ;;  %v7368_v30 = vld [vmem:[#allocation122_spill] sm:$0xff] }
 0x1c0   : > { %3438 = vmatprep.subr.bf16.mxu1 %v7358_v37  ;;  %v7369_v37 = vld [vmem:[#allocation118_spill] sm:$0xff] }
 0x1c1   : > { %3824 = vmatpush1.bf16.msra.mxu0 %v7359_v55  ;;  %v7370_v55 = vld [vmem:[#allocation127_spill] sm:$0xff] }
 0x1c2   : > { %3826 = vmatprep.subr.bf16.mxu0 %v7360_v19  ;;  %v7371_v19 = vld [vmem:[#allocation124_spill] sm:$0xff] }
 0x1c3   : > { %3440 = vmatpush1.bf16.msra.mxu1 %v7361_v1  ;;  %v7372_v1 = vld [vmem:[#allocation134_spill] sm:$0xff] }
 0x1c4   : > { %3442 = vmatprep.subr.bf16.mxu1 %v7362_v8  ;;  %v7373_v8 = vld [vmem:[#allocation130_spill] sm:$0xff] }
 0x1c5   : > { %3828 = vmatpush1.bf16.msra.mxu0 %v7363_v12  ;;  %v7374_v12 = vld [vmem:[#allocation139_spill] sm:$0xff] }
 0x1c6   : > { %3830 = vmatprep.subr.bf16.mxu0 %v7364_v53  ;;  %v7375_v53 = vld [vmem:[#allocation136_spill] sm:$0xff] }
 0x1c7   : > { %3444 = vmatpush1.bf16.msra.mxu1 %v7365_v39  ;;  %v7376_v39 = vld [vmem:[#allocation146_spill] sm:$0xff] }
 0x1c8   : > { %3446 = vmatprep.subr.bf16.mxu1 %v7366_v62  ;;  %v7377_v62 = vld [vmem:[#allocation142_spill] sm:$0xff] }
 0x1c9   : > { %3832 = vmatpush1.bf16.msra.mxu0 %v7367_v18  ;;  %v7378_v18 = vld [vmem:[#allocation151_spill] sm:$0xff] }
 0x1ca   : > { %3834 = vmatprep.subr.bf16.mxu0 %v7368_v30  ;;  %v7379_v30 = vld [vmem:[#allocation148_spill] sm:$0xff] }
 0x1cb   : > { %3448 = vmatpush1.bf16.msra.mxu1 %v7369_v37  ;;  %v7380_v37 = vld [vmem:[#allocation158_spill] sm:$0xff] }
 0x1cc   : > { %3450 = vmatprep.subr.bf16.mxu1 %v7370_v55  ;;  %v7381_v55 = vld [vmem:[#allocation154_spill] sm:$0xff] }
 0x1cd   : > { %3836 = vmatpush1.bf16.msra.mxu0 %v7371_v19  ;;  %v7382_v19 = vld [vmem:[#allocation163_spill] sm:$0xff] }
 0x1ce   : > { %3838 = vmatprep.subr.bf16.mxu0 %v7372_v1  ;;  %v7383_v1 = vld [vmem:[#allocation160_spill] sm:$0xff] }
 0x1cf   : > { %3452 = vmatpush1.bf16.msra.mxu1 %v7373_v8  ;;  %v7384_v8 = vld [vmem:[#allocation170_spill] sm:$0xff] }
 0x1d0   : > { %3454 = vmatprep.subr.bf16.mxu1 %v7374_v12  ;;  %v7385_v12 = vld [vmem:[#allocation166_spill] sm:$0xff] }
 0x1d1   : > { %3840 = vmatpush1.bf16.msra.mxu0 %v7375_v53  ;;  %v7386_v53 = vld [vmem:[#allocation175_spill] sm:$0xff] }
 0x1d2   : > { %3842 = vmatprep.subr.bf16.mxu0 %v7376_v39  ;;  %v7387_v39 = vld [vmem:[#allocation172_spill] sm:$0xff] }
 0x1d3   : > { %3456 = vmatpush1.bf16.msra.mxu1 %v7377_v62  ;;  %v7388_v62 = vld [vmem:[#allocation182_spill] sm:$0xff] }
 0x1d4   : > { %3458 = vmatprep.subr.bf16.mxu1 %v7378_v18  ;;  %v7389_v18 = vld [vmem:[#allocation178_spill] sm:$0xff] }
 0x1d5   : > { %3844 = vmatpush1.bf16.msra.mxu0 %v7379_v30  ;;  %v7390_v30 = vld [vmem:[#allocation187_spill] sm:$0xff] }
 0x1d6   : > { %3846 = vmatprep.subr.bf16.mxu0 %v7380_v37  ;;  %v7391_v37 = vld [vmem:[#allocation184_spill] sm:$0xff] }
 0x1d7   : > { %3460 = vmatpush1.bf16.msra.mxu1 %v7381_v55  ;;  %v7392_v55 = vld [vmem:[#allocation194_spill] sm:$0xff] }
 0x1d8   : > { %3462 = vmatprep.subr.bf16.mxu1 %v7382_v19  ;;  %v7393_v19 = vld [vmem:[#allocation14_spill] sm:$0xff] }
 0x1d9   : > { %3848 = vmatpush1.bf16.msra.mxu0 %v7383_v1  ;;  %v7394_v1 = vand.u32 4294901760, %v7393_v19  ;;  %v7408_v19 = vld [vmem:[#allocation26_spill] sm:$0xff] }
 0x1da   : > { %3850 = vmatprep.subr.bf16.mxu0 %v7384_v8  ;;  %v7396_v8 = vand.u32 4294901760, %v7395_v31  ;;  %v7409_v31 = vand.u32 4294901760, %v7408_v19  ;;  %v7422_v19 = vld [vmem:[#allocation206_spill] sm:$0xff] }
 0x1db   : > { %3464 = vmatpush1.bf16.msra.mxu1 %v7385_v12  ;;  %v7397_v12 = vld [vmem:[#allocation190_spill] sm:$0xff] }
 0x1dc   : > { %3466 = vmatprep.subr.bf16.mxu1 %v7386_v53  ;;  %v3861_v16 = vpack.c.bf16 %v7396_v8, %v7394_v1  ;;  %v7398_v53 = vld [vmem:[#allocation199_spill] sm:$0xff] }
 0x1dd   : > { %3852 = vmatpush1.bf16.msra.mxu0 %v7387_v39  ;;  %v7399_v39 = vld [vmem:[#allocation19_spill] sm:$0xff] }
 0x1de   : > { %3854 = vmatprep.subr.bf16.mxu0 %v7388_v62  ;;  %v7400_v57 = vand.u32 4294901760, %v7399_v39  ;;  %v7401_v62 = vld [vmem:[#allocation21_spill] sm:$0xff]  ;;  %v7410_v8 = vld [vmem:[#allocation27_spill] sm:$0xff] }
 0x1df   : > { %3468 = vmatpush1.bf16.msra.mxu1 %v7389_v18  ;;  %v7402_v26 = vand.u32 4294901760, %v7401_v62  ;;  %v7411_v1 = vand.u32 4294901760, %v7410_v8  ;;  %v7416_v62 = vand.u32 4294901760, %v7415_v35  ;;  %v7427_v35 = vand.u32 4294901760, %v7333_v44 }
 0x1e0   : > { %3470 = vmatprep.subr.bf16.mxu1 %v7390_v30  ;;  %v7404_v30 = vld [vmem:[#allocation17_spill] sm:$0xff] }
 0x1e1   : > { %3856 = vmatpush1.bf16.msra.mxu0 %v7391_v37  ;;  %v3477_v18 = vpack.c.bf16 %v7402_v26, %v7400_v57  ;;  %v7405_v37 = vand.u32 4294901760, %v7404_v30  ;;  %v7417_v26 = vand.u32 4294901760, %v7328_v20  ;;  %v7418_v30 = vld [vmem:[#allocation31_spill] sm:$0xff]  ;;  %v7428_v20 = vld [vmem:[#allocation38_spill] sm:$0xff] }
 0x1e2   : > { %3858 = vmatprep.subr.bf16.mxu0 %v7392_v55  ;;  %v7407_v55 = vand.u32 4294901760, %v7406_v4  ;;  %v7419_v4 = vand.u32 4294901760, %v7418_v30  ;;  %v7432_v30 = vld [vmem:[#allocation209_spill] sm:$0xff] }
 0x1e3   : > { %3472 = vmatpush1.bf16.msra.mxu1 %v7397_v12  ;;  %v3865_v12 = vpack.c.bf16 %v7411_v1, %v7409_v31  ;;  %v7423_v31 = vld [vmem:[#allocation29_spill] sm:$0xff]  ;;  %v7425_v1 = vld [vmem:[#allocation30_spill] sm:$0xff] }
 0x1e4   : > { %3474 = vmatprep.subr.bf16.mxu1 %v7398_v53  ;;  %v3863_v14 = vpack.c.bf16 %v7407_v55, %v7405_v37  ;;  %v7413_v53 = vld [vmem:[#allocation23_spill] sm:$0xff]  ;;  %v7420_v37 = vld [vmem:[#allocation33_spill] sm:$0xff]  ;;  %v7424_v8 = vand.u32 4294901760, %v7423_v31 }
 0x1e5   : > { %3860 = vmatpush1.bf16.msra.mxu0 %v7403_v5  ;;  %v7414_v39 = vand.u32 4294901760, %v7413_v53  ;;  %v7443_v5 = vld [vmem:[#allocation42_spill] sm:$0xff] }
 0x1e6   : > { %3862 = vmatprep.subr.bf16.mxu0 %v3861_v16  ;;  %v7421_v16 = vand.u32 4294901760, %v7420_v37  ;;  %v7435_v37 = vld [vmem:[#allocation36_spill] sm:$0xff] }
 0x1e7   : > { %3476 = vmatpush1.bf16.msra.mxu1 %v7412_v6  ;;  %v3479_v57 = vpack.c.bf16 %v7416_v62, %v7414_v39  ;;  %v7426_v6 = vand.u32 4294901760, %v7425_v1  ;;  %v7429_v39 = vand.u32 4294901760, %v7428_v20  ;;  %v7437_v1 = vld [vmem:[#allocation44_spill] sm:$0xff] }
 0x1e8   : > { %2625 = vmatmul.mubr.f32.vlgmr.msra.gmra.mrb[0].mxu0 %v7417_v26  ;;  %3478 = vmatprep.subr.bf16.mxu1 %v3477_v18  ;;  %v3481_v55 = vpack.c.bf16 %v7421_v16, %v7419_v4  ;;  %v7430_v18 = vld [vmem:[#allocation39_spill] sm:$0xff]  ;;  %v7436_v16 = vand.u32 4294901760, %v7435_v37  ;;  %v7451_v37 = vld [vmem:[#allocation48_spill] sm:$0xff] }
 0x1e9   : > { %3864 = vmatpush1.bf16.msra.mxu0 %v3863_v14  ;;  %2888 = vmatprep.mubr.f32.mxu0 %v7422_v19  ;;  %v3867_v53 = vpack.c.bf16 %v7426_v6, %v7424_v8  ;;  %v7431_v62 = vand.u32 4294901760, %v7430_v18  ;;  %v7433_v14 = vld [vmem:[#allocation35_spill] sm:$0xff]  ;;  %v7438_v6 = vand.u32 4294901760, %v7437_v1  ;;  %v7439_v8 = vld [vmem:[#allocation45_spill] sm:$0xff]  ;;  %v7444_v18 = vand.u32 4294901760, %v7443_v5  ;;  %v7457_v5 = vld [vmem:[#allocation52_spill] sm:$0xff] }
 0x1ea   : > { %1341 = vmatmul.mubr.f32.vlgmr.msra.gmra.mrb[0].mxu1 %v7427_v35  ;;  %3866 = vmatprep.subr.bf16.mxu0 %v3865_v12  ;;  %v7434_v4 = vand.u32 4294901760, %v7433_v14  ;;  %v7440_v44 = vand.u32 4294901760, %v7439_v8  ;;  %v7441_v12 = vld [vmem:[#allocation41_spill] sm:$0xff] }
 0x1eb   : > { %v3869_v26 = vpack.c.bf16 %v7431_v62, %v7429_v39  ;;  %3480 = vmatpush1.bf16.msra.mxu1 %v3479_v57  ;;  %1604 = vmatprep.mubr.f32.mxu1 %v7432_v30  ;;  %v7442_v20 = vand.u32 4294901760, %v7441_v12  ;;  %v7445_v57 = vld [vmem:[#allocation50_spill] sm:$0xff]  ;;  %v7447_v30 = vld [vmem:[#allocation51_spill] sm:$0xff]  ;;  %v7455_v8 = vld [vmem:[#allocation57_spill] sm:$0xff] }
 0x1ec   : > { %v3483_v31 = vpack.c.bf16 %v7436_v16, %v7434_v4  ;;  %3482 = vmatprep.subr.bf16.mxu1 %v3481_v55  ;;  %v3485_v35 = vpack.c.bf16 %v7440_v44, %v7438_v6  ;;  %v7446_v62 = vand.u32 4294901760, %v7445_v57  ;;  %v7448_v14 = vand.u32 4294901760, %v7447_v30  ;;  %v7449_v4 = vld [vmem:[#allocation46_spill] sm:$0xff]  ;;  %v7453_v6 = vld [vmem:[#allocation55_spill] sm:$0xff] }
 0x1ed   : > { %3868 = vmatpush1.bf16.msra.mxu0 %v3867_v53  ;;  %v3871_v39 = vpack.c.bf16 %v7444_v18, %v7442_v20  ;;  %v7450_v55 = vand.u32 4294901760, %v7449_v4  ;;  %v7452_v16 = vand.u32 4294901760, %v7451_v37  ;;  %v7454_v53 = vand.u32 4294901760, %v7453_v6  ;;  %v7459_v20 = vld [vmem:[#allocation54_spill] sm:$0xff]  ;;  %v7467_v37 = vld [vmem:[#allocation60_spill] sm:$0xff] }
 0x1ee   : > { %3870 = vmatprep.subr.bf16.mxu0 %v3869_v26  ;;  %v3873_v19 = vpack.c.bf16 %v7448_v14, %v7446_v62  ;;  %v7456_v44 = vand.u32 4294901760, %v7455_v8  ;;  %v7458_v26 = vand.u32 4294901760, %v7457_v5  ;;  %v7460_v18 = vand.u32 4294901760, %v7459_v20  ;;  %v7461_v30 = vld [vmem:[#allocation62_spill] sm:$0xff]  ;;  %v7463_v62 = vld [vmem:[#allocation63_spill] sm:$0xff]  ;;  %v7471_v8 = vld [vmem:[#allocation69_spill] sm:$0xff] }
 0x1ef   : > { %3484 = vmatpush1.bf16.msra.mxu1 %v3483_v31  ;;  %v3487_v1 = vpack.c.bf16 %v7452_v16, %v7450_v55  ;;  %v7462_v31 = vand.u32 4294901760, %v7461_v30  ;;  %v7464_v14 = vand.u32 4294901760, %v7463_v62  ;;  %v7465_v55 = vld [vmem:[#allocation59_spill] sm:$0xff]  ;;  %v7468_v16 = vand.u32 4294901760, %v7467_v37  ;;  %v7475_v20 = vld [vmem:[#allocation66_spill] sm:$0xff]  ;;  %v7483_v37 = vld [vmem:[#allocation72_spill] sm:$0xff] }
 0x1f0   : > { %3486 = vmatprep.subr.bf16.mxu1 %v3485_v35  ;;  %v3489_v12 = vpack.c.bf16 %v7456_v44, %v7454_v53  ;;  %v3875_v57 = vpack.c.bf16 %v7460_v18, %v7458_v26  ;;  %v7466_v35 = vand.u32 4294901760, %v7465_v55  ;;  %v7469_v53 = vld [vmem:[#allocation68_spill] sm:$0xff]  ;;  %v7472_v44 = vand.u32 4294901760, %v7471_v8  ;;  %v7473_v26 = vld [vmem:[#allocation65_spill] sm:$0xff]  ;;  %v7479_v62 = vld [vmem:[#allocation75_spill] sm:$0xff] }
 0x1f1   : > { %3872 = vmatpush1.bf16.msra.mxu0 %v3871_v39  ;;  %v3877_v4 = vpack.c.bf16 %v7464_v14, %v7462_v31  ;;  %v7470_v39 = vand.u32 4294901760, %v7469_v53  ;;  %v7476_v18 = vand.u32 4294901760, %v7475_v20  ;;  %v7477_v31 = vld [vmem:[#allocation74_spill] sm:$0xff]  ;;  %v7480_v14 = vand.u32 4294901760, %v7479_v62  ;;  %v7487_v8 = vld [vmem:[#allocation81_spill] sm:$0xff]  ;;  %v7495_v62 = vld [vmem:[#allocation87_spill] sm:$0xff] }
 0x1f2   : > { %3874 = vmatprep.subr.bf16.mxu0 %v3873_v19  ;;  %v3491_v6 = vpack.c.bf16 %v7468_v16, %v7466_v35  ;;  %v7474_v19 = vand.u32 4294901760, %v7473_v26  ;;  %v7481_v35 = vld [vmem:[#allocation71_spill] sm:$0xff]  ;;  %v7484_v16 = vand.u32 4294901760, %v7483_v37  ;;  %v7491_v20 = vld [vmem:[#allocation78_spill] sm:$0xff]  ;;  %v7499_v37 = vld [vmem:[#allocation84_spill] sm:$0xff] }
 0x1f3   : > { %3488 = vmatpush1.bf16.msra.mxu1 %v3487_v1  ;;  %v3493_v5 = vpack.c.bf16 %v7472_v44, %v7470_v39  ;;  %v7478_v1 = vand.u32 4294901760, %v7477_v31  ;;  %v7485_v39 = vld [vmem:[#allocation80_spill] sm:$0xff]  ;;  %v7488_v44 = vand.u32 4294901760, %v7487_v8  ;;  %v7503_v8 = vld [vmem:[#allocation93_spill] sm:$0xff] }
 0x1f4   : > { %3490 = vmatprep.subr.bf16.mxu1 %v3489_v12  ;;  %v3879_v30 = vpack.c.bf16 %v7476_v18, %v7474_v19  ;;  %v7482_v12 = vand.u32 4294901760, %v7481_v35  ;;  %v7489_v19 = vld [vmem:[#allocation76_spill] sm:$0xff]  ;;  %v7492_v18 = vand.u32 4294901760, %v7491_v20  ;;  %v7507_v20 = vld [vmem:[#allocation90_spill] sm:$0xff] }
 0x1f5   : > { %3876 = vmatpush1.bf16.msra.mxu0 %v3875_v57  ;;  %v3881_v55 = vpack.c.bf16 %v7480_v14, %v7478_v1  ;;  %v7486_v57 = vand.u32 4294901760, %v7485_v39  ;;  %v7493_v1 = vld [vmem:[#allocation85_spill] sm:$0xff]  ;;  %v7496_v14 = vand.u32 4294901760, %v7495_v62 }
 0x1f6   : > { %3878 = vmatprep.subr.bf16.mxu0 %v3877_v4  ;;  %v3495_v53 = vpack.c.bf16 %v7484_v16, %v7482_v12  ;;  %v7490_v4 = vand.u32 4294901760, %v7489_v19  ;;  %v7497_v12 = vld [vmem:[#allocation83_spill] sm:$0xff]  ;;  %v7500_v16 = vand.u32 4294901760, %v7499_v37 }
 0x1f7   : > { %3492 = vmatpush1.bf16.msra.mxu1 %v3491_v6  ;;  %v3497_v26 = vpack.c.bf16 %v7488_v44, %v7486_v57  ;;  %v7494_v6 = vand.u32 4294901760, %v7493_v1  ;;  %v7501_v57 = vld [vmem:[#allocation92_spill] sm:$0xff]  ;;  %v7504_v44 = vand.u32 4294901760, %v7503_v8 }
 0x1f8   : > { %3494 = vmatprep.subr.bf16.mxu1 %v3493_v5  ;;  %v3883_v31 = vpack.c.bf16 %v7492_v18, %v7490_v4  ;;  %v7498_v5 = vand.u32 4294901760, %v7497_v12  ;;  %v7505_v4 = vld [vmem:[#allocation89_spill] sm:$0xff]  ;;  %v7508_v18 = vand.u32 4294901760, %v7507_v20  ;;  %v7513_v12 = vld [vmem:[#allocation96_spill] sm:$0xff] }
 0x1f9   : > { %3880 = vmatpush1.bf16.msra.mxu0 %v3879_v30  ;;  %v3885_v35 = vpack.c.bf16 %v7496_v14, %v7494_v6  ;;  %v7502_v30 = vand.u32 4294901760, %v7501_v57  ;;  %v7510_v6 = vld [vmem:[#allocation99_spill] sm:$0xff] }
 0x1fa   : > { %3882 = vmatprep.subr.bf16.mxu0 %v3881_v55  ;;  %v3499_v39 = vpack.c.bf16 %v7500_v16, %v7498_v5  ;;  %v7506_v55 = vand.u32 4294901760, %v7505_v4  ;;  %v7511_v62 = vand.u32 4294901760, %v7510_v6  ;;  %v7514_v5 = vand.u32 4294901760, %v7513_v12 }
 0x1fb   : > { %3496 = vmatpush1.bf16.msra.mxu1 %v3495_v53  ;;  %v3501_v19 = vpack.c.bf16 %v7504_v44, %v7502_v30  ;;  %v7509_v53 = vand.u32 4294901760, %v7267_v3  ;;  %v7516_v16 = vand.u32 4294901760, %v7272_v25  ;;  %v7518_v3 = vand.u32 4294901760, %v7274_v60 }
 0x1fc   : > { %3498 = vmatprep.subr.bf16.mxu1 %v3497_v26  ;;  %v3887_v1 = vpack.c.bf16 %v7508_v18, %v7506_v55  ;;  %v7512_v26 = vand.u32 4294901760, %v7269_v38  ;;  %v7520_v38 = vand.u32 4294901760, %v7276_v24  ;;  %v7521_v44 = vand.u32 4294901760, %v7277_v33 }
 0x1fd   : > { %3884 = vmatpush1.bf16.msra.mxu0 %v3883_v31  ;;  %v3889_v14 = vpack.c.bf16 %v7511_v62, %v7509_v53  ;;  %v7515_v31 = vand.u32 4294901760, %v7271_v48  ;;  %v7522_v48 = vand.u32 4294901760, %v7278_v40  ;;  %v7523_v25 = vand.u32 4294901760, %v7125_v22 }
 0x1fe   : > { %3886 = vmatprep.subr.bf16.mxu0 %v3885_v35  ;;  %v3503_v37 = vpack.c.bf16 %v7514_v5, %v7512_v26  ;;  %v7517_v35 = vand.u32 4294901760, %v7273_v63  ;;  %v7524_v63 = vand.u32 4294901760, %v7126_v21  ;;  %v7525_v60 = vand.u32 4294901760, %v7279_v41 }
 0x1ff   : > { %3500 = vmatpush1.bf16.msra.mxu1 %v3499_v39  ;;  %v3505_v57 = vpack.c.bf16 %v7516_v16, %v7515_v31  ;;  %v7519_v39 = vand.u32 4294901760, %v7275_v42  ;;  %v7526_v42 = vand.u32 4294901760, %v7280_v15  ;;  %v7527_v24 = vand.u32 4294901760, %v7129_v32 }
 0x200   : > { %3502 = vmatprep.subr.bf16.mxu1 %v3501_v19  ;;  %v3891_v30 = vpack.c.bf16 %v7518_v3, %v7517_v35  ;;  %v3507_v19 = vpack.c.bf16 %v7522_v48, %v7521_v44  ;;  %v3509_v4 = vpack.c.bf16 %v7524_v63, %v7523_v25  ;;  %v7528_v33 = vand.u32 4294901760, %v7130_v13  ;;  %v7565_v25 = vld [vmem:[#allocation171_spill] sm:$0xff] }
 0x201   : > { %3888 = vmatpush1.bf16.msra.mxu0 %v3887_v1  ;;  %v3893_v8 = vpack.c.bf16 %v7520_v38, %v7519_v39  ;;  %v3895_v55 = vpack.c.bf16 %v7526_v42, %v7525_v60  ;;  %v7529_v40 = vand.u32 4294901760, %v7127_v52  ;;  %v7530_v22 = vand.u32 4294901760, %v7128_v49  ;;  %v7567_v60 = vld [vmem:[#allocation167_spill] sm:$0xff] }
 0x202   : > { %3890 = vmatprep.subr.bf16.mxu0 %v3889_v14  ;;  %v3897_v20 = vpack.c.bf16 %v7528_v33, %v7527_v24  ;;  %v7531_v21 = vand.u32 4294901760, %v7133_v47  ;;  %v7532_v41 = vand.u32 4294901760, %v7134_v17  ;;  %v7533_v15 = vand.u32 4294901760, %v7131_v45  ;;  %v7571_v33 = vld [vmem:[#allocation176_spill] sm:$0xff] }
 0x203   : > { %3504 = vmatpush1.bf16.msra.mxu1 %v3503_v37  ;;  %v3511_v18 = vpack.c.bf16 %v7530_v22, %v7529_v40  ;;  %v7534_v32 = vand.u32 4294901760, %v7132_v23  ;;  %v7535_v13 = vand.u32 4294901760, %v7137_v27  ;;  %v7536_v52 = vand.u32 4294901760, %v7138_v50  ;;  %v7548_v37 = vld [vmem:[#allocation153_spill] sm:$0xff] }
 0x204   : > { %3506 = vmatprep.subr.bf16.mxu1 %v3505_v57  ;;  %v3513_v1 = vpack.c.bf16 %v7532_v41, %v7531_v21  ;;  %v7537_v49 = vand.u32 4294901760, %v7135_v51  ;;  %v7538_v47 = vand.u32 4294901760, %v7136_v34  ;;  %v7539_v17 = vand.u32 4294901760, %v7142_v56  ;;  %v7553_v57 = vld [vmem:[#allocation159_spill] sm:$0xff]  ;;  %v7573_v40 = vld [vmem:[#allocation177_spill] sm:$0xff]  ;;  %v7577_v21 = vld [vmem:[#allocation174_spill] sm:$0xff] }
 0x205   : > { %3892 = vmatpush1.bf16.msra.mxu0 %v3891_v30  ;;  %v3899_v53 = vpack.c.bf16 %v7534_v32, %v7533_v15  ;;  %v3901_v6 = vpack.c.bf16 %v7536_v52, %v7535_v13  ;;  %v7540_v45 = vand.u32 4294901760, %v7143_v2  ;;  %v7541_v23 = vand.u32 4294901760, %v7139_v7  ;;  %v7557_v30 = vld [vmem:[#allocation156_spill] sm:$0xff]  ;;  %v7581_v32 = vld [vmem:[#allocation183_spill] sm:$0xff] }
 0x206   : > { %3894 = vmatprep.subr.bf16.mxu0 %v3893_v8  ;;  %v3515_v62 = vpack.c.bf16 %v7538_v47, %v7537_v49  ;;  %v7542_v27 = vand.u32 4294901760, %v7141_v59  ;;  %v7543_v50 = vand.u32 4294901760, %v7146_v28  ;;  %v7544_v51 = vand.u32 4294901760, %v7147_v9  ;;  %v7560_v8 = vld [vmem:[#allocation165_spill] sm:$0xff]  ;;  %v7583_v52 = vld [vmem:[#allocation179_spill] sm:$0xff]  ;;  %v7585_v49 = vld [vmem:[#allocation180_spill] sm:$0xff] }
 0x207   : > { %3508 = vmatpush1.bf16.msra.mxu1 %v3507_v19  ;;  %v3517_v14 = vpack.c.bf16 %v7540_v45, %v7539_v17  ;;  %v7545_v34 = vand.u32 4294901760, %v7144_v46  ;;  %v7546_v56 = vand.u32 4294901760, %v7145_v43  ;;  %v7547_v2 = vand.u32 4294901760, %v7207_v29  ;;  %v7555_v43 = vld [vmem:[#allocation155_spill] sm:$0xff]  ;;  %v7587_v17 = vld [vmem:[#allocation188_spill] sm:$0xff] }
 0x208   : > { %3510 = vmatprep.subr.bf16.mxu1 %v3509_v4  ;;  %v3903_v26 = vpack.c.bf16 %v7542_v27, %v7541_v23  ;;  %v3905_v12 = vpack.c.bf16 %v7544_v51, %v7543_v50  ;;  %v7549_v7 = vand.u32 4294901760, %v7548_v37  ;;  %v7550_v59 = vand.u32 4294901760, %v7206_v54  ;;  %v7593_v51 = vld [vmem:[#allocation186_spill] sm:$0xff] }
 0x209   : > { %3896 = vmatpush1.bf16.msra.mxu0 %v3895_v55  ;;  %v3519_v5 = vpack.c.bf16 %v7546_v56, %v7545_v34  ;;  %v7551_v28 = vand.u32 4294901760, %v7149_v10  ;;  %v7552_v9 = vand.u32 4294901760, %v7211_v58  ;;  %v7554_v46 = vand.u32 4294901760, %v7553_v57  ;;  %v7569_v55 = vld [vmem:[#allocation168_spill] sm:$0xff]  ;;  %v7595_v56 = vld [vmem:[#allocation193_spill] sm:$0xff] }
 0x20a   : > { %3898 = vmatprep.subr.bf16.mxu0 %v3897_v20  ;;  %v3521_v31 = vpack.c.bf16 %v7549_v7, %v7547_v2  ;;  %v7556_v3 = vand.u32 4294901760, %v7555_v43  ;;  %v7558_v29 = vand.u32 4294901760, %v7557_v30  ;;  %v7559_v38 = vand.u32 4294901760, %v7296_v61  ;;  %v7597_v2 = vld [vmem:[#allocation195_spill] sm:$0xff]  ;;  %v7603_v57 = vld [vmem:[#allocation200_spill] sm:$0xff]  ;;  %v7607_v30 = vld [vmem:[#allocation197_spill] sm:$0xff] }
 0x20b   : > { %3512 = vmatpush1.bf16.msra.mxu1 %v3511_v18  ;;  %v3907_v16 = vpack.c.bf16 %v7551_v28, %v7550_v59  ;;  %v3909_v35 = vpack.c.bf16 %v7554_v46, %v7552_v9  ;;  %v7561_v54 = vand.u32 4294901760, %v7560_v8  ;;  %v7562_v10 = vand.u32 4294901760, %v7299_v0  ;;  %v7601_v28 = vld [vmem:[#allocation192_spill] sm:$0xff] }
 0x20c   : > { %3514 = vmatprep.subr.bf16.mxu1 %v3513_v1  ;;  %v3523_v39 = vpack.c.bf16 %v7558_v29, %v7556_v3  ;;  %v7563_v58 = vand.u32 4294901760, %v7298_v36  ;;  %v7564_v19 = vand.u32 4294901760, %v7217_v11  ;;  %v7566_v63 = vand.u32 4294901760, %v7565_v25  ;;  %v7575_v36 = vld [vmem:[#allocation173_spill] sm:$0xff]  ;;  %v7616_v25 = vld [vmem:[#allocation207_spill] sm:$0xff] }
 0x20d   : > { %3900 = vmatpush1.bf16.msra.mxu0 %v3899_v53  ;;  %v3525_v44 = vpack.c.bf16 %v7561_v54, %v7559_v38  ;;  %v7568_v42 = vand.u32 4294901760, %v7567_v60  ;;  %v7570_v61 = vand.u32 4294901760, %v7569_v55  ;;  %v7572_v20 = vand.u32 4294901760, %v7571_v33  ;;  %v7579_v1 = vld [vmem:[#allocation181_spill] sm:$0xff]  ;;  %v7611_v54 = vld [vmem:[#allocation203_spill] sm:$0xff]  ;;  %v7619_v60 = vld [vmem:[#allocation206_spill] sm:$0xff] }
 0x20e   : > { %3902 = vmatprep.subr.bf16.mxu0 %v3901_v6  ;;  %v3911_v48 = vpack.c.bf16 %v7563_v58, %v7562_v10  ;;  %v3913_v4 = vpack.c.bf16 %v7566_v63, %v7564_v19  ;;  %v7574_v0 = vand.u32 4294901760, %v7573_v40  ;;  %v7576_v18 = vand.u32 4294901760, %v7575_v36  ;;  %v7613_v10 = vld [vmem:[#allocation204_spill] sm:$0xff]  ;;  %v7615_v19 = vld [vmem:[#allocation13_spill] sm:$0xff] }
 0x20f   : > { %3516 = vmatpush1.bf16.msra.mxu1 %v3515_v62  ;;  %v3527_v24 = vpack.c.bf16 %v7570_v61, %v7568_v42  ;;  %v7578_v11 = vand.u32 4294901760, %v7577_v21  ;;  %v7580_v15 = vand.u32 4294901760, %v7579_v1  ;;  %v7582_v53 = vand.u32 4294901760, %v7581_v32  ;;  %v7617_v63 = vld [vmem:[#allocation20_spill] sm:$0xff]  ;;  %v7621_v55 = vld [vmem:[#allocation25_spill] sm:$0xff]  ;;  %v7622_v61 = vld [vmem:[#allocation22_spill] sm:$0xff] }
 0x210   : > { %3518 = vmatprep.subr.bf16.mxu1 %v3517_v14  ;;  %v3529_v22 = vpack.c.bf16 %v7574_v0, %v7572_v20  ;;  %v7584_v6 = vand.u32 4294901760, %v7583_v52  ;;  %v7586_v47 = vand.u32 4294901760, %v7585_v49  ;;  %v7588_v45 = vand.u32 4294901760, %v7587_v17  ;;  %v7589_v14 = vld [vmem:[#allocation189_spill] sm:$0xff]  ;;  %v7620_v42 = vld [vmem:[#allocation208_spill] sm:$0xff]  ;;  %v7627_v0 = vld [vmem:[#allocation34_spill] sm:$0xff] }
 0x211   : > { %3904 = vmatpush1.bf16.msra.mxu0 %v3903_v26  ;;  %v3915_v41 = vpack.c.bf16 %v7578_v11, %v7576_v18  ;;  %v3917_v13 = vpack.c.bf16 %v7582_v53, %v7580_v15  ;;  %v7590_v23 = vand.u32 4294901760, %v7589_v14  ;;  %v7591_v26 = vld [vmem:[#allocation185_spill] sm:$0xff]  ;;  %v7598_v37 = vand.u32 4294901760, %v7597_v2  ;;  %v7624_v33 = vld [vmem:[#allocation32_spill] sm:$0xff]  ;;  %v7631_v21 = vld [vmem:[#allocation47_spill] sm:$0xff] }
 0x212   : > { %3906 = vmatprep.subr.bf16.mxu0 %v3905_v12  ;;  %v3531_v62 = vpack.c.bf16 %v7586_v47, %v7584_v6  ;;  %v7592_v50 = vand.u32 4294901760, %v7591_v26  ;;  %v7594_v12 = vand.u32 4294901760, %v7593_v51  ;;  %v7604_v46 = vand.u32 4294901760, %v7603_v57  ;;  %v7625_v20 = vld [vmem:[#allocation28_spill] sm:$0xff]  ;;  %v7626_v40 = vld [vmem:[#allocation37_spill] sm:$0xff]  ;;  %v7635_v15 = vld [vmem:[#allocation58_spill] sm:$0xff] }
 0x213   : > { %3520 = vmatpush1.bf16.msra.mxu1 %v3519_v5  ;;  %v3533_v27 = vpack.c.bf16 %v7590_v23, %v7588_v45  ;;  %v7596_v5 = vand.u32 4294901760, %v7595_v56  ;;  %v7608_v29 = vand.u32 4294901760, %v7607_v30  ;;  %v7614_v58 = vand.u32 4294901760, %v7613_v10  ;;  %v7629_v36 = vld [vmem:[#allocation40_spill] sm:$0xff]  ;;  %v7630_v18 = vld [vmem:[#allocation49_spill] sm:$0xff]  ;;  %v7636_v32 = vld [vmem:[#allocation67_spill] sm:$0xff] }
 0x214   : > { %3522 = vmatprep.subr.bf16.mxu1 %v3521_v31  ;;  %v3919_v34 = vpack.c.bf16 %v7594_v12, %v7592_v50  ;;  %v7599_v31 = vld [vmem:[#allocation191_spill] sm:$0xff]  ;;  %v7632_v11 = vld [vmem:[#allocation56_spill] sm:$0xff]  ;;  %v7634_v1 = vld [vmem:[#allocation61_spill] sm:$0xff] }
 0x215   : > { %3908 = vmatpush1.bf16.msra.mxu0 %v3907_v16  ;;  %v3921_v7 = vpack.c.bf16 %v7598_v37, %v7596_v5  ;;  %v7600_v59 = vand.u32 4294901760, %v7599_v31  ;;  %v7602_v16 = vand.u32 4294901760, %v7601_v28  ;;  %v7637_v53 = vld [vmem:[#allocation64_spill] sm:$0xff]  ;;  %v7639_v52 = vld [vmem:[#allocation70_spill] sm:$0xff]  ;;  %v7640_v6 = vld [vmem:[#allocation79_spill] sm:$0xff] }
 0x216   : > { %3910 = vmatprep.subr.bf16.mxu0 %v3909_v35  ;;  %v7605_v35 = vld [vmem:[#allocation201_spill] sm:$0xff]  ;;  %v7642_v47 = vld [vmem:[#allocation86_spill] sm:$0xff]  ;;  %v7644_v17 = vld [vmem:[#allocation91_spill] sm:$0xff] }
 0x217   : > { %3524 = vmatpush1.bf16.msra.mxu1 %v3523_v39  ;;  %v3535_v9 = vpack.c.bf16 %v7602_v16, %v7600_v59  ;;  %v7606_v43 = vand.u32 4294901760, %v7605_v35  ;;  %v7609_v39 = vld [vmem:[#allocation198_spill] sm:$0xff]  ;;  %v7641_v49 = vld [vmem:[#allocation77_spill] sm:$0xff]  ;;  %v7645_v45 = vld [vmem:[#allocation88_spill] sm:$0xff] }
 0x218   : > { %3526 = vmatprep.subr.bf16.mxu1 %v3525_v44  ;;  %v7610_v38 = vand.u32 4294901760, %v7609_v39  ;;  %v7612_v44 = vand.u32 4294901760, %v7611_v54  ;;  %v7646_v14 = vld [vmem:[#allocation98_spill] sm:$0xff]  ;;  %v7649_v26 = vld [vmem:[#allocation100_spill] sm:$0xff]  ;;  %v7652_v12 = vld [vmem:[#allocation115_spill] sm:$0xff] }
 0x219   : > { %3912 = vmatpush1.bf16.msra.mxu0 %v3911_v48  ;;  %v3537_v3 = vpack.c.bf16 %v7606_v43, %v7604_v46  ;;  %v7647_v23 = vld [vmem:[#allocation94_spill] sm:$0xff]  ;;  %v7656_v2 = vld [vmem:[#allocation127_spill] sm:$0xff]  ;;  %v7657_v37 = vld [vmem:[#allocation124_spill] sm:$0xff] }
 0x21a   : > { %3914 = vmatprep.subr.bf16.mxu0 %v3913_v4  ;;  %v3923_v8 = vpack.c.bf16 %v7610_v38, %v7608_v29  ;;  %v3539_v48 = vpack.c.bf16 %v7614_v58, %v7612_v44  ;;  %v7618_v4 = vld [vmem:[#allocation16_spill] sm:$0xff]  ;;  %v7650_v50 = vld [vmem:[#allocation110_spill] sm:$0xff]  ;;  %v7660_v59 = vld [vmem:[#allocation139_spill] sm:$0xff] }
 0x21b   : > { %3528 = vmatpush1.bf16.msra.mxu1 %v3527_v24  ;;  %v7623_v24 = vld [vmem:[#allocation209_spill] sm:$0xff]  ;;  %v7651_v51 = vld [vmem:[#allocation106_spill] sm:$0xff]  ;;  %v7661_v28 = vld [vmem:[#allocation136_spill] sm:$0xff] }
 0x21c   : > { %3530 = vmatprep.subr.bf16.mxu1 %v3529_v22  ;;  %v7628_v22 = vld [vmem:[#allocation43_spill] sm:$0xff]  ;;  %v7654_v56 = vld [vmem:[#allocation122_spill] sm:$0xff]  ;;  %v7665_v46 = vld [vmem:[#allocation148_spill] sm:$0xff] }
 0x21d   : > { %3916 = vmatpush1.bf16.msra.mxu0 %v3915_v41  ;;  %v7633_v41 = vld [vmem:[#allocation53_spill] sm:$0xff]  ;;  %v7655_v5 = vld [vmem:[#allocation118_spill] sm:$0xff]  ;;  %v7664_v57 = vld [vmem:[#allocation151_spill] sm:$0xff] }
 0x21e   : > { %3918 = vmatprep.subr.bf16.mxu0 %v3917_v13  ;;  %v7638_v13 = vld [vmem:[#allocation73_spill] sm:$0xff]  ;;  %v7659_v31 = vld [vmem:[#allocation130_spill] sm:$0xff]  ;;  %v7669_v30 = vld [vmem:[#allocation160_spill] sm:$0xff] }
 0x21f   : > { %3532 = vmatpush1.bf16.msra.mxu1 %v3531_v62  ;;  %v7643_v62 = vld [vmem:[#allocation82_spill] sm:$0xff]  ;;  %v7672_v38 = vld [vmem:[#allocation175_spill] sm:$0xff]  ;;  %v7677_v58 = vld [vmem:[#allocation184_spill] sm:$0xff] }
 0x220   : > { %3534 = vmatprep.subr.bf16.mxu1 %v3533_v27  ;;  %v7648_v27 = vld [vmem:[#allocation103_spill] sm:$0xff]  ;;  %v7662_v16 = vld [vmem:[#allocation146_spill] sm:$0xff] }
 0x221   : > { %3920 = vmatpush1.bf16.msra.mxu0 %v3919_v34  ;;  %v7653_v34 = vld [vmem:[#allocation112_spill] sm:$0xff]  ;;  %v7666_v35 = vld [vmem:[#allocation158_spill] sm:$0xff]  ;;  %v7676_v10 = vld [vmem:[#allocation187_spill] sm:$0xff] }
 0x222   : > { %3922 = vmatprep.subr.bf16.mxu0 %v3921_v7  ;;  %v7658_v7 = vld [vmem:[#allocation134_spill] sm:$0xff] }
 0x223   : > { %3536 = vmatpush1.bf16.msra.mxu1 %v3535_v9  ;;  %v7663_v9 = vld [vmem:[#allocation142_spill] sm:$0xff] }
 0x224   : > { %3538 = vmatprep.subr.bf16.mxu1 %v3537_v3  ;;  %v7667_v43 = vld [vmem:[#allocation154_spill] sm:$0xff]  ;;  %v7668_v3 = vld [vmem:[#allocation163_spill] sm:$0xff] }
 0x225   : > { %3924 = vmatpush1.bf16.msra.mxu0 %v3923_v8  ;;  %v7670_v29 = vld [vmem:[#allocation170_spill] sm:$0xff]  ;;  %v7673_v8 = vld [vmem:[#allocation172_spill] sm:$0xff] }
 0x226   : > { %3926 = vmatprep.subr.bf16.mxu0 %v7615_v19  ;;  %v7671_v39 = vld [vmem:[#allocation166_spill] sm:$0xff] }
 0x227   : > { %3540 = vmatpush1.bf16.msra.mxu1 %v3539_v48  ;;  %v7674_v54 = vld [vmem:[#allocation182_spill] sm:$0xff] }
 0x228   : > { %2890 = vmatmul.mubr.f32.vlgmr.msra.gmra.mrb[0].mxu0 %v7616_v25  ;;  %3542 = vmatprep.subr.bf16.mxu1 %v7617_v63  ;;  %v7675_v44 = vld [vmem:[#allocation178_spill] sm:$0xff]  ;;  %v7680_v63 = vld [vmem:[#allocation199_spill] sm:$0xff] }
 0x229   : > { %3928 = vmatpush1.bf16.msra.mxu0 %v7618_v4  ;;  %3025 = vmatprep.mubr.f32.mxu0 %v7619_v60  ;;  %v7678_v48 = vld [vmem:[#allocation194_spill] sm:$0xff]  ;;  %v7681_v4 = vld [vmem:[#allocation196_spill] sm:$0xff] }
 0x22a   : > { %1606 = vmatmul.mubr.f32.vlgmr.msra.gmra.mrb[0].mxu1 %v7620_v42  ;;  %3930 = vmatprep.subr.bf16.mxu0 %v7621_v55  ;;  %v7679_v19 = vld [vmem:[#allocation190_spill] sm:$0xff] }
 0x22b   : > { %3544 = vmatpush1.bf16.msra.mxu1 %v7622_v61  ;;  %1741 = vmatprep.mubr.f32.mxu1 %v7623_v24  ;;  %v7682_v60 = vld [vmem:[#allocation202_spill] sm:$0xff] }
 0x22c   : > { %3546 = vmatprep.subr.bf16.mxu1 %v7624_v33 }
 0x22d   : > { %3932 = vmatpush1.bf16.msra.mxu0 %v7625_v20 }
 0x22e   : > { %3934 = vmatprep.subr.bf16.mxu0 %v7626_v40 }
 0x22f   : > { %3548 = vmatpush1.bf16.msra.mxu1 %v7627_v0 }
 0x230   : > { %3550 = vmatprep.subr.bf16.mxu1 %v7628_v22 }
 0x231   : > { %3936 = vmatpush1.bf16.msra.mxu0 %v7629_v36 }
 0x232   : > { %3938 = vmatprep.subr.bf16.mxu0 %v7630_v18 }
 0x233   : > { %3552 = vmatpush1.bf16.msra.mxu1 %v7631_v21 }
 0x234   : > { %3554 = vmatprep.subr.bf16.mxu1 %v7632_v11 }
 0x235   : > { %3940 = vmatpush1.bf16.msra.mxu0 %v7633_v41 }
 0x236   : > { %3942 = vmatprep.subr.bf16.mxu0 %v7634_v1 }
 0x237   : > { %3556 = vmatpush1.bf16.msra.mxu1 %v7635_v15 }
 0x238   : > { %3558 = vmatprep.subr.bf16.mxu1 %v7636_v32 }
 0x239   : > { %3944 = vmatpush1.bf16.msra.mxu0 %v7637_v53 }
 0x23a   : > { %3946 = vmatprep.subr.bf16.mxu0 %v7638_v13 }
 0x23b   : > { %3560 = vmatpush1.bf16.msra.mxu1 %v7639_v52 }
 0x23c   : > { %3562 = vmatprep.subr.bf16.mxu1 %v7640_v6 }
 0x23d   : > { %3948 = vmatpush1.bf16.msra.mxu0 %v7641_v49 }
 0x23e   : > { %3950 = vmatprep.subr.bf16.mxu0 %v7642_v47 }
 0x23f   : > { %3564 = vmatpush1.bf16.msra.mxu1 %v7643_v62 }
 0x240   : > { %3566 = vmatprep.subr.bf16.mxu1 %v7644_v17 }
 0x241   : > { %3952 = vmatpush1.bf16.msra.mxu0 %v7645_v45 }
 0x242   : > { %3954 = vmatprep.subr.bf16.mxu0 %v7646_v14  ;;  %v7684_v14 = vld [vmem:[#allocation205_spill] sm:$0xff] }
 0x243   : > { %3568 = vmatpush1.bf16.msra.mxu1 %v7647_v23 }
 0x244   : > { %3570 = vmatprep.subr.bf16.mxu1 %v7648_v27 }
 0x245   : > { %3956 = vmatpush1.bf16.msra.mxu0 %v7649_v26 }
 0x246   : > { %3958 = vmatprep.subr.bf16.mxu0 %v7650_v50 }
 0x247   : > { %3572 = vmatpush1.bf16.msra.mxu1 %v7651_v51 }
 0x248   : > { %3574 = vmatprep.subr.bf16.mxu1 %v7652_v12  ;;  %v4086_v12 = vld [vmem:[%s4464_s4] sm:$0xff] }
 0x249   : > { %3960 = vmatpush1.bf16.msra.mxu0 %v7653_v34 }
 0x24a   : > { %3962 = vmatprep.subr.bf16.mxu0 %v7654_v56 }
 0x24b   : > { %3576 = vmatpush1.bf16.msra.mxu1 %v7655_v5 }
 0x24c   : > { %3578 = vmatprep.subr.bf16.mxu1 %v7656_v2 }
 0x24d   : > { %3964 = vmatpush1.bf16.msra.mxu0 %v7657_v37 }
 0x24e   : > { %3966 = vmatprep.subr.bf16.mxu0 %v7658_v7 }
 0x24f   : > { %3580 = vmatpush1.bf16.msra.mxu1 %v7659_v31 }
 0x250   : > { %3582 = vmatprep.subr.bf16.mxu1 %v7660_v59 }
 0x251   : > { %3968 = vmatpush1.bf16.msra.mxu0 %v7661_v28 }
 0x252   : > { %3970 = vmatprep.subr.bf16.mxu0 %v7662_v16 }
 0x253   : > { %3584 = vmatpush1.bf16.msra.mxu1 %v7663_v9 }
 0x254   : > { %3586 = vmatprep.subr.bf16.mxu1 %v7664_v57 }
 0x255   : > { %3972 = vmatpush1.bf16.msra.mxu0 %v7665_v46 }
 0x256   : > { %3974 = vmatprep.subr.bf16.mxu0 %v7666_v35 }
 0x257   : > { %3588 = vmatpush1.bf16.msra.mxu1 %v7667_v43 }
 0x258   : > { %3590 = vmatprep.subr.bf16.mxu1 %v7668_v3 }
 0x259   : > { %3976 = vmatpush1.bf16.msra.mxu0 %v7669_v30 }
 0x25a   : > { %3978 = vmatprep.subr.bf16.mxu0 %v7670_v29 }
 0x25b   : > { %3592 = vmatpush1.bf16.msra.mxu1 %v7671_v39 }
 0x25c   : > { %3594 = vmatprep.subr.bf16.mxu1 %v7672_v38 }
 0x25d   : > { %3980 = vmatpush1.bf16.msra.mxu0 %v7673_v8 }
 0x25e   : > { %3982 = vmatprep.subr.bf16.mxu0 %v7674_v54 }
 0x25f   : > { %3596 = vmatpush1.bf16.msra.mxu1 %v7675_v44 }
 0x260   : > { %3598 = vmatprep.subr.bf16.mxu1 %v7676_v10 }
 0x261   : > { %3984 = vmatpush1.bf16.msra.mxu0 %v7677_v58 }
 0x262   : > { %3986 = vmatprep.subr.bf16.mxu0 %v7678_v48 }
 0x263   : > { %3600 = vmatpush1.bf16.msra.mxu1 %v7679_v19 }
 0x264   : > { %3602 = vmatprep.subr.bf16.mxu1 %v7680_v63 }
 0x265   : > { %3988 = vmatpush1.bf16.msra.mxu0 %v7681_v4 }
 0x267   : > { %3604 = vmatpush1.bf16.msra.mxu1 %v7682_v60 }
 0x268   : > { %3027 = vmatmul.mubr.f32.vlgmr.msra.gmra.mrb[0].mxu0 %v7616_v25  ;;  %v7683_v25 = vld [vmem:[#allocation12_spill] sm:$0xff] }
 0x269   : > { %v3057_v53 = vsub.s32 0, %v7683_v25 }
 0x26a   : > { %1743 = vmatmul.mubr.f32.vlgmr.msra.gmra.mrb[0].mxu1 %v7620_v42  ;;  %v3067_v42 = vsub.s32 1, %v7683_v25 }
 0x33b   : > { %v3028_v55 = vpop.f32.mrb[0].mxu0 }
 0x33c   : > { %v3030_v61 = vpop.f32.mrb[1].mxu0 }
 0x33d   : > { %v1744_v24 = vpop.f32.mrb[0].mxu1 }
 0x33e   : > { %v3989_v33 = vadd.f32 %v3028_v55, %v1744_v24  ;;  %v1746_v20 = vpop.f32.mrb[1].mxu1 }
 0x33f   : > { %v3990_v40 = vadd.f32 %v3030_v61, %v1746_v20 }
 0x340   : > { %v3033_v0 = vmax.f32 %v3989_v33, 0.0 }
 0x341   : > { %v3034_v22 = vmax.f32 %v3990_v40, 0.0 }
 0x342   : > { %v3212_v36 = vmul.f32 -1.442695, %v3033_v0 }
 0x343   : > { %v3213_v18 = vmul.f32 -1.442695, %v3034_v22 }
 0x344   : > { %4078 = vpow2.f32 %v3212_v36 }
 0x345   : > { %4080 = vpow2.f32 %v3213_v18 }
 0x34e   : > { %v4079_v21 = vpop.eup %4078 }
 0x34f   : > { %v4081_v11 = vpop.eup %4080  ;;  %v3041_v41 = vadd.f32 1.0, %v4079_v21 }
 0x350   : > { %v3042_v1 = vadd.f32 1.0, %v4081_v11 }
 0x351   : > { %4082 = vrcp.f32 %v3041_v41 }
 0x352   : > { %4084 = vrcp.f32 %v3042_v1 }
 0x35b   : > { %v4083_v15 = vpop.eup %4082 }
 0x35c   : > { %v4085_v32 = vpop.eup %4084  ;;  %v3049_v13 = vrot.slane %v4083_v15, 1  ;;  %v3068_v52 = vrot.slane %v4083_v15, %v3067_v42 }
 0x35d   : > { %v3050_v6 = vrot.slane %v4085_v32, 1  ;;  %v3072_v49 = vrot.slane %v4085_v32, %v3067_v42 }
 0x35e   : > { %v3053_v47 = vsub.f32 %v4083_v15, %v3049_v13 }
 0x35f   : > { %v3054_v62 = vsub.f32 %v4085_v32, %v3050_v6 }
 0x360   : > { %v3058_v17 = vrot.slane %v3053_v47, %v3057_v53 }
 0x361   : > { %v3062_v45 = vrot.slane %v3054_v62, %v3057_v53 }
 0x362   : > { %v3063_v23 = vmul.f32 %v3058_v17, %v7684_v14 }
 0x363   : > { %v3064_v27 = vmul.f32 %v3062_v45, %v7684_v14 }
 0x364   : > { %v3073_v26 = vadd.f32 %v3068_v52, %v3063_v23 }
 0x365   : > { %v3074_v50 = vadd.f32 %v3072_v49, %v3064_v27 }
 0x367   : > { %v3077_v51 = vcombine.low %v3073_v26, %v3074_v50 }
 0x369   : > { %v3079_v34 = vmul.f32 %v4086_v12, %v3077_v51 }
 0x36b   : > { %3080 = vst [vmem:[%s235_s11] sm:$0xff] %v3079_v34 }
 0x36c   : > { %4188 = shalt.err (!%p4185_p7)
}
 0x36d   : > { %s4189_s10 = scalar_lea.hbm %s6295_s8, 128  ;;  %s4193_s29 = scalar_lea.hbm %s6342_s3, 256 }
 0x36e   : > { %p4190_p9 = scmp.ne.s32.totalorder %s6295_s8, %s4189_s10  ;;  %p4194_p3 = scmp.lt.u32.totalorder %s6295_s8, %s6342_s3 }
 0x36f   : > { %p4195_p1 = scmp.lt.u32.totalorder %s4193_s29, %s4189_s10  ;;  %p4197_p2 = scmp.lt.u32.totalorder %s4189_s10, %s6295_s8 }
 0x370   : > { %p4191_p12 = pnand %p4190_p9, %p7685_p4 }
 0x371   : > { %p4196_p10 = por %p4195_p1, %p4194_p3 }
 0x372   : > { %p4192_p6 = pneg %p4191_p12 }
 0x373   : > { %p4198_p0 = por %p4197_p2, %p4196_p10 }
 0x375   : > { %p4199_p11 = pnand %p4198_p0, %p4192_p6 }
 0x377   : > { %4202 = shalt.err (!%p4199_p11)
}
 0x378   : > { %4019 = dma.vmem_to_hbm [thread:$0]  (%p7685_p4), %s6297_s22, 128, %s6295_s8, %s3082_s30  }
 0x379 PF: > { %s3108_s26 = sand.u32 1, %s4233_s12   ;;  %p7686_p13 = scmp.ne.s32.totalorder %s6871_s25, 0 }
 0x37a   : > { %p7687_p8 = scmp.ge.s32.totalorder %s4245_s15, 2  ;;  %s3109_s9 = scalar_lea.sflag [#allocation4], %s3108_s26 }
 0x37c   : > { %p4033_p5 = pnand %p7687_p8, %p7686_p13 }
 0x37e   : > { %4228 = dma.done.wait (!%p4033_p5), %s3109_s9, 128  }
 0x37f   : > { %4230 = vsyncadd (!%p4033_p5), %s3109_s9, 4294967168  ;;  %p17_p7 = scmp.ge.s32.totalorder %s4296_s16, 4   ;;  %s7688_s12 = smov %s4237_s13 }
 0x380   : > { %s7689_s13 = smov %s4241_s14  ;;  %s7690_s14 = smov %s4307_s19 }
 0x381   : > { %s7691_s15 = smov %s4296_s16  ;;  %19 = sbr.rel (!%p17_p7) target bundleno = 6 (0x6), region = 93 }
 0x388   :  { %3114 = vsyncpa [#allocation3], 1 }
 0x389   :  { %3116 = vsyncpa [#allocation3 + $0x1], 1 }
 0x38a   :  { %3117 = vsyncpa [#allocation6], 1 }
 0x38b   :  { %3119 = vsyncpa [#allocation6 + $0x1], 1 }
 0x38c   :  { %3120 = vsyncpa [#allocation4], 1 }
 0x38d   :  { %3122 = vsyncpa [#allocation4 + $0x1], 1 }

</bundles_post_ra>
